<compile_context>
chip_gen: v7x
topology: tpu7x:2x2x1
jax: 0.10.0
libtpu: 0.0.40
codegen_flags: <defaults>
</compile_context>

<pallas_src>
import math

import jax
import jax.numpy as jnp
from jax.experimental import pallas as pl
from jax.experimental.pallas import tpu as pltpu

BN_EPS = 1e-5

_VMEM = pl.BlockSpec(memory_space=pltpu.MemorySpace.VMEM)


# ----------------------------------------------------------------------------- kernels

def _make_conv_bn_relu_kernel(m_total):
    """Fused conv-as-GEMM + train-mode BN + ReLU (no pool).

    p_ref: (M, K) bf16 patches; w_ref: (K, C) bf16; g_ref/b_ref: (1, C) f32;
    o_ref: (M, C) f32 or bf16.  `m_total` is the BN sample count N*Ho*Wo.
    """
    inv_m = 1.0 / float(m_total)

    def kernel(p_ref, w_ref, g_ref, b_ref, o_ref):
        acc = jnp.dot(p_ref[...], w_ref[...], preferred_element_type=jnp.float32)
        # single-pass BN stats (bias-free: conv bias cancels against the batch mean)
        s = jnp.sum(acc, axis=0, keepdims=True)
        ss = jnp.sum(acc * acc, axis=0, keepdims=True)
        mean = s * inv_m
        var = ss * inv_m - mean * mean            # biased (train-mode) variance
        scale = g_ref[...] * jax.lax.rsqrt(var + BN_EPS)
        shift = b_ref[...] - mean * scale
        o_ref[...] = jnp.maximum(acc * scale + shift, 0.0).astype(o_ref.dtype)

    return kernel


def _make_conv_bn_relu_pool_kernel(m_total, has_leftover):
    """Fused conv-as-GEMM + train-mode BN + ReLU + 2x2/stride-2 max-pool.

    pe_ref: (4, P, K) bf16 patches — axis 0 enumerates the 4 members of each pool
            window, so pooling is an elementwise max over that axis.
    lo_ref: (L, K) bf16 patches for positions dropped by the floor pool; they only
            contribute to the BN batch statistics (present iff has_leftover).
    w_ref: (K, C) bf16; g_ref/b_ref: (1, C) f32; o_ref: (P, C) f32 or bf16.
    """
    inv_m = 1.0 / float(m_total)

    def kernel(*refs):
        if has_leftover:
            pe_ref, lo_ref, w_ref, g_ref, b_ref, o_ref = refs
        else:
            pe_ref, w_ref, g_ref, b_ref, o_ref = refs

        w = w_ref[...]
        a0 = jnp.dot(pe_ref[0], w, preferred_element_type=jnp.float32)
        a1 = jnp.dot(pe_ref[1], w, preferred_element_type=jnp.float32)
        a2 = jnp.dot(pe_ref[2], w, preferred_element_type=jnp.float32)
        a3 = jnp.dot(pe_ref[3], w, preferred_element_type=jnp.float32)

        # BN statistics over ALL N*Ho*Wo conv outputs (pool happens after BN).
        s = jnp.sum(a0 + a1 + a2 + a3, axis=0, keepdims=True)
        ss = (jnp.sum(a0 * a0, axis=0, keepdims=True)
              + jnp.sum(a1 * a1, axis=0, keepdims=True)
              + jnp.sum(a2 * a2, axis=0, keepdims=True)
              + jnp.sum(a3 * a3, axis=0, keepdims=True))
        if has_leftover:
            al = jnp.dot(lo_ref[...], w, preferred_element_type=jnp.float32)
            s = s + jnp.sum(al, axis=0, keepdims=True)
            ss = ss + jnp.sum(al * al, axis=0, keepdims=True)

        mean = s * inv_m
        var = ss * inv_m - mean * mean            # biased (train-mode) variance
        scale = g_ref[...] * jax.lax.rsqrt(var + BN_EPS)
        shift = b_ref[...] - mean * scale

        # normalize each pool-window member, pool, then ReLU (ReLU commutes with max)
        y = jnp.maximum(jnp.maximum(a0 * scale + shift, a1 * scale + shift),
                        jnp.maximum(a2 * scale + shift, a3 * scale + shift))
        o_ref[...] = jnp.maximum(y, 0.0).astype(o_ref.dtype)

    return kernel


# ----------------------------------------------------------------------------- wrappers

def _im2col_nhwc(x_nhwc, kh, kw):
    """Valid-conv patch extraction, kept 4-D: (N, Ho, Wo, kh*kw*Cin).  Layout glue."""
    n, hp, wp, cin = x_nhwc.shape
    ho, wo = hp - kh + 1, wp - kw + 1
    taps = [x_nhwc[:, i:i + ho, j:j + wo, :] for i in range(kh) for j in range(kw)]
    p = jnp.stack(taps, axis=3)                              # (N, Ho, Wo, 9, Cin)
    return p.reshape(n, ho, wo, kh * kw * cin), (n, ho, wo)


def conv_block_forward(x_nhwc, blk, out_dtype):
    w, gamma, beta = blk["w"], blk["gamma"], blk["beta"]
    pad, pool = blk["padding"], blk["pool"]
    # NOTE: blk["b"] (conv bias) is intentionally NOT used — train-mode BN subtracts
    # the batch mean, so the bias cancels exactly; the reference below keeps it.

    xb = x_nhwc.astype(jnp.bfloat16)                         # bf16 MXU operands (no-op
                                                             # when fed bf16 activations)
    if pad:
        xb = jnp.pad(xb, ((0, 0), (pad, pad), (pad, pad), (0, 0)))

    kh, kw, cin, cout = w.shape
    p4, (n, ho, wo) = _im2col_nhwc(xb, kh, kw)
    k = kh * kw * cin
    m = n * ho * wo
    w2d = w.reshape(k, cout).astype(jnp.bfloat16)
    g2d = gamma.reshape(1, cout).astype(jnp.float32)
    b2d = beta.reshape(1, cout).astype(jnp.float32)

    if not pool:
        y2d = pl.pallas_call(
            _make_conv_bn_relu_kernel(m),
            out_shape=jax.ShapeDtypeStruct((m, cout), out_dtype),
            in_specs=[_VMEM] * 4,
            out_specs=_VMEM,
        )(p4.reshape(m, k), w2d, g2d, b2d)
        return y2d.reshape(n, ho, wo, cout)

    # --- pooled block: pre-split patches so the 2x2 pool fuses into the epilogue ---
    hq, wq = ho // 2, wo // 2                                # floor, like nn.MaxPool2d(2)
    p_cnt = n * hq * wq
    pe = (p4[:, :2 * hq, :2 * wq, :]
          .reshape(n, hq, 2, wq, 2, k)
          .transpose(2, 4, 0, 1, 3, 5)                       # (dh, dw, n, hq, wq, k)
          .reshape(4, p_cnt, k))
    # rows discarded by the floor pool still feed the BN batch statistics
    rest_rows = p4[:, 2 * hq:, :, :].reshape(-1, k)
    rest_cols = p4[:, :2 * hq, 2 * wq:, :].reshape(-1, k)
    l_cnt = rest_rows.shape[0] + rest_cols.shape[0]

    kern = _make_conv_bn_relu_pool_kernel(m, l_cnt > 0)
    out_shape = jax.ShapeDtypeStruct((p_cnt, cout), out_dtype)
    if l_cnt > 0:
        leftover = jnp.concatenate([rest_rows, rest_cols], axis=0)
        y2d = pl.pallas_call(kern, out_shape=out_shape,
                             in_specs=[_VMEM] * 5, out_specs=_VMEM,
                             )(pe, leftover, w2d, g2d, b2d)
    else:
        y2d = pl.pallas_call(kern, out_shape=out_shape,
                             in_specs=[_VMEM] * 4, out_specs=_VMEM,
                             )(pe, w2d, g2d, b2d)
    return y2d.reshape(n, hq, wq, cout)


def convnet_nopool_forward(x_nchw, params):
    x = jnp.transpose(x_nchw, (0, 2, 3, 1))                  # NCHW -> NHWC (once)
    last = len(params) - 1
    for i, blk in enumerate(params):
        # intermediate activations stay bf16 (next layer's GEMM input dtype);
        # final block emits f32 features.
        out_dtype = jnp.float32 if i == last else jnp.bfloat16
        x = conv_block_forward(x, blk, out_dtype)
    return jnp.transpose(x, (0, 3, 1, 2))                    # NHWC -> NCHW (once)


# ----------------------------------------------------------------------------- params

def init_params(key, depth=4):
    """Deterministic synthetic init matching the PyTorch module's shapes / init_layer."""
    params = []
    for i in range(depth):
        cin = 3 if i == 0 else 64
        cout = 64
        key, kw_, kb_ = jax.random.split(key, 3)
        n = 3 * 3 * cout
        w = jax.random.normal(kw_, (3, 3, cin, cout), jnp.float32) * (math.sqrt(2.0) / n)
        fan_in = cin * 3 * 3
        bound = 1.0 / math.sqrt(fan_in)
        b = jax.random.uniform(kb_, (cout,), jnp.float32, -bound, bound)
        params.append(dict(
            w=w, b=b,
            gamma=jnp.ones((cout,), jnp.float32),
            beta=jnp.zeros((cout,), jnp.float32),
            padding=0 if i in (0, 1) else 1,
            pool=i in (0, 1),
        ))
    return params


# ----------------------------------------------------------------------------- reference

def reference_forward(x_nchw, params):
    """Pure-JAX reference mirroring the PyTorch module (conv+bias, train-mode BN, ReLU,
    floor max-pool).  Conv operands are cast to bf16 so both paths use the same matmul
    precision (the Pallas kernels run bf16 MXU GEMMs with f32 accumulation)."""
    y = x_nchw
    for blk in params:
        pad = blk["padding"]
        yc = jax.lax.conv_general_dilated(
            y.astype(jnp.bfloat16), blk["w"].astype(jnp.bfloat16),
            window_strides=(1, 1), padding=[(pad, pad), (pad, pad)],
            dimension_numbers=("NCHW", "HWIO", "NCHW"),
            preferred_element_type=jnp.float32)
        yc = yc + blk["b"][None, :, None, None]              # bias kept here (it cancels)
        mean = jnp.mean(yc, axis=(0, 2, 3), keepdims=True)
        var = jnp.mean((yc - mean) ** 2, axis=(0, 2, 3), keepdims=True)
        yb = (yc - mean) * jax.lax.rsqrt(var + BN_EPS)
        yb = yb * blk["gamma"][None, :, None, None] + blk["beta"][None, :, None, None]
        yr = jnp.maximum(yb, 0.0)
        if blk["pool"]:
            yr = jax.lax.reduce_window(yr, -jnp.inf, jax.lax.max,
                                       (1, 1, 2, 2), (1, 1, 2, 2), "VALID")
        y = yr
    return y


# ----------------------------------------------------------------------------- main

if __name__ == "__main__":
    depth = 4
    key = jax.random.PRNGKey(0)
    kx, kp = jax.random.split(key)

    # Small input consistent with the module: NCHW, 3 input channels.
    x = jax.random.normal(kx, (2, 3, 24, 24), jnp.float32)
    params = init_params(kp, depth=depth)

    fwd = jax.jit(lambda inp: convnet_nopool_forward(inp, params))
    out = jax.block_until_ready(fwd(x))
    assert out.shape == (2, 64, 4, 4), out.shape

    ref = reference_forward(x, params)
    max_err = float(jnp.max(jnp.abs(out - ref)))
    assert jnp.allclose(out, ref, rtol=2e-2, atol=2e-2), f"max abs err = {max_err}"

    print("KERNEL_OK")
</pallas_src>

<mosaic_0001>
module attributes {stable_mosaic.version = 11 : i64} {
  func.func @kernel(%arg0: memref<4x242x27xbf16, #tpu.memory_space<vmem>>, %arg1: memref<27x64xbf16, #tpu.memory_space<vmem>>, %arg2: memref<1x64xf32, #tpu.memory_space<vmem>>, %arg3: memref<1x64xf32, #tpu.memory_space<vmem>>, %arg4: memref<242x64xbf16, #tpu.memory_space<vmem>>) attributes {dimension_semantics = [], scalar_prefetch = 0 : i64, scratch_operands = 0 : i64, tpu.core_type = #tpu.core_type<tc>} {
    %c0 = arith.constant 0 : index
    %c0_0 = arith.constant 0 : index
    %0 = vector.load %arg1[%c0, %c0_0] : memref<27x64xbf16, #tpu.memory_space<vmem>>, vector<27x64xbf16>
    %c0_1 = arith.constant 0 : index
    %c0_2 = arith.constant 0 : index
    %c0_3 = arith.constant 0 : index
    %1 = vector.load %arg0[%c0_1, %c0_2, %c0_3] : memref<4x242x27xbf16, #tpu.memory_space<vmem>>, vector<1x242x27xbf16>
    %2 = vector.shape_cast %1 : vector<1x242x27xbf16> to vector<242x27xbf16>
    %cst = arith.constant dense<0.000000e+00> : vector<242x64xf32>
    %3 = tpu.matmul %2, %0, %cst {dimension_numbers = #tpu.dot_dimension_numbers<[1], [0], [0], [1], [0, 0, 1, 1], [], []>} : vector<242x27xbf16>, vector<27x64xbf16>, vector<242x64xf32> -> vector<242x64xf32>
    %c1 = arith.constant 1 : index
    %c0_4 = arith.constant 0 : index
    %c0_5 = arith.constant 0 : index
    %4 = vector.load %arg0[%c1, %c0_4, %c0_5] : memref<4x242x27xbf16, #tpu.memory_space<vmem>>, vector<1x242x27xbf16>
    %5 = vector.shape_cast %4 : vector<1x242x27xbf16> to vector<242x27xbf16>
    %cst_6 = arith.constant dense<0.000000e+00> : vector<242x64xf32>
    %6 = tpu.matmul %5, %0, %cst_6 {dimension_numbers = #tpu.dot_dimension_numbers<[1], [0], [0], [1], [0, 0, 1, 1], [], []>} : vector<242x27xbf16>, vector<27x64xbf16>, vector<242x64xf32> -> vector<242x64xf32>
    %c2 = arith.constant 2 : index
    %c0_7 = arith.constant 0 : index
    %c0_8 = arith.constant 0 : index
    %7 = vector.load %arg0[%c2, %c0_7, %c0_8] : memref<4x242x27xbf16, #tpu.memory_space<vmem>>, vector<1x242x27xbf16>
    %8 = vector.shape_cast %7 : vector<1x242x27xbf16> to vector<242x27xbf16>
    %cst_9 = arith.constant dense<0.000000e+00> : vector<242x64xf32>
    %9 = tpu.matmul %8, %0, %cst_9 {dimension_numbers = #tpu.dot_dimension_numbers<[1], [0], [0], [1], [0, 0, 1, 1], [], []>} : vector<242x27xbf16>, vector<27x64xbf16>, vector<242x64xf32> -> vector<242x64xf32>
    %c3 = arith.constant 3 : index
    %c0_10 = arith.constant 0 : index
    %c0_11 = arith.constant 0 : index
    %10 = vector.load %arg0[%c3, %c0_10, %c0_11] : memref<4x242x27xbf16, #tpu.memory_space<vmem>>, vector<1x242x27xbf16>
    %11 = vector.shape_cast %10 : vector<1x242x27xbf16> to vector<242x27xbf16>
    %cst_12 = arith.constant dense<0.000000e+00> : vector<242x64xf32>
    %12 = tpu.matmul %11, %0, %cst_12 {dimension_numbers = #tpu.dot_dimension_numbers<[1], [0], [0], [1], [0, 0, 1, 1], [], []>} : vector<242x27xbf16>, vector<27x64xbf16>, vector<242x64xf32> -> vector<242x64xf32>
    %13 = arith.addf %3, %6 : vector<242x64xf32>
    %14 = arith.addf %13, %9 : vector<242x64xf32>
    %15 = arith.addf %14, %12 : vector<242x64xf32>
    %cst_13 = arith.constant dense<0.000000e+00> : vector<64xf32>
    %16 = vector.multi_reduction <add>, %15, %cst_13 [0] : vector<242x64xf32> to vector<64xf32>
    %17 = vector.shape_cast %16 : vector<64xf32> to vector<1x64xf32>
    %18 = arith.mulf %3, %3 : vector<242x64xf32>
    %cst_14 = arith.constant dense<0.000000e+00> : vector<64xf32>
    %19 = vector.multi_reduction <add>, %18, %cst_14 [0] : vector<242x64xf32> to vector<64xf32>
    %20 = vector.shape_cast %19 : vector<64xf32> to vector<1x64xf32>
    %21 = arith.mulf %6, %6 : vector<242x64xf32>
    %cst_15 = arith.constant dense<0.000000e+00> : vector<64xf32>
    %22 = vector.multi_reduction <add>, %21, %cst_15 [0] : vector<242x64xf32> to vector<64xf32>
    %23 = vector.shape_cast %22 : vector<64xf32> to vector<1x64xf32>
    %24 = arith.addf %20, %23 : vector<1x64xf32>
    %25 = arith.mulf %9, %9 : vector<242x64xf32>
    %cst_16 = arith.constant dense<0.000000e+00> : vector<64xf32>
    %26 = vector.multi_reduction <add>, %25, %cst_16 [0] : vector<242x64xf32> to vector<64xf32>
    %27 = vector.shape_cast %26 : vector<64xf32> to vector<1x64xf32>
    %28 = arith.addf %24, %27 : vector<1x64xf32>
    %29 = arith.mulf %12, %12 : vector<242x64xf32>
    %cst_17 = arith.constant dense<0.000000e+00> : vector<64xf32>
    %30 = vector.multi_reduction <add>, %29, %cst_17 [0] : vector<242x64xf32> to vector<64xf32>
    %31 = vector.shape_cast %30 : vector<64xf32> to vector<1x64xf32>
    %32 = arith.addf %28, %31 : vector<1x64xf32>
    %cst_18 = arith.constant 0.00103305781 : f32
    %33 = vector.broadcast %cst_18 : f32 to vector<1x64xf32>
    %34 = arith.mulf %17, %33 : vector<1x64xf32>
    %cst_19 = arith.constant 0.00103305781 : f32
    %35 = vector.broadcast %cst_19 : f32 to vector<1x64xf32>
    %36 = arith.mulf %32, %35 : vector<1x64xf32>
    %37 = arith.mulf %34, %34 : vector<1x64xf32>
    %38 = arith.subf %36, %37 : vector<1x64xf32>
    %c0_20 = arith.constant 0 : index
    %c0_21 = arith.constant 0 : index
    %39 = vector.load %arg2[%c0_20, %c0_21] : memref<1x64xf32, #tpu.memory_space<vmem>>, vector<1x64xf32>
    %cst_22 = arith.constant 9.99999974E-6 : f32
    %40 = vector.broadcast %cst_22 : f32 to vector<1x64xf32>
    %41 = arith.addf %38, %40 : vector<1x64xf32>
    %42 = math.rsqrt %41 : vector<1x64xf32>
    %43 = arith.mulf %39, %42 : vector<1x64xf32>
    %c0_23 = arith.constant 0 : index
    %c0_24 = arith.constant 0 : index
    %44 = vector.load %arg3[%c0_23, %c0_24] : memref<1x64xf32, #tpu.memory_space<vmem>>, vector<1x64xf32>
    %45 = arith.mulf %34, %43 : vector<1x64xf32>
    %46 = arith.subf %44, %45 : vector<1x64xf32>
    %47 = vector.broadcast %43 : vector<1x64xf32> to vector<242x64xf32>
    %48 = arith.mulf %3, %47 : vector<242x64xf32>
    %49 = vector.broadcast %46 : vector<1x64xf32> to vector<242x64xf32>
    %50 = arith.addf %48, %49 : vector<242x64xf32>
    %51 = vector.broadcast %43 : vector<1x64xf32> to vector<242x64xf32>
    %52 = arith.mulf %6, %51 : vector<242x64xf32>
    %53 = vector.broadcast %46 : vector<1x64xf32> to vector<242x64xf32>
    %54 = arith.addf %52, %53 : vector<242x64xf32>
    %55 = arith.maximumf %50, %54 : vector<242x64xf32>
    %56 = vector.broadcast %43 : vector<1x64xf32> to vector<242x64xf32>
    %57 = arith.mulf %9, %56 : vector<242x64xf32>
    %58 = vector.broadcast %46 : vector<1x64xf32> to vector<242x64xf32>
    %59 = arith.addf %57, %58 : vector<242x64xf32>
    %60 = vector.broadcast %43 : vector<1x64xf32> to vector<242x64xf32>
    %61 = arith.mulf %12, %60 : vector<242x64xf32>
    %62 = vector.broadcast %46 : vector<1x64xf32> to vector<242x64xf32>
    %63 = arith.addf %61, %62 : vector<242x64xf32>
    %64 = arith.maximumf %59, %63 : vector<242x64xf32>
    %65 = arith.maximumf %55, %64 : vector<242x64xf32>
    %cst_25 = arith.constant 0.000000e+00 : f32
    %66 = vector.broadcast %cst_25 : f32 to vector<242x64xf32>
    %67 = arith.maximumf %65, %66 : vector<242x64xf32>
    %68 = arith.truncf %67 : vector<242x64xf32> to vector<242x64xbf16>
    %c0_26 = arith.constant 0 : index
    %c0_27 = arith.constant 0 : index
    %69 = vector.load %arg4[%c0_26, %c0_27] : memref<242x64xbf16, #tpu.memory_space<vmem>>, vector<242x64xbf16>
    tpu.vector_store %arg4[%c0_26, %c0_27], %68 {strides = array<i32>} : memref<242x64xbf16, #tpu.memory_space<vmem>>, vector<242x64xbf16>,
    return
  }
}

module attributes {stable_mosaic.version = 11 : i64} {
  func.func @kernel(%arg0: memref<4x32x576xbf16, #tpu.memory_space<vmem>>, %arg1: memref<34x576xbf16, #tpu.memory_space<vmem>>, %arg2: memref<576x64xbf16, #tpu.memory_space<vmem>>, %arg3: memref<1x64xf32, #tpu.memory_space<vmem>>, %arg4: memref<1x64xf32, #tpu.memory_space<vmem>>, %arg5: memref<32x64xbf16, #tpu.memory_space<vmem>>) attributes {dimension_semantics = [], scalar_prefetch = 0 : i64, scratch_operands = 0 : i64, tpu.core_type = #tpu.core_type<tc>} {
    %c0 = arith.constant 0 : index
    %c0_0 = arith.constant 0 : index
    %0 = vector.load %arg2[%c0, %c0_0] : memref<576x64xbf16, #tpu.memory_space<vmem>>, vector<576x64xbf16>
    %c0_1 = arith.constant 0 : index
    %c0_2 = arith.constant 0 : index
    %c0_3 = arith.constant 0 : index
    %1 = vector.load %arg0[%c0_1, %c0_2, %c0_3] : memref<4x32x576xbf16, #tpu.memory_space<vmem>>, vector<1x32x576xbf16>
    %2 = vector.shape_cast %1 : vector<1x32x576xbf16> to vector<32x576xbf16>
    %cst = arith.constant dense<0.000000e+00> : vector<32x64xf32>
    %3 = tpu.matmul %2, %0, %cst {dimension_numbers = #tpu.dot_dimension_numbers<[1], [0], [0], [1], [0, 0, 1, 1], [], []>} : vector<32x576xbf16>, vector<576x64xbf16>, vector<32x64xf32> -> vector<32x64xf32>
    %c1 = arith.constant 1 : index
    %c0_4 = arith.constant 0 : index
    %c0_5 = arith.constant 0 : index
    %4 = vector.load %arg0[%c1, %c0_4, %c0_5] : memref<4x32x576xbf16, #tpu.memory_space<vmem>>, vector<1x32x576xbf16>
    %5 = vector.shape_cast %4 : vector<1x32x576xbf16> to vector<32x576xbf16>
    %cst_6 = arith.constant dense<0.000000e+00> : vector<32x64xf32>
    %6 = tpu.matmul %5, %0, %cst_6 {dimension_numbers = #tpu.dot_dimension_numbers<[1], [0], [0], [1], [0, 0, 1, 1], [], []>} : vector<32x576xbf16>, vector<576x64xbf16>, vector<32x64xf32> -> vector<32x64xf32>
    %c2 = arith.constant 2 : index
    %c0_7 = arith.constant 0 : index
    %c0_8 = arith.constant 0 : index
    %7 = vector.load %arg0[%c2, %c0_7, %c0_8] : memref<4x32x576xbf16, #tpu.memory_space<vmem>>, vector<1x32x576xbf16>
    %8 = vector.shape_cast %7 : vector<1x32x576xbf16> to vector<32x576xbf16>
    %cst_9 = arith.constant dense<0.000000e+00> : vector<32x64xf32>
    %9 = tpu.matmul %8, %0, %cst_9 {dimension_numbers = #tpu.dot_dimension_numbers<[1], [0], [0], [1], [0, 0, 1, 1], [], []>} : vector<32x576xbf16>, vector<576x64xbf16>, vector<32x64xf32> -> vector<32x64xf32>
    %c3 = arith.constant 3 : index
    %c0_10 = arith.constant 0 : index
    %c0_11 = arith.constant 0 : index
    %10 = vector.load %arg0[%c3, %c0_10, %c0_11] : memref<4x32x576xbf16, #tpu.memory_space<vmem>>, vector<1x32x576xbf16>
    %11 = vector.shape_cast %10 : vector<1x32x576xbf16> to vector<32x576xbf16>
    %cst_12 = arith.constant dense<0.000000e+00> : vector<32x64xf32>
    %12 = tpu.matmul %11, %0, %cst_12 {dimension_numbers = #tpu.dot_dimension_numbers<[1], [0], [0], [1], [0, 0, 1, 1], [], []>} : vector<32x576xbf16>, vector<576x64xbf16>, vector<32x64xf32> -> vector<32x64xf32>
    %13 = arith.addf %3, %6 : vector<32x64xf32>
    %14 = arith.addf %13, %9 : vector<32x64xf32>
    %15 = arith.addf %14, %12 : vector<32x64xf32>
    %cst_13 = arith.constant dense<0.000000e+00> : vector<64xf32>
    %16 = vector.multi_reduction <add>, %15, %cst_13 [0] : vector<32x64xf32> to vector<64xf32>
    %17 = vector.shape_cast %16 : vector<64xf32> to vector<1x64xf32>
    %18 = arith.mulf %3, %3 : vector<32x64xf32>
    %cst_14 = arith.constant dense<0.000000e+00> : vector<64xf32>
    %19 = vector.multi_reduction <add>, %18, %cst_14 [0] : vector<32x64xf32> to vector<64xf32>
    %20 = vector.shape_cast %19 : vector<64xf32> to vector<1x64xf32>
    %21 = arith.mulf %6, %6 : vector<32x64xf32>
    %cst_15 = arith.constant dense<0.000000e+00> : vector<64xf32>
    %22 = vector.multi_reduction <add>, %21, %cst_15 [0] : vector<32x64xf32> to vector<64xf32>
    %23 = vector.shape_cast %22 : vector<64xf32> to vector<1x64xf32>
    %24 = arith.addf %20, %23 : vector<1x64xf32>
    %25 = arith.mulf %9, %9 : vector<32x64xf32>
    %cst_16 = arith.constant dense<0.000000e+00> : vector<64xf32>
    %26 = vector.multi_reduction <add>, %25, %cst_16 [0] : vector<32x64xf32> to vector<64xf32>
    %27 = vector.shape_cast %26 : vector<64xf32> to vector<1x64xf32>
    %28 = arith.addf %24, %27 : vector<1x64xf32>
    %29 = arith.mulf %12, %12 : vector<32x64xf32>
    %cst_17 = arith.constant dense<0.000000e+00> : vector<64xf32>
    %30 = vector.multi_reduction <add>, %29, %cst_17 [0] : vector<32x64xf32> to vector<64xf32>
    %31 = vector.shape_cast %30 : vector<64xf32> to vector<1x64xf32>
    %32 = arith.addf %28, %31 : vector<1x64xf32>
    %c0_18 = arith.constant 0 : index
    %c0_19 = arith.constant 0 : index
    %33 = vector.load %arg1[%c0_18, %c0_19] : memref<34x576xbf16, #tpu.memory_space<vmem>>, vector<34x576xbf16>
    %cst_20 = arith.constant dense<0.000000e+00> : vector<34x64xf32>
    %34 = tpu.matmul %33, %0, %cst_20 {dimension_numbers = #tpu.dot_dimension_numbers<[1], [0], [0], [1], [0, 0, 1, 1], [], []>} : vector<34x576xbf16>, vector<576x64xbf16>, vector<34x64xf32> -> vector<34x64xf32>
    %cst_21 = arith.constant dense<0.000000e+00> : vector<64xf32>
    %35 = vector.multi_reduction <add>, %34, %cst_21 [0] : vector<34x64xf32> to vector<64xf32>
    %36 = vector.shape_cast %35 : vector<64xf32> to vector<1x64xf32>
    %37 = arith.addf %17, %36 : vector<1x64xf32>
    %38 = arith.mulf %34, %34 : vector<34x64xf32>
    %cst_22 = arith.constant dense<0.000000e+00> : vector<64xf32>
    %39 = vector.multi_reduction <add>, %38, %cst_22 [0] : vector<34x64xf32> to vector<64xf32>
    %40 = vector.shape_cast %39 : vector<64xf32> to vector<1x64xf32>
    %41 = arith.addf %32, %40 : vector<1x64xf32>
    %cst_23 = arith.constant 0.00617283955 : f32
    %42 = vector.broadcast %cst_23 : f32 to vector<1x64xf32>
    %43 = arith.mulf %37, %42 : vector<1x64xf32>
    %cst_24 = arith.constant 0.00617283955 : f32
    %44 = vector.broadcast %cst_24 : f32 to vector<1x64xf32>
    %45 = arith.mulf %41, %44 : vector<1x64xf32>
    %46 = arith.mulf %43, %43 : vector<1x64xf32>
    %47 = arith.subf %45, %46 : vector<1x64xf32>
    %c0_25 = arith.constant 0 : index
    %c0_26 = arith.constant 0 : index
    %48 = vector.load %arg3[%c0_25, %c0_26] : memref<1x64xf32, #tpu.memory_space<vmem>>, vector<1x64xf32>
    %cst_27 = arith.constant 9.99999974E-6 : f32
    %49 = vector.broadcast %cst_27 : f32 to vector<1x64xf32>
    %50 = arith.addf %47, %49 : vector<1x64xf32>
    %51 = math.rsqrt %50 : vector<1x64xf32>
    %52 = arith.mulf %48, %51 : vector<1x64xf32>
    %c0_28 = arith.constant 0 : index
    %c0_29 = arith.constant 0 : index
    %53 = vector.load %arg4[%c0_28, %c0_29] : memref<1x64xf32, #tpu.memory_space<vmem>>, vector<1x64xf32>
    %54 = arith.mulf %43, %52 : vector<1x64xf32>
    %55 = arith.subf %53, %54 : vector<1x64xf32>
    %56 = vector.broadcast %52 : vector<1x64xf32> to vector<32x64xf32>
    %57 = arith.mulf %3, %56 : vector<32x64xf32>
    %58 = vector.broadcast %55 : vector<1x64xf32> to vector<32x64xf32>
    %59 = arith.addf %57, %58 : vector<32x64xf32>
    %60 = vector.broadcast %52 : vector<1x64xf32> to vector<32x64xf32>
    %61 = arith.mulf %6, %60 : vector<32x64xf32>
    %62 = vector.broadcast %55 : vector<1x64xf32> to vector<32x64xf32>
    %63 = arith.addf %61, %62 : vector<32x64xf32>
    %64 = arith.maximumf %59, %63 : vector<32x64xf32>
    %65 = vector.broadcast %52 : vector<1x64xf32> to vector<32x64xf32>
    %66 = arith.mulf %9, %65 : vector<32x64xf32>
    %67 = vector.broadcast %55 : vector<1x64xf32> to vector<32x64xf32>
    %68 = arith.addf %66, %67 : vector<32x64xf32>
    %69 = vector.broadcast %52 : vector<1x64xf32> to vector<32x64xf32>
    %70 = arith.mulf %12, %69 : vector<32x64xf32>
    %71 = vector.broadcast %55 : vector<1x64xf32> to vector<32x64xf32>
    %72 = arith.addf %70, %71 : vector<32x64xf32>
    %73 = arith.maximumf %68, %72 : vector<32x64xf32>
    %74 = arith.maximumf %64, %73 : vector<32x64xf32>
    %cst_30 = arith.constant 0.000000e+00 : f32
    %75 = vector.broadcast %cst_30 : f32 to vector<32x64xf32>
    %76 = arith.maximumf %74, %75 : vector<32x64xf32>
    %77 = arith.truncf %76 : vector<32x64xf32> to vector<32x64xbf16>
    %c0_31 = arith.constant 0 : index
    %c0_32 = arith.constant 0 : index
    %78 = vector.load %arg5[%c0_31, %c0_32] : memref<32x64xbf16, #tpu.memory_space<vmem>>, vector<32x64xbf16>
    tpu.vector_store %arg5[%c0_31, %c0_32], %77 {strides = array<i32>} : memref<32x64xbf16, #tpu.memory_space<vmem>>, vector<32x64xbf16>,
    return
  }
}

module attributes {stable_mosaic.version = 11 : i64} {
  func.func @kernel(%arg0: memref<32x576xbf16, #tpu.memory_space<vmem>>, %arg1: memref<576x64xbf16, #tpu.memory_space<vmem>>, %arg2: memref<1x64xf32, #tpu.memory_space<vmem>>, %arg3: memref<1x64xf32, #tpu.memory_space<vmem>>, %arg4: memref<32x64xf32, #tpu.memory_space<vmem>>) attributes {dimension_semantics = [], scalar_prefetch = 0 : i64, scratch_operands = 0 : i64, tpu.core_type = #tpu.core_type<tc>} {
    %c0 = arith.constant 0 : index
    %c0_0 = arith.constant 0 : index
    %0 = vector.load %arg0[%c0, %c0_0] : memref<32x576xbf16, #tpu.memory_space<vmem>>, vector<32x576xbf16>
    %c0_1 = arith.constant 0 : index
    %c0_2 = arith.constant 0 : index
    %1 = vector.load %arg1[%c0_1, %c0_2] : memref<576x64xbf16, #tpu.memory_space<vmem>>, vector<576x64xbf16>
    %cst = arith.constant dense<0.000000e+00> : vector<32x64xf32>
    %2 = tpu.matmul %0, %1, %cst {dimension_numbers = #tpu.dot_dimension_numbers<[1], [0], [0], [1], [0, 0, 1, 1], [], []>} : vector<32x576xbf16>, vector<576x64xbf16>, vector<32x64xf32> -> vector<32x64xf32>
    %cst_3 = arith.constant dense<0.000000e+00> : vector<64xf32>
    %3 = vector.multi_reduction <add>, %2, %cst_3 [0] : vector<32x64xf32> to vector<64xf32>
    %4 = vector.shape_cast %3 : vector<64xf32> to vector<1x64xf32>
    %5 = arith.mulf %2, %2 : vector<32x64xf32>
    %cst_4 = arith.constant dense<0.000000e+00> : vector<64xf32>
    %6 = vector.multi_reduction <add>, %5, %cst_4 [0] : vector<32x64xf32> to vector<64xf32>
    %7 = vector.shape_cast %6 : vector<64xf32> to vector<1x64xf32>
    %cst_5 = arith.constant 3.125000e-02 : f32
    %8 = vector.broadcast %cst_5 : f32 to vector<1x64xf32>
    %9 = arith.mulf %4, %8 : vector<1x64xf32>
    %cst_6 = arith.constant 3.125000e-02 : f32
    %10 = vector.broadcast %cst_6 : f32 to vector<1x64xf32>
    %11 = arith.mulf %7, %10 : vector<1x64xf32>
    %12 = arith.mulf %9, %9 : vector<1x64xf32>
    %13 = arith.subf %11, %12 : vector<1x64xf32>
    %c0_7 = arith.constant 0 : index
    %c0_8 = arith.constant 0 : index
    %14 = vector.load %arg2[%c0_7, %c0_8] : memref<1x64xf32, #tpu.memory_space<vmem>>, vector<1x64xf32>
    %cst_9 = arith.constant 9.99999974E-6 : f32
    %15 = vector.broadcast %cst_9 : f32 to vector<1x64xf32>
    %16 = arith.addf %13, %15 : vector<1x64xf32>
    %17 = math.rsqrt %16 : vector<1x64xf32>
    %18 = arith.mulf %14, %17 : vector<1x64xf32>
    %c0_10 = arith.constant 0 : index
    %c0_11 = arith.constant 0 : index
    %19 = vector.load %arg3[%c0_10, %c0_11] : memref<1x64xf32, #tpu.memory_space<vmem>>, vector<1x64xf32>
    %20 = arith.mulf %9, %18 : vector<1x64xf32>
    %21 = arith.subf %19, %20 : vector<1x64xf32>
    %22 = vector.broadcast %18 : vector<1x64xf32> to vector<32x64xf32>
    %23 = arith.mulf %2, %22 : vector<32x64xf32>
    %24 = vector.broadcast %21 : vector<1x64xf32> to vector<32x64xf32>
    %25 = arith.addf %23, %24 : vector<32x64xf32>
    %cst_12 = arith.constant 0.000000e+00 : f32
    %26 = vector.broadcast %cst_12 : f32 to vector<32x64xf32>
    %27 = arith.maximumf %25, %26 : vector<32x64xf32>
    %c0_13 = arith.constant 0 : index
    %c0_14 = arith.constant 0 : index
    %28 = vector.load %arg4[%c0_13, %c0_14] : memref<32x64xf32, #tpu.memory_space<vmem>>, vector<32x64xf32>
    tpu.vector_store %arg4[%c0_13, %c0_14], %27 {strides = array<i32>} : memref<32x64xf32, #tpu.memory_space<vmem>>, vector<32x64xf32>,
    return
  }
}

module attributes {stable_mosaic.version = 11 : i64} {
  func.func @kernel(%arg0: memref<32x576xbf16, #tpu.memory_space<vmem>>, %arg1: memref<576x64xbf16, #tpu.memory_space<vmem>>, %arg2: memref<1x64xf32, #tpu.memory_space<vmem>>, %arg3: memref<1x64xf32, #tpu.memory_space<vmem>>, %arg4: memref<32x64xbf16, #tpu.memory_space<vmem>>) attributes {dimension_semantics = [], scalar_prefetch = 0 : i64, scratch_operands = 0 : i64, tpu.core_type = #tpu.core_type<tc>} {
    %c0 = arith.constant 0 : index
    %c0_0 = arith.constant 0 : index
    %0 = vector.load %arg0[%c0, %c0_0] : memref<32x576xbf16, #tpu.memory_space<vmem>>, vector<32x576xbf16>
    %c0_1 = arith.constant 0 : index
    %c0_2 = arith.constant 0 : index
    %1 = vector.load %arg1[%c0_1, %c0_2] : memref<576x64xbf16, #tpu.memory_space<vmem>>, vector<576x64xbf16>
    %cst = arith.constant dense<0.000000e+00> : vector<32x64xf32>
    %2 = tpu.matmul %0, %1, %cst {dimension_numbers = #tpu.dot_dimension_numbers<[1], [0], [0], [1], [0, 0, 1, 1], [], []>} : vector<32x576xbf16>, vector<576x64xbf16>, vector<32x64xf32> -> vector<32x64xf32>
    %cst_3 = arith.constant dense<0.000000e+00> : vector<64xf32>
    %3 = vector.multi_reduction <add>, %2, %cst_3 [0] : vector<32x64xf32> to vector<64xf32>
    %4 = vector.shape_cast %3 : vector<64xf32> to vector<1x64xf32>
    %5 = arith.mulf %2, %2 : vector<32x64xf32>
    %cst_4 = arith.constant dense<0.000000e+00> : vector<64xf32>
    %6 = vector.multi_reduction <add>, %5, %cst_4 [0] : vector<32x64xf32> to vector<64xf32>
    %7 = vector.shape_cast %6 : vector<64xf32> to vector<1x64xf32>
    %cst_5 = arith.constant 3.125000e-02 : f32
    %8 = vector.broadcast %cst_5 : f32 to vector<1x64xf32>
    %9 = arith.mulf %4, %8 : vector<1x64xf32>
    %cst_6 = arith.constant 3.125000e-02 : f32
    %10 = vector.broadcast %cst_6 : f32 to vector<1x64xf32>
    %11 = arith.mulf %7, %10 : vector<1x64xf32>
    %12 = arith.mulf %9, %9 : vector<1x64xf32>
    %13 = arith.subf %11, %12 : vector<1x64xf32>
    %c0_7 = arith.constant 0 : index
    %c0_8 = arith.constant 0 : index
    %14 = vector.load %arg2[%c0_7, %c0_8] : memref<1x64xf32, #tpu.memory_space<vmem>>, vector<1x64xf32>
    %cst_9 = arith.constant 9.99999974E-6 : f32
    %15 = vector.broadcast %cst_9 : f32 to vector<1x64xf32>
    %16 = arith.addf %13, %15 : vector<1x64xf32>
    %17 = math.rsqrt %16 : vector<1x64xf32>
    %18 = arith.mulf %14, %17 : vector<1x64xf32>
    %c0_10 = arith.constant 0 : index
    %c0_11 = arith.constant 0 : index
    %19 = vector.load %arg3[%c0_10, %c0_11] : memref<1x64xf32, #tpu.memory_space<vmem>>, vector<1x64xf32>
    %20 = arith.mulf %9, %18 : vector<1x64xf32>
    %21 = arith.subf %19, %20 : vector<1x64xf32>
    %22 = vector.broadcast %18 : vector<1x64xf32> to vector<32x64xf32>
    %23 = arith.mulf %2, %22 : vector<32x64xf32>
    %24 = vector.broadcast %21 : vector<1x64xf32> to vector<32x64xf32>
    %25 = arith.addf %23, %24 : vector<32x64xf32>
    %cst_12 = arith.constant 0.000000e+00 : f32
    %26 = vector.broadcast %cst_12 : f32 to vector<32x64xf32>
    %27 = arith.maximumf %25, %26 : vector<32x64xf32>
    %28 = arith.truncf %27 : vector<32x64xf32> to vector<32x64xbf16>
    %c0_13 = arith.constant 0 : index
    %c0_14 = arith.constant 0 : index
    %29 = vector.load %arg4[%c0_13, %c0_14] : memref<32x64xbf16, #tpu.memory_space<vmem>>, vector<32x64xbf16>
    tpu.vector_store %arg4[%c0_13, %c0_14], %28 {strides = array<i32>} : memref<32x64xbf16, #tpu.memory_space<vmem>>, vector<32x64xbf16>,
    return
  }
}

</mosaic_0001>

<bundles_post_ra>
// kernel: _lambda_.4
= control target key start
LH: loop header
LB: loop body
LE: loop exit
PB: predicated region body
PF: predicated region fallthrough
CT: control target
= control target key end

     0   :  { %vm191_vm0 = vcmask 1044480   ;;  %vm192_vm1 = vcmask 1045504   ;;  %vm142_vm2 = vcmask 220160   ;;  %v2996_v1 = vmov 65535   ;;  %s5219_s1 = inlined_call_operand.vmem [shape: bf16[27,64], index: 1, kind: input, shape index: {}]   ;;  %s5220_s0 = inlined_call_operand.vmem [shape: bf16[4,242,27], index: 0, kind: input, shape index: {}]   ;;  %s5221_s2 = inlined_call_operand.vmem [shape: f32[1,64], index: 2, kind: input, shape index: {}]   ;;  %s5222_s3 = inlined_call_operand.vmem [shape: f32[1,64], index: 3, kind: input, shape index: {}]   ;;  %s5223_s4 = inlined_call_operand.vmem [shape: bf16[242,64], index: 4, kind: output, shape index: {}]  }
   0x1   :  { %v2928_v0 = vld [vmem:[%s5219_s1] sm:$0xff]   ;;  %v193_v2 = vsel %vm191_vm0, 4294967295, %v2996_v1  ;;  %v2929_v3 = vld [vmem:[%s5219_s1 + $0x8] sm:$0x3f]   ;;  %v2934_v10 = vld [vmem:[%s5220_s0 + $0x10] sm:$0xff]   ;;  %vm1405_vm3 = vcmask 523264  }
   0x2   :  { %2783 = vmatprep.subr.bf16.mxu0 %v2928_v0  ;;  %2819 = vmatprep.subr.bf16.mxu1 %v2928_v0  ;;  %v194_v4 = vsel %vm192_vm1, %v193_v2, 0  ;;  %v2930_v5 = vld [vmem:[%s5220_s0] sm:$0xff]   ;;  %v2932_v8 = vld [vmem:[%s5220_s0 + $0x8] sm:$0xff]   ;;  %v2936_v12 = vld [vmem:[%s5220_s0 + $0x18] sm:$0xff]   ;;  %vm1465_vm4 = vcmask 517120   ;;  %vm2389_vm5 = vcmask 519168  }
   0x3   :  { %2784 = vmatpush3.bf16.msra.mxu0 %v2928_v0  ;;  %2820 = vmatpush3.bf16.msra.mxu1 %v2928_v0  ;;  %v196_v6 = vand.u32 %v2929_v3, %v194_v4  ;;  %v2931_v7 = vld [vmem:[%s5220_s0 + $0x7c] sm:$0xff]   ;;  %v2933_v9 = vld [vmem:[%s5220_s0 + $0x84] sm:$0xff]   ;;  %v2935_v11 = vld [vmem:[%s5220_s0 + $0x8c] sm:$0xff]   ;;  %vm2420_vm6 = vcmask 516096  }
   0x4   :  { %2787 = vmatprep.mubr.msk.bf16.mxu0 %vm142_vm2, %v2930_v5  ;;  %2823 = vmatprep.mubr.msk.bf16.mxu1 %vm142_vm2, %v2931_v7  ;;  %v2937_v13 = vld [vmem:[%s5220_s0 + $0x94] sm:$0xff]   ;;  %v2938_v14 = vld [vmem:[%s5220_s0 + $0x20] sm:$0xff]   ;;  %v2940_v16 = vld [vmem:[%s5220_s0 + $0x28] sm:$0xff]  }
   0x5   :  { %2785 = vmatprep.subr.bf16.mxu0 %v196_v6  ;;  %2821 = vmatprep.subr.bf16.mxu1 %v196_v6  ;;  %v2939_v15 = vld [vmem:[%s5220_s0 + $0x9c] sm:$0xff]   ;;  %v2941_v17 = vld [vmem:[%s5220_s0 + $0xa4] sm:$0xff]   ;;  %v2942_v18 = vld [vmem:[%s5220_s0 + $0x30] sm:$0xff]  }
   0x6   :  { %v2943_v19 = vld [vmem:[%s5220_s0 + $0xac] sm:$0xff]   ;;  %v2944_v20 = vld [vmem:[%s5220_s0 + $0x38] sm:$0xff]   ;;  %v2946_v22 = vld [vmem:[%s5220_s0 + $0x40] sm:$0xff]  }
   0x7   :  { %2786 = vmatpush3.bf16.msra.mxu0 %v196_v6  ;;  %2822 = vmatpush3.bf16.msra.mxu1 %v196_v6  ;;  %v2945_v21 = vld [vmem:[%s5220_s0 + $0xb4] sm:$0xff]   ;;  %v2947_v23 = vld [vmem:[%s5220_s0 + $0xbc] sm:$0xff]   ;;  %v2948_v24 = vld [vmem:[%s5220_s0 + $0x48] sm:$0xff]  }
   0x8   :  { %2855 = vmatprep.subr.bf16.mxu0 %v2928_v0  ;;  %2891 = vmatprep.subr.bf16.mxu1 %v2928_v0  ;;  %v2949_v25 = vld [vmem:[%s5220_s0 + $0xc4] sm:$0xff]   ;;  %v2950_v26 = vld [vmem:[%s5220_s0 + $0x50] sm:$0xff]   ;;  %v2952_v28 = vld [vmem:[%s5220_s0 + $0x58] sm:$0xff]  }
   0x9   :  { %v2951_v27 = vld [vmem:[%s5220_s0 + $0xcc] sm:$0xff]   ;;  %v2953_v29 = vld [vmem:[%s5220_s0 + $0xd4] sm:$0xff]   ;;  %v2954_v30 = vld [vmem:[%s5220_s0 + $0x60] sm:$0xff]  }
   0xa   :  { %2788 = vmatmul.mubr.msk.bf16.vlgmr.msra.gmra.mrb[0].mxu0 %vm142_vm2, %v2932_v8  ;;  %2824 = vmatmul.mubr.msk.bf16.vlgmr.msra.gmra.mrb[0].mxu1 %vm142_vm2, %v2933_v9  ;;  %v2955_v31 = vld [vmem:[%s5220_s0 + $0xdc] sm:$0xff]   ;;  %v2956_v32 = vld [vmem:[%s5220_s0 + $0x68] sm:$0xff]   ;;  %v2958_v34 = vld [vmem:[%s5220_s0 + $0x70] sm:$0xff]  }
   0xb   :  { %2856 = vmatpush3.bf16.msra.mxu0 %v2928_v0  ;;  %2892 = vmatpush3.bf16.msra.mxu1 %v2928_v0  ;;  %v2957_v33 = vld [vmem:[%s5220_s0 + $0xe4] sm:$0xff]   ;;  %v2959_v35 = vld [vmem:[%s5220_s0 + $0xec] sm:$0xff]   ;;  %v2960_v36 = vld [vmem:[%s5220_s0 + $0x78] ss:$0 sps:$4 sm:$0x11]  }
   0xc   :  { %2791 = vmatprep.mubr.msk.bf16.mxu0 %vm142_vm2, %v2934_v10  ;;  %2827 = vmatprep.mubr.msk.bf16.mxu1 %vm142_vm2, %v2935_v11  ;;  %v2961_v37 = vld [vmem:[%s5220_s0 + $0xf4] ss:$0 sps:$4 sm:$0x11]   ;;  %v2962_v38 = vld [vmem:[%s5220_s0 + $0xf8] sm:$0xff]   ;;  %v2964_v40 = vld [vmem:[%s5220_s0 + $0x100] sm:$0xff]  }
   0xd   :  { %2857 = vmatprep.subr.bf16.mxu0 %v196_v6  ;;  %2893 = vmatprep.subr.bf16.mxu1 %v196_v6  ;;  %v2963_v39 = vld [vmem:[%s5220_s0 + $0x174] sm:$0xff]   ;;  %v2965_v41 = vld [vmem:[%s5220_s0 + $0x17c] sm:$0xff]   ;;  %v2966_v42 = vld [vmem:[%s5220_s0 + $0x108] sm:$0xff]  }
   0xe   :  { %v2967_v43 = vld [vmem:[%s5220_s0 + $0x184] sm:$0xff]   ;;  %v2968_v44 = vld [vmem:[%s5220_s0 + $0x110] sm:$0xff]   ;;  %v2970_v46 = vld [vmem:[%s5220_s0 + $0x118] sm:$0xff]  }
   0xf   :  { %2858 = vmatpush3.bf16.msra.mxu0 %v196_v6  ;;  %2894 = vmatpush3.bf16.msra.mxu1 %v196_v6  ;;  %v2969_v45 = vld [vmem:[%s5220_s0 + $0x18c] sm:$0xff]   ;;  %v2971_v47 = vld [vmem:[%s5220_s0 + $0x194] sm:$0xff]   ;;  %v2972_v48 = vld [vmem:[%s5220_s0 + $0x120] sm:$0xff]  }
  0x10   :  { %v2973_v49 = vld [vmem:[%s5220_s0 + $0x19c] sm:$0xff]   ;;  %v2974_v50 = vld [vmem:[%s5220_s0 + $0x128] sm:$0xff]   ;;  %v2976_v52 = vld [vmem:[%s5220_s0 + $0x130] sm:$0xff]  }
  0x11   :  { %v2975_v51 = vld [vmem:[%s5220_s0 + $0x1a4] sm:$0xff]   ;;  %v2977_v53 = vld [vmem:[%s5220_s0 + $0x1ac] sm:$0xff]   ;;  %v2978_v54 = vld [vmem:[%s5220_s0 + $0x138] sm:$0xff]  }
  0x12   :  { %2792 = vmatmul.mubr.msk.bf16.gmra.mrb[4].mxu0 %vm142_vm2, %v2936_v12  ;;  %2828 = vmatmul.mubr.msk.bf16.gmra.mrb[4].mxu1 %vm142_vm2, %v2937_v13  ;;  %v2979_v55 = vld [vmem:[%s5220_s0 + $0x1b4] sm:$0xff]   ;;  %v2980_v56 = vld [vmem:[%s5220_s0 + $0x140] sm:$0xff]   ;;  %v2982_v58 = vld [vmem:[%s5220_s0 + $0x148] sm:$0xff]  }
  0x13   :  { %2795 = vmatprep.mubr.msk.bf16.mxu0 %vm142_vm2, %v2938_v14  ;;  %2831 = vmatprep.mubr.msk.bf16.mxu1 %vm142_vm2, %v2939_v15  ;;  %v2981_v57 = vld [vmem:[%s5220_s0 + $0x1bc] sm:$0xff]   ;;  %v2983_v59 = vld [vmem:[%s5220_s0 + $0x1c4] sm:$0xff]   ;;  %v2984_v60 = vld [vmem:[%s5220_s0 + $0x150] sm:$0xff]  }
  0x14   :  { %v2985_v61 = vld [vmem:[%s5220_s0 + $0x1cc] sm:$0xff]   ;;  %v2986_v62 = vld [vmem:[%s5220_s0 + $0x158] sm:$0xff]   ;;  %v2988_v0 = vld [vmem:[%s5220_s0 + $0x160] sm:$0xff]  }
  0x15   :  { %v2987_v63 = vld [vmem:[%s5220_s0 + $0x1d4] sm:$0xff]   ;;  %v2989_v1 = vld [vmem:[%s5220_s0 + $0x1dc] sm:$0xff]   ;;  %v2990_v2 = vld [vmem:[%s5220_s0 + $0x168] sm:$0xff]  }
  0x16   :  { %v2991_v3 = vld [vmem:[%s5220_s0 + $0x1e4] sm:$0xff]   ;;  %v2992_v4 = vld [vmem:[%s5220_s0 + $0x170] ss:$0 sps:$4 sm:$0x11]  }
  0x17   :  { %v2993_v5 = vld [vmem:[%s5220_s0 + $0x1ec] ss:$0 sps:$4 sm:$0x11]  }
  0x1a   :  { %2796 = vmatmul.mubr.msk.bf16.gmra.mrb[8].mxu0 %vm142_vm2, %v2940_v16  ;;  %2832 = vmatmul.mubr.msk.bf16.gmra.mrb[8].mxu1 %vm142_vm2, %v2941_v17 }
  0x1b   :  { %2799 = vmatprep.mubr.msk.bf16.mxu0 %vm142_vm2, %v2942_v18  ;;  %2835 = vmatprep.mubr.msk.bf16.mxu1 %vm142_vm2, %v2943_v19 }
  0x22   :  { %2800 = vmatmul.mubr.msk.bf16.gmra.mrb[12].mxu0 %vm142_vm2, %v2944_v20  ;;  %2836 = vmatmul.mubr.msk.bf16.gmra.mrb[12].mxu1 %vm142_vm2, %v2945_v21 }
  0x23   :  { %2803 = vmatprep.mubr.msk.bf16.mxu0 %vm142_vm2, %v2946_v22  ;;  %2839 = vmatprep.mubr.msk.bf16.mxu1 %vm142_vm2, %v2947_v23 }
  0x2a   :  { %2804 = vmatmul.mubr.msk.bf16.gmra.mrb[16].mxu0 %vm142_vm2, %v2948_v24  ;;  %2840 = vmatmul.mubr.msk.bf16.gmra.mrb[16].mxu1 %vm142_vm2, %v2949_v25 }
  0x2b   :  { %2807 = vmatprep.mubr.msk.bf16.mxu0 %vm142_vm2, %v2950_v26  ;;  %2843 = vmatprep.mubr.msk.bf16.mxu1 %vm142_vm2, %v2951_v27 }
  0x32   :  { %2808 = vmatmul.mubr.msk.bf16.gmra.mrb[20].mxu0 %vm142_vm2, %v2952_v28  ;;  %2844 = vmatmul.mubr.msk.bf16.gmra.mrb[20].mxu1 %vm142_vm2, %v2953_v29 }
  0x33   :  { %2811 = vmatprep.mubr.msk.bf16.mxu0 %vm142_vm2, %v2954_v30  ;;  %2847 = vmatprep.mubr.msk.bf16.mxu1 %vm142_vm2, %v2955_v31 }
  0x3a   :  { %2812 = vmatmul.mubr.msk.bf16.gmra.mrb[24].mxu0 %vm142_vm2, %v2956_v32  ;;  %2848 = vmatmul.mubr.msk.bf16.gmra.mrb[24].mxu1 %vm142_vm2, %v2957_v33 }
  0x3b   :  { %2815 = vmatprep.mubr.msk.bf16.mxu0 %vm142_vm2, %v2958_v34  ;;  %2851 = vmatprep.mubr.msk.bf16.mxu1 %vm142_vm2, %v2959_v35 }
  0x42   :  { %2816 = vmatmul.mubr.msk.bf16.gmra.mrb[28].mxu0 %vm142_vm2, %v2960_v36  ;;  %2852 = vmatmul.mubr.msk.bf16.gmra.mrb[28].mxu1 %vm142_vm2, %v2961_v37 }
  0x43   :  { %2859 = vmatprep.mubr.msk.bf16.mxu0 %vm142_vm2, %v2962_v38  ;;  %2895 = vmatprep.mubr.msk.bf16.mxu1 %vm142_vm2, %v2963_v39 }
  0x4a   :  { %2860 = vmatmul.mubr.msk.bf16.vlgmr.msra.gmra.mrb[32].mxu0 %vm142_vm2, %v2964_v40  ;;  %2896 = vmatmul.mubr.msk.bf16.vlgmr.msra.gmra.mrb[32].mxu1 %vm142_vm2, %v2965_v41 }
  0x4b   :  { %2863 = vmatprep.mubr.msk.bf16.mxu0 %vm142_vm2, %v2966_v42  ;;  %2899 = vmatprep.mubr.msk.bf16.mxu1 %vm142_vm2, %v2967_v43 }
  0x52   :  { %2864 = vmatmul.mubr.msk.bf16.gmra.mrb[36].mxu0 %vm142_vm2, %v2968_v44  ;;  %2900 = vmatmul.mubr.msk.bf16.gmra.mrb[36].mxu1 %vm142_vm2, %v2969_v45 }
  0x53   :  { %2867 = vmatprep.mubr.msk.bf16.mxu0 %vm142_vm2, %v2970_v46  ;;  %2903 = vmatprep.mubr.msk.bf16.mxu1 %vm142_vm2, %v2971_v47 }
  0x5a   :  { %2868 = vmatmul.mubr.msk.bf16.gmra.mrb[40].mxu0 %vm142_vm2, %v2972_v48  ;;  %2904 = vmatmul.mubr.msk.bf16.gmra.mrb[40].mxu1 %vm142_vm2, %v2973_v49 }
  0x5b   :  { %2871 = vmatprep.mubr.msk.bf16.mxu0 %vm142_vm2, %v2974_v50  ;;  %2907 = vmatprep.mubr.msk.bf16.mxu1 %vm142_vm2, %v2975_v51 }
  0x62   :  { %2872 = vmatmul.mubr.msk.bf16.gmra.mrb[44].mxu0 %vm142_vm2, %v2976_v52  ;;  %2908 = vmatmul.mubr.msk.bf16.gmra.mrb[44].mxu1 %vm142_vm2, %v2977_v53 }
  0x63   :  { %2875 = vmatprep.mubr.msk.bf16.mxu0 %vm142_vm2, %v2978_v54  ;;  %2911 = vmatprep.mubr.msk.bf16.mxu1 %vm142_vm2, %v2979_v55 }
  0x6a   :  { %2876 = vmatmul.mubr.msk.bf16.gmra.mrb[48].mxu0 %vm142_vm2, %v2980_v56  ;;  %2912 = vmatmul.mubr.msk.bf16.gmra.mrb[48].mxu1 %vm142_vm2, %v2981_v57 }
  0x6b   :  { %2879 = vmatprep.mubr.msk.bf16.mxu0 %vm142_vm2, %v2982_v58  ;;  %2915 = vmatprep.mubr.msk.bf16.mxu1 %vm142_vm2, %v2983_v59 }
  0x72   :  { %2880 = vmatmul.mubr.msk.bf16.gmra.mrb[52].mxu0 %vm142_vm2, %v2984_v60  ;;  %2916 = vmatmul.mubr.msk.bf16.gmra.mrb[52].mxu1 %vm142_vm2, %v2985_v61 }
  0x73   :  { %2883 = vmatprep.mubr.msk.bf16.mxu0 %vm142_vm2, %v2986_v62  ;;  %2919 = vmatprep.mubr.msk.bf16.mxu1 %vm142_vm2, %v2987_v63 }
  0x7a   :  { %2884 = vmatmul.mubr.msk.bf16.gmra.mrb[56].mxu0 %vm142_vm2, %v2988_v0  ;;  %2920 = vmatmul.mubr.msk.bf16.gmra.mrb[56].mxu1 %vm142_vm2, %v2989_v1 }
  0x7b   :  { %2887 = vmatprep.mubr.msk.bf16.mxu0 %vm142_vm2, %v2990_v2  ;;  %2923 = vmatprep.mubr.msk.bf16.mxu1 %vm142_vm2, %v2991_v3 }
  0x82   :  { %2888 = vmatmul.mubr.msk.bf16.gmra.mrb[60].mxu0 %vm142_vm2, %v2992_v4  ;;  %2924 = vmatmul.mubr.msk.bf16.gmra.mrb[60].mxu1 %vm142_vm2, %v2993_v5 }
  0xdd   :  { %v3284_v6 = vpop.f32.mrb[0].mxu0  ;;  %v3286_v7 = vpop.f32.mrb[0].mxu1 }
  0xde   :  { %5406 = vst [vmem:[#allocation2_spill] sm:$0xff] %v3286_v7  ;;  %v3290_v8 = vadd.f32 %v3286_v7, %v3284_v6  ;;  %v3292_v9 = vpop.f32.mrb[1].mxu0  ;;  %v3294_v10 = vpop.f32.mrb[1].mxu1  ;;  %v1476_v19 = vmul.f32 %v3284_v6, %v3284_v6  ;;  %v1574_v20 = vmul.f32 %v3286_v7, %v3286_v7 }
  0xdf   :  { %5407 = vst [vmem:[#allocation3_spill] sm:$0xff] %v3294_v10  ;;  %v1474_v11 = vmul.f32 %v3292_v9, %v3292_v9  ;;  %v3300_v12 = vadd.f32 %v3294_v10, %v3292_v9  ;;  %v1572_v13 = vmul.f32 %v3294_v10, %v3294_v10  ;;  %v3304_v14 = vpop.f32.mrb[2].mxu0  ;;  %v3306_v15 = vpop.f32.mrb[2].mxu1 }
  0xe0   :  { %5408 = vst [vmem:[#allocation4_spill] sm:$0xff] %v3306_v15  ;;  %v3310_v16 = vadd.f32 %v3306_v15, %v3304_v14  ;;  %v3312_v17 = vpop.f32.mrb[3].mxu0  ;;  %v3314_v18 = vpop.f32.mrb[3].mxu1  ;;  %v1477_v23 = vmul.f32 %v3304_v14, %v3304_v14  ;;  %v1575_v28 = vmul.f32 %v3306_v15, %v3306_v15  ;;  %v1508_v31 = vsel %vm1405_vm3, %v1476_v19, 0.0 }
  0xe1   :  { %5409 = vst [vmem:[#allocation5_spill] sm:$0xff] %v3314_v18  ;;  %v1475_v21 = vmul.f32 %v3312_v17, %v3312_v17  ;;  %v1603_v22 = vsel %vm1405_vm3, %v1572_v13, 0.0  ;;  %v3327_v24 = vadd.f32 %v3314_v18, %v3312_v17  ;;  %v1573_v25 = vmul.f32 %v3314_v18, %v3314_v18 }
  0xe2   :  { %v1505_v26 = vsel %vm1405_vm3, %v1474_v11, 0.0  ;;  %v1606_v35 = vsel %vm1405_vm3, %v1574_v20, 0.0  ;;  %v1510_v36 = vsel %vm1405_vm3, %v1477_v23, 0.0  ;;  %v1608_v47 = vsel %vm1405_vm3, %v1575_v28, 0.0 }
  0xe3   :  { %v1506_v27 = vsel %vm1405_vm3, %v1475_v21, 0.0  ;;  %v1604_v30 = vsel %vm1405_vm3, %v1573_v25, 0.0 }
  0xe4   :  { %v1507_v29 = vadd.f32 %v1506_v27, %v1505_v26  ;;  %v1605_v32 = vadd.f32 %v1604_v30, %v1603_v22 }
  0xe5   :  { %v3337_v33 = vpop.f32.mrb[4].mxu0  ;;  %v3339_v34 = vpop.f32.mrb[4].mxu1 }
  0xe6   :  { %5410 = vst [vmem:[#allocation6_spill] sm:$0xff] %v3337_v33  ;;  %5411 = vst [vmem:[#allocation7_spill] sm:$0xff] %v3339_v34  ;;  %v1509_v37 = vadd.f32 %v1508_v31, %v1507_v29  ;;  %v3345_v38 = vadd.f32 %v3339_v34, %v3337_v33  ;;  %v3347_v39 = vpop.f32.mrb[5].mxu0  ;;  %v3349_v40 = vpop.f32.mrb[5].mxu1  ;;  %v1607_v41 = vadd.f32 %v1606_v35, %v1605_v32 }
  0xe7   :  { %5412 = vst [vmem:[#allocation8_spill] sm:$0xff] %v3347_v39  ;;  %5413 = vst [vmem:[#allocation9_spill] sm:$0xff] %v3349_v40  ;;  %v1478_v42 = vmul.f32 %v3347_v39, %v3347_v39  ;;  %v3355_v43 = vadd.f32 %v3349_v40, %v3347_v39  ;;  %v1576_v44 = vmul.f32 %v3349_v40, %v3349_v40  ;;  %v3359_v45 = vpop.f32.mrb[6].mxu0  ;;  %v3361_v46 = vpop.f32.mrb[6].mxu1 }
  0xe8   :  { %5414 = vst [vmem:[#allocation10_spill] sm:$0xff] %v3359_v45  ;;  %5415 = vst [vmem:[#allocation11_spill] sm:$0xff] %v3361_v46  ;;  %v1511_v48 = vadd.f32 %v1510_v36, %v1509_v37  ;;  %v3364_v49 = vpop.f32.mrb[7].mxu0  ;;  %v3366_v50 = vpop.f32.mrb[7].mxu1  ;;  %v1609_v52 = vadd.f32 %v1608_v47, %v1607_v41  ;;  %v3372_v54 = vadd.f32 %v3361_v46, %v3359_v45 }
  0xe9   :  { %5416 = vst [vmem:[#allocation12_spill] sm:$0xff] %v3364_v49  ;;  %5417 = vst [vmem:[#allocation13_spill] sm:$0xff] %v3366_v50  ;;  %v1512_v51 = vsel %vm1405_vm3, %v1478_v42, 0.0  ;;  %v1610_v53 = vsel %vm1405_vm3, %v1576_v44, 0.0  ;;  %v1480_v55 = vmul.f32 %v3337_v33, %v3337_v33  ;;  %v1578_v56 = vmul.f32 %v3339_v34, %v3339_v34 }
  0xea   :  { %v1513_v57 = vadd.f32 %v1512_v51, %v1511_v48  ;;  %v1479_v58 = vmul.f32 %v3364_v49, %v3364_v49  ;;  %v1611_v59 = vadd.f32 %v1610_v53, %v1609_v52  ;;  %v3382_v60 = vadd.f32 %v3366_v50, %v3364_v49 }
  0xeb   :  { %v1577_v61 = vmul.f32 %v3366_v50, %v3366_v50  ;;  %v1481_v62 = vmul.f32 %v3359_v45, %v3359_v45  ;;  %v1579_v63 = vmul.f32 %v3361_v46, %v3361_v46  ;;  %v1516_v5 = vsel %vm1405_vm3, %v1480_v55, 0.0 }
  0xec   :  { %v1514_v0 = vsel %vm1405_vm3, %v1479_v58, 0.0  ;;  %v1614_v11 = vsel %vm1405_vm3, %v1578_v56, 0.0 }
  0xed   :  { %v1515_v1 = vadd.f32 %v1514_v0, %v1513_v57  ;;  %v1612_v2 = vsel %vm1405_vm3, %v1577_v61, 0.0  ;;  %v3392_v3 = vpop.f32.mrb[8].mxu0  ;;  %v3394_v4 = vpop.f32.mrb[8].mxu1  ;;  %v1518_v29 = vsel %vm1405_vm3, %v1481_v62, 0.0  ;;  %v1616_v30 = vsel %vm1405_vm3, %v1579_v63, 0.0 }
  0xee   :  { %5418 = vst [vmem:[#allocation14_spill] sm:$0xff] %v3392_v3  ;;  %5419 = vst [vmem:[#allocation15_spill] sm:$0xff] %v3394_v4  ;;  %v1613_v13 = vadd.f32 %v1612_v2, %v1611_v59  ;;  %v3400_v19 = vadd.f32 %v3394_v4, %v3392_v3  ;;  %v3402_v20 = vpop.f32.mrb[9].mxu0  ;;  %v3404_v21 = vpop.f32.mrb[9].mxu1  ;;  %v1484_v44 = vmul.f32 %v3392_v3, %v3392_v3 }
  0xef   :  { %5420 = vst [vmem:[#allocation16_spill] sm:$0xff] %v3402_v20  ;;  %5421 = vst [vmem:[#allocation17_spill] sm:$0xff] %v3404_v21  ;;  %v1517_v22 = vadd.f32 %v1516_v5, %v1515_v1  ;;  %v1482_v23 = vmul.f32 %v3402_v20, %v3402_v20  ;;  %v3410_v25 = vadd.f32 %v3404_v21, %v3402_v20  ;;  %v3414_v27 = vpop.f32.mrb[10].mxu0  ;;  %v3416_v28 = vpop.f32.mrb[10].mxu1 }
  0xf0   :  { %v1580_v26 = vmul.f32 %v3404_v21, %v3404_v21  ;;  %5422 = vst [vmem:[#allocation18_spill] sm:$0xff] %v3414_v27  ;;  %5423 = vst [vmem:[#allocation19_spill] sm:$0xff] %v3416_v28  ;;  %v1615_v31 = vadd.f32 %v1614_v11, %v1613_v13  ;;  %v3420_v32 = vpop.f32.mrb[11].mxu0  ;;  %v3422_v35 = vpop.f32.mrb[11].mxu1  ;;  %v3428_v42 = vadd.f32 %v3416_v28, %v3414_v27  ;;  %v1524_v1 = vsel %vm1405_vm3, %v1484_v44, 0.0 }
  0xf1   :  { %5424 = vst [vmem:[#allocation20_spill] sm:$0xff] %v3420_v32  ;;  %5425 = vst [vmem:[#allocation21_spill] sm:$0xff] %v3422_v35  ;;  %v1519_v36 = vadd.f32 %v1518_v29, %v1517_v22  ;;  %v1520_v37 = vsel %vm1405_vm3, %v1482_v23, 0.0  ;;  %v1582_v47 = vmul.f32 %v3394_v4, %v3394_v4  ;;  %v1483_v51 = vmul.f32 %v3420_v32, %v3420_v32 }
  0xf2   :  { %v1618_v41 = vsel %vm1405_vm3, %v1580_v26, 0.0  ;;  %v1617_v48 = vadd.f32 %v1616_v30, %v1615_v31  ;;  %v3438_v53 = vadd.f32 %v3422_v35, %v3420_v32  ;;  %v1581_v55 = vmul.f32 %v3422_v35, %v3422_v35 }
  0xf3   :  { %v1521_v52 = vadd.f32 %v1520_v37, %v1519_v36  ;;  %v1485_v57 = vmul.f32 %v3414_v27, %v3414_v27  ;;  %v1583_v58 = vmul.f32 %v3416_v28, %v3416_v28  ;;  %v1522_v59 = vsel %vm1405_vm3, %v1483_v51, 0.0 }
  0xf4   :  { %v1619_v56 = vadd.f32 %v1618_v41, %v1617_v48  ;;  %v1620_v62 = vsel %vm1405_vm3, %v1581_v55, 0.0  ;;  %v1622_v2 = vsel %vm1405_vm3, %v1582_v47, 0.0 }
  0xf5   :  { %v1523_v61 = vadd.f32 %v1522_v59, %v1521_v52  ;;  %v3448_v63 = vpop.f32.mrb[12].mxu0  ;;  %v3450_v0 = vpop.f32.mrb[12].mxu1  ;;  %v1526_v37 = vsel %vm1405_vm3, %v1485_v57, 0.0  ;;  %v1624_v41 = vsel %vm1405_vm3, %v1583_v58, 0.0 }
  0xf6   :  { %5426 = vst [vmem:[#allocation22_spill] sm:$0xff] %v3448_v63  ;;  %5427 = vst [vmem:[#allocation23_spill] sm:$0xff] %v3450_v0  ;;  %v1621_v5 = vadd.f32 %v1620_v62, %v1619_v56  ;;  %v3456_v11 = vadd.f32 %v3450_v0, %v3448_v63  ;;  %v3458_v13 = vpop.f32.mrb[13].mxu0  ;;  %v3460_v22 = vpop.f32.mrb[13].mxu1  ;;  %v1488_v59 = vmul.f32 %v3448_v63, %v3448_v63 }
  0xf7   :  { %5428 = vst [vmem:[#allocation24_spill] sm:$0xff] %v3458_v13  ;;  %5429 = vst [vmem:[#allocation25_spill] sm:$0xff] %v3460_v22  ;;  %v1525_v23 = vadd.f32 %v1524_v1, %v1523_v61  ;;  %v1486_v26 = vmul.f32 %v3458_v13, %v3458_v13  ;;  %v3466_v29 = vadd.f32 %v3460_v22, %v3458_v13  ;;  %v3470_v31 = vpop.f32.mrb[14].mxu0  ;;  %v3472_v36 = vpop.f32.mrb[14].mxu1 }
  0xf8   :  { %v1584_v30 = vmul.f32 %v3460_v22, %v3460_v22  ;;  %5430 = vst [vmem:[#allocation26_spill] sm:$0xff] %v3470_v31  ;;  %5431 = vst [vmem:[#allocation27_spill] sm:$0xff] %v3472_v36  ;;  %v1623_v44 = vadd.f32 %v1622_v2, %v1621_v5  ;;  %v3476_v47 = vpop.f32.mrb[15].mxu0  ;;  %v3478_v48 = vpop.f32.mrb[15].mxu1  ;;  %v3484_v56 = vadd.f32 %v3472_v36, %v3470_v31 }
  0xf9   :  { %5432 = vst [vmem:[#allocation28_spill] sm:$0xff] %v3476_v47  ;;  %5433 = vst [vmem:[#allocation29_spill] sm:$0xff] %v3478_v48  ;;  %v1527_v51 = vadd.f32 %v1526_v37, %v1525_v23  ;;  %v1528_v52 = vsel %vm1405_vm3, %v1486_v26, 0.0  ;;  %v1586_v57 = vmul.f32 %v3450_v0, %v3450_v0  ;;  %v1487_v61 = vmul.f32 %v3476_v47, %v3476_v47 }
  0xfa   :  { %v1626_v55 = vsel %vm1405_vm3, %v1584_v30, 0.0  ;;  %v1625_v58 = vadd.f32 %v1624_v41, %v1623_v44  ;;  %v3494_v1 = vadd.f32 %v3478_v48, %v3476_v47  ;;  %v1585_v2 = vmul.f32 %v3478_v48, %v3478_v48 }
  0xfb   :  { %v1529_v62 = vadd.f32 %v1528_v52, %v1527_v51  ;;  %v1489_v23 = vmul.f32 %v3470_v31, %v3470_v31  ;;  %v1587_v26 = vmul.f32 %v3472_v36, %v3472_v36  ;;  %v1530_v30 = vsel %vm1405_vm3, %v1487_v61, 0.0 }
  0xfc   :  { %v1627_v5 = vadd.f32 %v1626_v55, %v1625_v58  ;;  %v1628_v41 = vsel %vm1405_vm3, %v1585_v2, 0.0  ;;  %v1532_v52 = vsel %vm1405_vm3, %v1488_v59, 0.0  ;;  %v1630_v0 = vsel %vm1405_vm3, %v1586_v57, 0.0 }
  0xfd   :  { %v1531_v37 = vadd.f32 %v1530_v30, %v1529_v62  ;;  %v3504_v44 = vpop.f32.mrb[16].mxu0  ;;  %v3506_v51 = vpop.f32.mrb[16].mxu1  ;;  %v1534_v30 = vsel %vm1405_vm3, %v1489_v23, 0.0 }
  0xfe   :  { %5434 = vst [vmem:[#allocation30_spill] sm:$0xff] %v3504_v44  ;;  %5435 = vst [vmem:[#allocation31_spill] sm:$0xff] %v3506_v51  ;;  %v1629_v55 = vadd.f32 %v1628_v41, %v1627_v5  ;;  %v3512_v58 = vadd.f32 %v3506_v51, %v3504_v44  ;;  %v3514_v48 = vpop.f32.mrb[17].mxu0  ;;  %v3516_v36 = vpop.f32.mrb[17].mxu1  ;;  %v1632_v41 = vsel %vm1405_vm3, %v1587_v26, 0.0  ;;  %v1492_v21 = vmul.f32 %v3504_v44, %v3504_v44 }
  0xff   :  { %5436 = vst [vmem:[#allocation32_spill] sm:$0xff] %v3514_v48  ;;  %5437 = vst [vmem:[#allocation33_spill] sm:$0xff] %v3516_v36  ;;  %v1533_v61 = vadd.f32 %v1532_v52, %v1531_v37  ;;  %v1490_v62 = vmul.f32 %v3514_v48, %v3514_v48  ;;  %v3522_v2 = vadd.f32 %v3516_v36, %v3514_v48  ;;  %v3526_v57 = vpop.f32.mrb[18].mxu0  ;;  %v3528_v5 = vpop.f32.mrb[18].mxu1 }
 0x100   :  { %v1588_v59 = vmul.f32 %v3516_v36, %v3516_v36  ;;  %5438 = vst [vmem:[#allocation34_spill] sm:$0xff] %v3526_v57  ;;  %5439 = vst [vmem:[#allocation35_spill] sm:$0xff] %v3528_v5  ;;  %v1631_v22 = vadd.f32 %v1630_v0, %v1629_v55  ;;  %v3532_v37 = vpop.f32.mrb[19].mxu0  ;;  %v3534_v52 = vpop.f32.mrb[19].mxu1  ;;  %v3540_v36 = vadd.f32 %v3528_v5, %v3526_v57  ;;  %v1540_v34 = vsel %vm1405_vm3, %v1492_v21, 0.0 }
 0x101   :  { %5440 = vst [vmem:[#allocation36_spill] sm:$0xff] %v3532_v37  ;;  %5441 = vst [vmem:[#allocation37_spill] sm:$0xff] %v3534_v52  ;;  %v1535_v28 = vadd.f32 %v1534_v30, %v1533_v61  ;;  %v1536_v4 = vsel %vm1405_vm3, %v1490_v62, 0.0  ;;  %v1590_v23 = vmul.f32 %v3506_v51, %v3506_v51  ;;  %v1491_v26 = vmul.f32 %v3532_v37, %v3532_v37 }
 0x102   :  { %v1634_v35 = vsel %vm1405_vm3, %v1588_v59, 0.0  ;;  %v1633_v0 = vadd.f32 %v1632_v41, %v1631_v22  ;;  %v3550_v61 = vadd.f32 %v3534_v52, %v3532_v37  ;;  %v1589_v62 = vmul.f32 %v3534_v52, %v3534_v52 }
 0x103   :  { %v1537_v55 = vadd.f32 %v1536_v4, %v1535_v28  ;;  %v1493_v30 = vmul.f32 %v3526_v57, %v3526_v57  ;;  %v1591_v46 = vmul.f32 %v3528_v5, %v3528_v5  ;;  %v1538_v22 = vsel %vm1405_vm3, %v1491_v26, 0.0 }
 0x104   :  { %v1635_v59 = vadd.f32 %v1634_v35, %v1633_v0  ;;  %v1636_v51 = vsel %vm1405_vm3, %v1589_v62, 0.0  ;;  %v1638_v52 = vsel %vm1405_vm3, %v1590_v23, 0.0 }
 0x105   :  { %v1539_v41 = vadd.f32 %v1538_v22, %v1537_v55  ;;  %v3560_v4 = vpop.f32.mrb[20].mxu0  ;;  %v3562_v28 = vpop.f32.mrb[20].mxu1  ;;  %v1640_v22 = vsel %vm1405_vm3, %v1591_v46, 0.0 }
 0x106   :  { %5442 = vst [vmem:[#allocation38_spill] sm:$0xff] %v3560_v4  ;;  %5443 = vst [vmem:[#allocation39_spill] sm:$0xff] %v3562_v28  ;;  %v1637_v35 = vadd.f32 %v1636_v51, %v1635_v59  ;;  %v3568_v0 = vadd.f32 %v3562_v28, %v3560_v4  ;;  %v3570_v50 = vpop.f32.mrb[21].mxu0  ;;  %v3572_v5 = vpop.f32.mrb[21].mxu1  ;;  %v1542_v59 = vsel %vm1405_vm3, %v1493_v30, 0.0  ;;  %v1496_v10 = vmul.f32 %v3560_v4, %v3560_v4 }
 0x107   :  { %5444 = vst [vmem:[#allocation40_spill] sm:$0xff] %v3570_v50  ;;  %5445 = vst [vmem:[#allocation41_spill] sm:$0xff] %v3572_v5  ;;  %v1541_v26 = vadd.f32 %v1540_v34, %v1539_v41  ;;  %v1494_v55 = vmul.f32 %v3570_v50, %v3570_v50  ;;  %v3578_v62 = vadd.f32 %v3572_v5, %v3570_v50  ;;  %v3582_v51 = vpop.f32.mrb[22].mxu0  ;;  %v3584_v23 = vpop.f32.mrb[22].mxu1 }
 0x108   :  { %v1592_v21 = vmul.f32 %v3572_v5, %v3572_v5  ;;  %5446 = vst [vmem:[#allocation42_spill] sm:$0xff] %v3582_v51  ;;  %5447 = vst [vmem:[#allocation43_spill] sm:$0xff] %v3584_v23  ;;  %v1639_v40 = vadd.f32 %v1638_v52, %v1637_v35  ;;  %v3588_v34 = vpop.f32.mrb[23].mxu0  ;;  %v3590_v41 = vpop.f32.mrb[23].mxu1  ;;  %v3596_v5 = vadd.f32 %v3584_v23, %v3582_v51 }
 0x109   :  { %5448 = vst [vmem:[#allocation44_spill] sm:$0xff] %v3588_v34  ;;  %5449 = vst [vmem:[#allocation45_spill] sm:$0xff] %v3590_v41  ;;  %v1543_v15 = vadd.f32 %v1542_v59, %v1541_v26  ;;  %v1544_v7 = vsel %vm1405_vm3, %v1494_v55, 0.0  ;;  %v1594_v46 = vmul.f32 %v3562_v28, %v3562_v28  ;;  %v1495_v30 = vmul.f32 %v3588_v34, %v3588_v34 }
 0x10a   :  { %v1642_v18 = vsel %vm1405_vm3, %v1592_v21, 0.0  ;;  %v1641_v52 = vadd.f32 %v1640_v22, %v1639_v40  ;;  %v3606_v26 = vadd.f32 %v3590_v41, %v3588_v34  ;;  %v1593_v55 = vmul.f32 %v3590_v41, %v3590_v41 }
 0x10b   :  { %v1545_v35 = vadd.f32 %v1544_v7, %v1543_v15  ;;  %v1497_v59 = vmul.f32 %v3582_v51, %v3582_v51  ;;  %v1595_v4 = vmul.f32 %v3584_v23, %v3584_v23  ;;  %v1546_v40 = vsel %vm1405_vm3, %v1495_v30, 0.0 }
 0x10c   :  { %v1643_v21 = vadd.f32 %v1642_v18, %v1641_v52  ;;  %v1644_v28 = vsel %vm1405_vm3, %v1593_v55, 0.0  ;;  %v1548_v34 = vsel %vm1405_vm3, %v1496_v10, 0.0  ;;  %v1646_v41 = vsel %vm1405_vm3, %v1594_v46, 0.0 }
 0x10d   :  { %v1547_v22 = vadd.f32 %v1546_v40, %v1545_v35  ;;  %v3616_v7 = vpop.f32.mrb[24].mxu0  ;;  %v3618_v15 = vpop.f32.mrb[24].mxu1  ;;  %v1648_v40 = vsel %vm1405_vm3, %v1595_v4, 0.0 }
 0x10e   :  { %5450 = vst [vmem:[#allocation46_spill] sm:$0xff] %v3616_v7  ;;  %5451 = vst [vmem:[#allocation47_spill] sm:$0xff] %v3618_v15  ;;  %v1645_v18 = vadd.f32 %v1644_v28, %v1643_v21  ;;  %v3624_v52 = vadd.f32 %v3618_v15, %v3616_v7  ;;  %v3626_v51 = vpop.f32.mrb[25].mxu0  ;;  %v3628_v23 = vpop.f32.mrb[25].mxu1  ;;  %v1550_v21 = vsel %vm1405_vm3, %v1497_v59, 0.0  ;;  %v1598_v4 = vmul.f32 %v3618_v15, %v3618_v15 }
 0x10f   :  { %5452 = vst [vmem:[#allocation48_spill] sm:$0xff] %v3626_v51  ;;  %5453 = vst [vmem:[#allocation49_spill] sm:$0xff] %v3628_v23  ;;  %v1549_v30 = vadd.f32 %v1548_v34, %v1547_v22  ;;  %v1498_v35 = vmul.f32 %v3626_v51, %v3626_v51  ;;  %v3634_v55 = vadd.f32 %v3628_v23, %v3626_v51  ;;  %v3638_v28 = vpop.f32.mrb[26].mxu0  ;;  %v3640_v46 = vpop.f32.mrb[26].mxu1 }
 0x110   :  { %v1596_v10 = vmul.f32 %v3628_v23, %v3628_v23  ;;  %5454 = vst [vmem:[#allocation50_spill] sm:$0xff] %v3638_v28  ;;  %5455 = vst [vmem:[#allocation51_spill] sm:$0xff] %v3640_v46  ;;  %v1647_v50 = vadd.f32 %v1646_v41, %v1645_v18  ;;  %v1500_v34 = vmul.f32 %v3616_v7, %v3616_v7  ;;  %v3646_v22 = vpop.f32.mrb[27].mxu0  ;;  %v3648_v57 = vpop.f32.mrb[27].mxu1 }
 0x111   :  { %5456 = vst [vmem:[#allocation52_spill] sm:$0xff] %v3646_v22  ;;  %5457 = vst [vmem:[#allocation53_spill] sm:$0xff] %v3648_v57  ;;  %v1551_v51 = vadd.f32 %v1550_v21, %v1549_v30  ;;  %v1552_v44 = vsel %vm1405_vm3, %v1498_v35, 0.0  ;;  %v3654_v37 = vadd.f32 %v3640_v46, %v3638_v28  ;;  %v1501_v59 = vmul.f32 %v3638_v28, %v3638_v28 }
 0x112   :  { %v1650_v23 = vsel %vm1405_vm3, %v1596_v10, 0.0  ;;  %v1649_v41 = vadd.f32 %v1648_v40, %v1647_v50  ;;  %v1499_v18 = vmul.f32 %v3646_v22, %v3646_v22  ;;  %v3664_v30 = vadd.f32 %v3648_v57, %v3646_v22 }
 0x113   :  { %v1553_v7 = vadd.f32 %v1552_v44, %v1551_v51  ;;  %v1597_v35 = vmul.f32 %v3648_v57, %v3648_v57  ;;  %v1599_v21 = vmul.f32 %v3640_v46, %v3640_v46  ;;  %v1556_v40 = vsel %vm1405_vm3, %v1500_v34, 0.0 }
 0x114   :  { %v1651_v10 = vadd.f32 %v1650_v23, %v1649_v41  ;;  %v1554_v50 = vsel %vm1405_vm3, %v1499_v18, 0.0  ;;  %v1654_v51 = vsel %vm1405_vm3, %v1598_v4, 0.0  ;;  %v1558_v22 = vsel %vm1405_vm3, %v1501_v59, 0.0 }
 0x115   :  { %v1555_v15 = vadd.f32 %v1554_v50, %v1553_v7  ;;  %v1652_v28 = vsel %vm1405_vm3, %v1597_v35, 0.0  ;;  %v3673_v48 = vpop.f32.mrb[28].mxu0  ;;  %v3675_v44 = vpop.f32.mrb[28].mxu1 }
 0x116   :  { %5458 = vst [vmem:[#allocation54_spill] sm:$0xff] %v3673_v48  ;;  %5459 = vst [vmem:[#allocation55_spill] sm:$0xff] %v3675_v44  ;;  %v1653_v57 = vadd.f32 %v1652_v28, %v1651_v10  ;;  %v3681_v23 = vadd.f32 %v3675_v44, %v3673_v48  ;;  %v3683_v41 = vpop.f32.mrb[29].mxu0  ;;  %v3685_v18 = vpop.f32.mrb[29].mxu1  ;;  %v1656_v10 = vsel %vm1405_vm3, %v1599_v21, 0.0  ;;  %v1504_v46 = vmul.f32 %v3673_v48, %v3673_v48 }
 0x117   :  { %5460 = vst [vmem:[#allocation56_spill] sm:$0xff] %v3683_v41  ;;  %5461 = vst [vmem:[#allocation57_spill] sm:$0xff] %v3685_v18  ;;  %v1557_v7 = vadd.f32 %v1556_v40, %v1555_v15  ;;  %v1502_v34 = vmul.f32 %v3683_v41, %v3683_v41  ;;  %v3691_v35 = vadd.f32 %v3685_v18, %v3683_v41  ;;  %v2818_v28 = vpop.f32.mrb[30].mxu0  ;;  %v2854_v59 = vpop.f32.mrb[30].mxu1 }
 0x118   :  { %v1600_v4 = vmul.f32 %v3685_v18, %v3685_v18  ;;  %v1655_v50 = vadd.f32 %v1654_v51, %v1653_v57  ;;  %v1602_v15 = vmul.f32 %v3675_v44, %v3675_v44  ;;  %v3700_v40 = vpop.f32.mrb[31].mxu0  ;;  %v3702_v31 = vpop.f32.mrb[31].mxu1 }
 0x119   :  { %5462 = vst [vmem:[#allocation58_spill] sm:$0xff] %v3700_v40  ;;  %5463 = vst [vmem:[#allocation59_spill] sm:$0xff] %v3702_v31  ;;  %v1559_v41 = vadd.f32 %v1558_v22, %v1557_v7  ;;  %v1560_v63 = vsel %vm1405_vm3, %v1502_v34, 0.0  ;;  %v1503_v28 = vmul.f32 %v3700_v40, %v3700_v40  ;;  %v3710_v21 = vadd.f32 %v3702_v31, %v3700_v40 }
 0x11a   :  { %v1658_v18 = vsel %vm1405_vm3, %v1600_v4, 0.0  ;;  %v1657_v57 = vadd.f32 %v1656_v10, %v1655_v50  ;;  %v1601_v51 = vmul.f32 %v3702_v31, %v3702_v31  ;;  %v1564_v34 = vsel %vm1465_vm4, %v1504_v46, 0.0 }
 0x11b   :  { %v1561_v59 = vadd.f32 %v1560_v63, %v1559_v41  ;;  %v1562_v44 = vsel %vm1405_vm3, %v1503_v28, 0.0  ;;  %v1662_v4 = vsel %vm1465_vm4, %v1602_v15, 0.0 }
 0x11c   :  { %v1659_v22 = vadd.f32 %v1658_v18, %v1657_v57  ;;  %v1660_v7 = vsel %vm1405_vm3, %v1601_v51, 0.0 }
 0x11d   :  { %v1563_v48 = vadd.f32 %v1562_v44, %v1561_v59  ;;  %v3718_v47 = vpop.f32.mrb[32].mxu0  ;;  %v3720_v10 = vpop.f32.mrb[32].mxu1 }
 0x11e   :  { %5464 = vst [vmem:[#allocation60_spill] sm:$0xff] %v3718_v47  ;;  %5465 = vst [vmem:[#allocation61_spill] sm:$0xff] %v3720_v10  ;;  %v1661_v50 = vadd.f32 %v1660_v7, %v1659_v22  ;;  %v1345_v40 = vadd.f32 %v3718_v47, %v3290_v8  ;;  %v1673_v63 = vmul.f32 %v3718_v47, %v3718_v47  ;;  %v3728_v18 = vpop.f32.mrb[33].mxu0  ;;  %v3730_v46 = vpop.f32.mrb[33].mxu1 }
 0x11f   :  { %v1772_v41 = vmul.f32 %v3720_v10, %v3720_v10  ;;  %5466 = vst [vmem:[#allocation62_spill] sm:$0xff] %v3728_v18  ;;  %5467 = vst [vmem:[#allocation63_spill] sm:$0xff] %v3730_v46  ;;  %v1565_v15 = vadd.f32 %v1564_v34, %v1563_v48  ;;  %v1343_v44 = vadd.f32 %v3300_v12, %v3728_v18  ;;  %v3738_v57 = vpop.f32.mrb[34].mxu0  ;;  %v3740_v51 = vpop.f32.mrb[34].mxu1 }
 0x120   :  { %v1671_v28 = vmul.f32 %v3728_v18, %v3728_v18  ;;  %v1770_v8 = vmul.f32 %v3730_v46, %v3730_v46  ;;  %5468 = vst [vmem:[#allocation64_spill] sm:$0xff] %v3738_v57  ;;  %5469 = vst [vmem:[#allocation65_spill] sm:$0xff] %v3740_v51  ;;  %v1663_v59 = vadd.f32 %v1662_v4, %v1661_v50  ;;  %v3743_v7 = vpop.f32.mrb[35].mxu0  ;;  %v3745_v47 = vpop.f32.mrb[35].mxu1  ;;  %v1705_v12 = vsel %vm1405_vm3, %v1673_v63, 0.0 }
 0x121   :  { %v1376_v22 = vadd.f32 %v3720_v10, %v1345_v40  ;;  %5470 = vst [vmem:[#allocation66_spill] sm:$0xff] %v3743_v7  ;;  %5471 = vst [vmem:[#allocation67_spill] sm:$0xff] %v3745_v47  ;;  %v1566_v48 = vrot.slane %v1565_v15, 4  ;;  %v1374_v34 = vadd.f32 %v1343_v44, %v3730_v46  ;;  %v1804_v31 = vsel %vm1405_vm3, %v1772_v41, 0.0 }
 0x122   :  { %v1664_v18 = vrot.slane %v1663_v59, 4  ;;  %v1702_v13 = vsel %vm1405_vm3, %v1671_v28, 0.0  ;;  %v1346_v27 = vadd.f32 %v3738_v57, %v3310_v16  ;;  %v1801_v50 = vsel %vm1405_vm3, %v1770_v8, 0.0 }
 0x123   :  { %v1567_v4 = vadd.f32 %v1566_v48, %v1565_v15  ;;  %v1409_v40 = vsel %vm1405_vm3, %v1376_v22, 0.0  ;;  %v1344_v10 = vadd.f32 %v3327_v24, %v3743_v7  ;;  %v1674_v63 = vmul.f32 %v3738_v57, %v3738_v57 }
 0x124   :  { %v1665_v3 = vadd.f32 %v1664_v18, %v1663_v59  ;;  %v1377_v44 = vadd.f32 %v3740_v51, %v1346_v27  ;;  %v1672_v41 = vmul.f32 %v3743_v7, %v3743_v7  ;;  %v1773_v16 = vmul.f32 %v3740_v51, %v3740_v51 }
 0x125   :  { %v1568_v28 = vrot.slane %v1567_v4, 2  ;;  %v1375_v15 = vadd.f32 %v1344_v10, %v3745_v47  ;;  %v1771_v8 = vmul.f32 %v3745_v47, %v3745_v47  ;;  %v3767_v22 = vpop.f32.mrb[36].mxu0  ;;  %v3769_v24 = vpop.f32.mrb[36].mxu1  ;;  %v1406_v59 = vsel %vm1405_vm3, %v1374_v34, 0.0 }
 0x126   :  { %5472 = vst [vmem:[#allocation68_spill] sm:$0xff] %v3767_v22  ;;  %5473 = vst [vmem:[#allocation69_spill] sm:$0xff] %v3769_v24  ;;  %v1666_v18 = vrot.slane %v1665_v3, 2  ;;  %v1703_v27 = vsel %vm1405_vm3, %v1672_v41, 0.0  ;;  %v1349_v48 = vadd.f32 %v3767_v22, %v3345_v38  ;;  %v3775_v46 = vpop.f32.mrb[37].mxu0  ;;  %v3777_v51 = vpop.f32.mrb[37].mxu1 }
 0x127   :  { %5474 = vst [vmem:[#allocation70_spill] sm:$0xff] %v3775_v46  ;;  %5475 = vst [vmem:[#allocation71_spill] sm:$0xff] %v3777_v51  ;;  %v1569_v10 = vadd.f32 %v1568_v28, %v1567_v4  ;;  %v1704_v57 = vadd.f32 %v1703_v27, %v1702_v13  ;;  %v1407_v47 = vsel %vm1405_vm3, %v1375_v15, 0.0  ;;  %v1802_v7 = vsel %vm1405_vm3, %v1771_v8, 0.0  ;;  %v3781_v32 = vpop.f32.mrb[38].mxu0  ;;  %v3783_v20 = vpop.f32.mrb[38].mxu1 }
 0x128   :  { %5476 = vst [vmem:[#allocation72_spill] sm:$0xff] %v3781_v32  ;;  %5477 = vst [vmem:[#allocation73_spill] sm:$0xff] %v3783_v20  ;;  %v1667_v34 = vadd.f32 %v1666_v18, %v1665_v3  ;;  %v1707_v41 = vsel %vm1405_vm3, %v1674_v63, 0.0  ;;  %v1408_v45 = vadd.f32 %v1407_v47, %v1406_v59  ;;  %v1803_v33 = vadd.f32 %v1802_v7, %v1801_v50  ;;  %v3786_v38 = vpop.f32.mrb[39].mxu0  ;;  %v3788_v49 = vpop.f32.mrb[39].mxu1 }
 0x129   :  { %5478 = vst [vmem:[#allocation74_spill] sm:$0xff] %v3786_v38  ;;  %5479 = vst [vmem:[#allocation75_spill] sm:$0xff] %v3788_v49  ;;  %v1570_v39 = vrot.slane %v1569_v10, 1  ;;  %v1806_v13 = vsel %vm1405_vm3, %v1773_v16, 0.0  ;;  %v1706_v4 = vadd.f32 %v1705_v12, %v1704_v57  ;;  %v1380_v28 = vadd.f32 %v3769_v24, %v1349_v48 }
 0x12a   :  { %v1668_v15 = vrot.slane %v1667_v34, 1  ;;  %v1410_v8 = vadd.f32 %v1409_v40, %v1408_v45  ;;  %v1805_v27 = vadd.f32 %v1804_v31, %v1803_v33  ;;  %v1677_v3 = vmul.f32 %v3767_v22, %v3767_v22  ;;  %v5605_v22 = vld [vmem:[#allocation45_spill] sm:$0xff] }
 0x12b   :  { %v1571_v18 = vadd.f32 %v1570_v39, %v1569_v10  ;;  %v1411_v47 = vsel %vm1405_vm3, %v1377_v44, 0.0  ;;  %v1776_v7 = vmul.f32 %v3769_v24, %v3769_v24  ;;  %v1347_v50 = vadd.f32 %v3355_v43, %v3775_v46 }
 0x12c   :  { %v1669_v63 = vadd.f32 %v1668_v15, %v1667_v34  ;;  %v1675_v57 = vmul.f32 %v3775_v46, %v3775_v46  ;;  %v1708_v12 = vadd.f32 %v1707_v41, %v1706_v4  ;;  %v1412_v16 = vadd.f32 %v1411_v47, %v1410_v8 }
 0x12d   :  { %v1378_v33 = vadd.f32 %v1347_v50, %v3777_v51  ;;  %v1774_v45 = vmul.f32 %v3777_v51, %v3777_v51  ;;  %v1807_v39 = vadd.f32 %v1806_v13, %v1805_v27  ;;  %v1350_v31 = vadd.f32 %v3781_v32, %v3372_v54  ;;  %v3806_v40 = vpop.f32.mrb[40].mxu0  ;;  %v3808_v44 = vpop.f32.mrb[40].mxu1 }
 0x12e   :  { %5480 = vst [vmem:[#allocation76_spill] sm:$0xff] %v3806_v40  ;;  %5481 = vst [vmem:[#allocation77_spill] sm:$0xff] %v3808_v44  ;;  %v3810_v43 = vadd.f32 %v1669_v63, %v1571_v18  ;;  %v1713_v59 = vsel %vm1405_vm3, %v1677_v3, 0.0  ;;  %v1709_v48 = vsel %vm1405_vm3, %v1675_v57, 0.0  ;;  %v1678_v10 = vmul.f32 %v3781_v32, %v3781_v32  ;;  %v3816_v34 = vpop.f32.mrb[41].mxu0  ;;  %v3818_v41 = vpop.f32.mrb[41].mxu1 }
 0x12f   :  { %5482 = vst [vmem:[#allocation78_spill] sm:$0xff] %v3816_v34  ;;  %5483 = vst [vmem:[#allocation79_spill] sm:$0xff] %v3818_v41  ;;  %v1710_v13 = vadd.f32 %v1709_v48, %v1708_v12  ;;  %v1413_v54 = vsel %vm1405_vm3, %v1378_v33, 0.0  ;;  %v1808_v4 = vsel %vm1405_vm3, %v1774_v45, 0.0  ;;  %v1381_v15 = vadd.f32 %v3783_v20, %v1350_v31  ;;  %v3823_v8 = vpop.f32.mrb[42].mxu0  ;;  %v3825_v27 = vpop.f32.mrb[42].mxu1 }
 0x130   :  { %5484 = vst [vmem:[#allocation80_spill] sm:$0xff] %v3823_v8  ;;  %5485 = vst [vmem:[#allocation81_spill] sm:$0xff] %v3825_v27  ;;  %v1417_v3 = vsel %vm1405_vm3, %v1380_v28, 0.0  ;;  %v1414_v18 = vadd.f32 %v1413_v54, %v1412_v16  ;;  %v1809_v47 = vadd.f32 %v1808_v4, %v1807_v39  ;;  %v1777_v50 = vmul.f32 %v3783_v20, %v3783_v20  ;;  %v3830_v63 = vpop.f32.mrb[43].mxu0  ;;  %v3832_v57 = vpop.f32.mrb[43].mxu1  ;;  %v5604_v32 = vld [vmem:[#allocation41_spill] sm:$0xff] }
 0x131   :  { %5486 = vst [vmem:[#allocation82_spill] sm:$0xff] %v3830_v63  ;;  %5487 = vst [vmem:[#allocation83_spill] sm:$0xff] %v3832_v57  ;;  %v1812_v12 = vsel %vm1405_vm3, %v1776_v7, 0.0  ;;  %v1348_v33 = vadd.f32 %v3382_v60, %v3786_v38  ;;  %v1676_v45 = vmul.f32 %v3786_v38, %v3786_v38  ;;  %v1775_v28 = vmul.f32 %v3788_v49, %v3788_v49 }
 0x132   :  { %v1715_v16 = vsel %vm1405_vm3, %v1678_v10, 0.0  ;;  %v1353_v39 = vadd.f32 %v3806_v40, %v3400_v19  ;;  %v1681_v31 = vmul.f32 %v3806_v40, %v3806_v40  ;;  %v1351_v7 = vadd.f32 %v3410_v25, %v3816_v34 }
 0x133   :  { %v1711_v48 = vsel %vm1405_vm3, %v1676_v45, 0.0  ;;  %v1379_v60 = vadd.f32 %v1348_v33, %v3788_v49  ;;  %v1810_v54 = vsel %vm1405_vm3, %v1775_v28, 0.0  ;;  %v1679_v4 = vmul.f32 %v3816_v34, %v3816_v34 }
 0x134   :  { %v1814_v10 = vsel %vm1405_vm3, %v1777_v50, 0.0  ;;  %v1712_v20 = vadd.f32 %v1711_v48, %v1710_v13  ;;  %v1811_v24 = vadd.f32 %v1810_v54, %v1809_v47  ;;  %v1384_v19 = vadd.f32 %v3808_v44, %v1353_v39 }
 0x135   :  { %v1419_v51 = vsel %vm1405_vm3, %v1381_v15, 0.0  ;;  %v1415_v40 = vsel %vm1405_vm3, %v1379_v60, 0.0  ;;  %v1780_v25 = vmul.f32 %v3808_v44, %v3808_v44  ;;  %v1382_v33 = vadd.f32 %v1351_v7, %v3818_v41  ;;  %v3860_v45 = vpop.f32.mrb[44].mxu0  ;;  %v3862_v28 = vpop.f32.mrb[44].mxu1 }
 0x136   :  { %5488 = vst [vmem:[#allocation84_spill] sm:$0xff] %v3860_v45  ;;  %5489 = vst [vmem:[#allocation85_spill] sm:$0xff] %v3862_v28  ;;  %v1714_v49 = vadd.f32 %v1713_v59, %v1712_v20  ;;  %v1416_v34 = vadd.f32 %v1415_v40, %v1414_v18  ;;  %v1813_v50 = vadd.f32 %v1812_v12, %v1811_v24  ;;  %v1721_v13 = vsel %vm1405_vm3, %v1681_v31, 0.0  ;;  %v3865_v47 = vpop.f32.mrb[45].mxu0  ;;  %v3867_v39 = vpop.f32.mrb[45].mxu1 }
 0x137   :  { %5490 = vst [vmem:[#allocation86_spill] sm:$0xff] %v3865_v47  ;;  %5491 = vst [vmem:[#allocation87_spill] sm:$0xff] %v3867_v39  ;;  %v1717_v15 = vsel %vm1405_vm3, %v1679_v4, 0.0  ;;  %v1778_v48 = vmul.f32 %v3818_v41, %v3818_v41  ;;  %v1354_v7 = vadd.f32 %v3823_v8, %v3428_v42  ;;  %v1682_v60 = vmul.f32 %v3823_v8, %v3823_v8  ;;  %v3876_v20 = vpop.f32.mrb[46].mxu0  ;;  %v3878_v24 = vpop.f32.mrb[46].mxu1 }
 0x138   :  { %5492 = vst [vmem:[#allocation88_spill] sm:$0xff] %v3876_v20  ;;  %5493 = vst [vmem:[#allocation89_spill] sm:$0xff] %v3878_v24  ;;  %v1418_v40 = vadd.f32 %v1417_v3, %v1416_v34  ;;  %v1716_v59 = vadd.f32 %v1715_v16, %v1714_v49  ;;  %v1815_v18 = vadd.f32 %v1814_v10, %v1813_v50  ;;  %v3882_v31 = vpop.f32.mrb[47].mxu0  ;;  %v3884_v54 = vpop.f32.mrb[47].mxu1  ;;  %v1421_v4 = vsel %vm1405_vm3, %v1382_v33, 0.0 }
 0x139   :  { %v1781_v12 = vmul.f32 %v3825_v27, %v3825_v27  ;;  %5494 = vst [vmem:[#allocation90_spill] sm:$0xff] %v3882_v31  ;;  %5495 = vst [vmem:[#allocation91_spill] sm:$0xff] %v3884_v54  ;;  %v1816_v42 = vsel %vm1405_vm3, %v1778_v48, 0.0  ;;  %v1385_v44 = vadd.f32 %v3825_v27, %v1354_v7  ;;  %v1352_v41 = vadd.f32 %v3438_v53, %v3830_v63 }
 0x13a   :  { %v1820_v34 = vsel %vm1405_vm3, %v1780_v25, 0.0  ;;  %v1718_v49 = vadd.f32 %v1717_v15, %v1716_v59  ;;  %v1420_v3 = vadd.f32 %v1419_v51, %v1418_v40  ;;  %v1817_v16 = vadd.f32 %v1816_v42, %v1815_v18 }
 0x13b   :  { %v1425_v10 = vsel %vm1405_vm3, %v1384_v19, 0.0  ;;  %v1680_v50 = vmul.f32 %v3830_v63, %v3830_v63  ;;  %v1383_v8 = vadd.f32 %v1352_v41, %v3832_v57  ;;  %v1779_v33 = vmul.f32 %v3832_v57, %v3832_v57 }
 0x13c   :  { %v1422_v48 = vadd.f32 %v1421_v4, %v1420_v3  ;;  %v1723_v7 = vsel %vm1405_vm3, %v1682_v60, 0.0  ;;  %v1822_v53 = vsel %vm1405_vm3, %v1781_v12, 0.0  ;;  %v1357_v25 = vadd.f32 %v3860_v45, %v3456_v11 }
 0x13d   :  { %v1719_v51 = vsel %vm1405_vm3, %v1680_v50, 0.0  ;;  %v1423_v19 = vsel %vm1405_vm3, %v1383_v8, 0.0  ;;  %v1818_v15 = vsel %vm1405_vm3, %v1779_v33, 0.0  ;;  %v1355_v41 = vadd.f32 %v3466_v29, %v3865_v47  ;;  %v3907_v40 = vpop.f32.mrb[48].mxu0  ;;  %v3909_v59 = vpop.f32.mrb[48].mxu1 }
 0x13e   :  { %5496 = vst [vmem:[#allocation92_spill] sm:$0xff] %v3907_v40  ;;  %5497 = vst [vmem:[#allocation93_spill] sm:$0xff] %v3909_v59  ;;  %v1427_v60 = vsel %vm1405_vm3, %v1385_v44, 0.0  ;;  %v1720_v18 = vadd.f32 %v1719_v51, %v1718_v49  ;;  %v1424_v12 = vadd.f32 %v1423_v19, %v1422_v48  ;;  %v1819_v4 = vadd.f32 %v1818_v15, %v1817_v16  ;;  %v3912_v42 = vpop.f32.mrb[49].mxu0  ;;  %v3914_v11 = vpop.f32.mrb[49].mxu1 }
 0x13f   :  { %5498 = vst [vmem:[#allocation94_spill] sm:$0xff] %v3912_v42  ;;  %5499 = vst [vmem:[#allocation95_spill] sm:$0xff] %v3914_v11  ;;  %v1685_v8 = vmul.f32 %v3860_v45, %v3860_v45  ;;  %v1388_v3 = vadd.f32 %v3862_v28, %v1357_v25  ;;  %v1683_v29 = vmul.f32 %v3865_v47, %v3865_v47  ;;  %v3922_v33 = vpop.f32.mrb[50].mxu0  ;;  %v3924_v44 = vpop.f32.mrb[50].mxu1 }
 0x140   :  { %v1386_v50 = vadd.f32 %v1355_v41, %v3867_v39  ;;  %5500 = vst [vmem:[#allocation96_spill] sm:$0xff] %v3922_v33  ;;  %5501 = vst [vmem:[#allocation97_spill] sm:$0xff] %v3924_v44  ;;  %v1722_v49 = vadd.f32 %v1721_v13, %v1720_v18  ;;  %v1426_v16 = vadd.f32 %v1425_v10, %v1424_v12  ;;  %v3928_v19 = vpop.f32.mrb[51].mxu0  ;;  %v3930_v15 = vpop.f32.mrb[51].mxu1 }
 0x141   :  { %v1821_v48 = vadd.f32 %v1820_v34, %v1819_v4  ;;  %v1782_v51 = vmul.f32 %v3867_v39, %v3867_v39  ;;  %5502 = vst [vmem:[#allocation98_spill] sm:$0xff] %v3928_v19  ;;  %5503 = vst [vmem:[#allocation99_spill] sm:$0xff] %v3930_v15  ;;  %v1784_v25 = vmul.f32 %v3862_v28, %v3862_v28  ;;  %v1725_v27 = vsel %vm1405_vm3, %v1683_v29, 0.0 }
 0x142   :  { %v1429_v41 = vsel %vm1405_vm3, %v1386_v50, 0.0  ;;  %v1358_v57 = vadd.f32 %v3876_v20, %v3484_v56  ;;  %v1724_v13 = vadd.f32 %v1723_v7, %v1722_v49  ;;  %v1428_v10 = vadd.f32 %v1427_v60, %v1426_v16 }
 0x143   :  { %v1823_v34 = vadd.f32 %v1822_v53, %v1821_v48  ;;  %v1824_v18 = vsel %vm1405_vm3, %v1782_v51, 0.0  ;;  %v1686_v12 = vmul.f32 %v3876_v20, %v3876_v20  ;;  %v1785_v28 = vmul.f32 %v3878_v24, %v3878_v24  ;;  %v5600_v20 = vld [vmem:[#allocation33_spill] sm:$0xff] }
 0x144   :  { %v1389_v4 = vadd.f32 %v3878_v24, %v1358_v57  ;;  %v1356_v29 = vadd.f32 %v3494_v1, %v3882_v31  ;;  %v1726_v50 = vadd.f32 %v1725_v27, %v1724_v13  ;;  %v1430_v39 = vadd.f32 %v1429_v41, %v1428_v10 }
 0x145   :  { %v1825_v45 = vadd.f32 %v1824_v18, %v1823_v34  ;;  %v1684_v56 = vmul.f32 %v3882_v31, %v3882_v31  ;;  %v1729_v7 = vsel %vm1405_vm3, %v1685_v8, 0.0  ;;  %v1433_v53 = vsel %vm1405_vm3, %v1388_v3, 0.0  ;;  %v3952_v49 = vpop.f32.mrb[52].mxu0  ;;  %v3954_v16 = vpop.f32.mrb[52].mxu1  ;;  %v5601_v31 = vld [vmem:[#allocation37_spill] sm:$0xff] }
 0x146   :  { %v1828_v60 = vsel %vm1405_vm3, %v1784_v25, 0.0  ;;  %v1387_v57 = vadd.f32 %v1356_v29, %v3884_v54  ;;  %5504 = vst [vmem:[#allocation100_spill] sm:$0xff] %v3952_v49  ;;  %5505 = vst [vmem:[#allocation101_spill] sm:$0xff] %v3954_v16  ;;  %v1731_v1 = vsel %vm1405_vm3, %v1686_v12, 0.0  ;;  %v1783_v48 = vmul.f32 %v3884_v54, %v3884_v54  ;;  %v3962_v51 = vpop.f32.mrb[53].mxu0  ;;  %v3964_v3 = vpop.f32.mrb[53].mxu1 }
 0x147   :  { %v1727_v27 = vsel %vm1405_vm3, %v1684_v56, 0.0  ;;  %v1361_v8 = vadd.f32 %v3907_v40, %v3512_v58  ;;  %5506 = vst [vmem:[#allocation102_spill] sm:$0xff] %v3962_v51  ;;  %5507 = vst [vmem:[#allocation103_spill] sm:$0xff] %v3964_v3  ;;  %v1435_v25 = vsel %vm1405_vm3, %v1389_v4, 0.0  ;;  %v1359_v10 = vadd.f32 %v3522_v2, %v3912_v42  ;;  %v3970_v34 = vpop.f32.mrb[54].mxu0  ;;  %v3972_v18 = vpop.f32.mrb[54].mxu1 }
 0x148   :  { %v1728_v41 = vadd.f32 %v1727_v27, %v1726_v50  ;;  %v1431_v13 = vsel %vm1405_vm3, %v1387_v57, 0.0  ;;  %5508 = vst [vmem:[#allocation104_spill] sm:$0xff] %v3970_v34  ;;  %5509 = vst [vmem:[#allocation105_spill] sm:$0xff] %v3972_v18  ;;  %v1830_v12 = vsel %vm1405_vm3, %v1785_v28, 0.0  ;;  %v1826_v58 = vsel %vm1405_vm3, %v1783_v48, 0.0  ;;  %v3977_v24 = vpop.f32.mrb[55].mxu0 }
 0x149   :  { %v1432_v29 = vadd.f32 %v1431_v13, %v1430_v39  ;;  %v1392_v56 = vadd.f32 %v3909_v59, %v1361_v8  ;;  %5510 = vst [vmem:[#allocation106_spill] sm:$0xff] %v3977_v24  ;;  %v3979_v4 = vpop.f32.mrb[55].mxu1  ;;  %v1827_v57 = vadd.f32 %v1826_v58, %v1825_v45  ;;  %v1689_v2 = vmul.f32 %v3907_v40, %v3907_v40 }
 0x14a   :  { %5511 = vst [vmem:[#allocation107_spill] sm:$0xff] %v3979_v4  ;;  %v1730_v50 = vadd.f32 %v1729_v7, %v1728_v41  ;;  %v1687_v27 = vmul.f32 %v3912_v42, %v3912_v42  ;;  %v1788_v28 = vmul.f32 %v3909_v59, %v3909_v59  ;;  %v1390_v39 = vadd.f32 %v1359_v10, %v3914_v11 }
 0x14b   :  { %v1434_v54 = vadd.f32 %v1433_v53, %v1432_v29  ;;  %v1786_v48 = vmul.f32 %v3914_v11, %v3914_v11  ;;  %v1829_v8 = vadd.f32 %v1828_v60, %v1827_v57  ;;  %v1362_v45 = vadd.f32 %v3922_v33, %v3540_v36 }
 0x14c   :  { %v1732_v13 = vadd.f32 %v1731_v1, %v1730_v50  ;;  %v1733_v7 = vsel %vm1405_vm3, %v1687_v27, 0.0  ;;  %v1437_v58 = vsel %vm1405_vm3, %v1390_v39, 0.0  ;;  %v1690_v29 = vmul.f32 %v3922_v33, %v3922_v33 }
 0x14d   :  { %v1436_v41 = vadd.f32 %v1435_v25, %v1434_v54  ;;  %v1832_v53 = vsel %vm1405_vm3, %v1786_v48, 0.0  ;;  %v1737_v10 = vsel %vm1405_vm3, %v1689_v2, 0.0  ;;  %v1831_v40 = vadd.f32 %v1830_v12, %v1829_v8  ;;  %v3999_v1 = vpop.f32.mrb[56].mxu0  ;;  %v4001_v50 = vpop.f32.mrb[56].mxu1 }
 0x14e   :  { %v1734_v59 = vadd.f32 %v1733_v7, %v1732_v13  ;;  %v1393_v60 = vadd.f32 %v3924_v44, %v1362_v45  ;;  %5512 = vst [vmem:[#allocation108_spill] sm:$0xff] %v3999_v1  ;;  %5513 = vst [vmem:[#allocation109_spill] sm:$0xff] %v4001_v50  ;;  %v1789_v36 = vmul.f32 %v3924_v44, %v3924_v44  ;;  %v4009_v27 = vpop.f32.mrb[57].mxu0  ;;  %v4011_v2 = vpop.f32.mrb[57].mxu1  ;;  %v1441_v12 = vsel %vm1405_vm3, %v1392_v56, 0.0 }
 0x14f   :  { %v1438_v57 = vadd.f32 %v1437_v58, %v1436_v41  ;;  %v1360_v54 = vadd.f32 %v3550_v61, %v3928_v19  ;;  %v1688_v25 = vmul.f32 %v3928_v19, %v3928_v19  ;;  %5514 = vst [vmem:[#allocation110_spill] sm:$0xff] %v4009_v27  ;;  %5515 = vst [vmem:[#allocation111_spill] sm:$0xff] %v4011_v2  ;;  %v1836_v39 = vsel %vm1405_vm3, %v1788_v28, 0.0  ;;  %v4017_v13 = vpop.f32.mrb[58].mxu0  ;;  %v4019_v7 = vpop.f32.mrb[58].mxu1 }
 0x150   :  { %v1833_v48 = vadd.f32 %v1832_v53, %v1831_v40  ;;  %v1787_v8 = vmul.f32 %v3930_v15, %v3930_v15  ;;  %5516 = vst [vmem:[#allocation112_spill] sm:$0xff] %v4017_v13  ;;  %5517 = vst [vmem:[#allocation113_spill] sm:$0xff] %v4019_v7  ;;  %v1739_v61 = vsel %vm1405_vm3, %v1690_v29, 0.0  ;;  %v1365_v58 = vadd.f32 %v3952_v49, %v3568_v0  ;;  %v4026_v56 = vpop.f32.mrb[59].mxu0  ;;  %v4028_v28 = vpop.f32.mrb[59].mxu1 }
 0x151   :  { %v1735_v45 = vsel %vm1405_vm3, %v1688_v25, 0.0  ;;  %v1391_v41 = vadd.f32 %v1360_v54, %v3930_v15  ;;  %5518 = vst [vmem:[#allocation114_spill] sm:$0xff] %v4026_v56  ;;  %5519 = vst [vmem:[#allocation115_spill] sm:$0xff] %v4028_v28  ;;  %v1443_v40 = vsel %vm1405_vm3, %v1393_v60, 0.0  ;;  %v1363_v11 = vadd.f32 %v3578_v62, %v3962_v51 }
 0x152   :  { %v1736_v53 = vadd.f32 %v1735_v45, %v1734_v59  ;;  %v1834_v44 = vsel %vm1405_vm3, %v1787_v8, 0.0  ;;  %v1838_v29 = vsel %vm1405_vm3, %v1789_v36, 0.0  ;;  %v1396_v15 = vadd.f32 %v3954_v16, %v1365_v58 }
 0x153   :  { %v1439_v25 = vsel %vm1405_vm3, %v1391_v41, 0.0  ;;  %v1835_v54 = vadd.f32 %v1834_v44, %v1833_v48  ;;  %v1693_v19 = vmul.f32 %v3952_v49, %v3952_v49  ;;  %v1691_v59 = vmul.f32 %v3962_v51, %v3962_v51 }
 0x154   :  { %v1738_v0 = vadd.f32 %v1737_v10, %v1736_v53  ;;  %v1440_v33 = vadd.f32 %v1439_v25, %v1438_v57  ;;  %v1792_v8 = vmul.f32 %v3954_v16, %v3954_v16  ;;  %v1394_v62 = vadd.f32 %v1363_v11, %v3964_v3 }
 0x155   :  { %v1837_v60 = vadd.f32 %v1836_v39, %v1835_v54  ;;  %v1790_v36 = vmul.f32 %v3964_v3, %v3964_v3  ;;  %v1741_v10 = vsel %vm1405_vm3, %v1691_v59, 0.0  ;;  %v1366_v57 = vadd.f32 %v3970_v34, %v3596_v5  ;;  %v4049_v45 = vpop.f32.mrb[60].mxu0  ;;  %v4051_v41 = vpop.f32.mrb[60].mxu1 }
 0x156   :  { %v1442_v44 = vadd.f32 %v1441_v12, %v1440_v33  ;;  %v1740_v48 = vadd.f32 %v1739_v61, %v1738_v0  ;;  %5520 = vst [vmem:[#allocation116_spill] sm:$0xff] %v4049_v45  ;;  %5521 = vst [vmem:[#allocation117_spill] sm:$0xff] %v4051_v41  ;;  %v1445_v39 = vsel %vm1405_vm3, %v1394_v62, 0.0  ;;  %v1694_v11 = vmul.f32 %v3970_v34, %v3970_v34  ;;  %v4057_v25 = vpop.f32.mrb[61].mxu0  ;;  %v4059_v33 = vpop.f32.mrb[61].mxu1 }
 0x157   :  { %v1839_v58 = vadd.f32 %v1838_v29, %v1837_v60  ;;  %v1840_v53 = vsel %vm1405_vm3, %v1790_v36, 0.0  ;;  %5522 = vst [vmem:[#allocation118_spill] sm:$0xff] %v4057_v25  ;;  %5523 = vst [vmem:[#allocation119_spill] sm:$0xff] %v4059_v33  ;;  %v1745_v12 = vsel %vm1405_vm3, %v1693_v19, 0.0  ;;  %v1397_v54 = vadd.f32 %v3972_v18, %v1366_v57  ;;  %v2890_v0 = vpop.f32.mrb[62].mxu0  ;;  %v2926_v59 = vpop.f32.mrb[62].mxu1 }
 0x158   :  { %v1742_v61 = vadd.f32 %v1741_v10, %v1740_v48  ;;  %v1444_v5 = vadd.f32 %v1443_v40, %v1442_v44  ;;  %v1793_v29 = vmul.f32 %v3972_v18, %v3972_v18  ;;  %v1364_v60 = vadd.f32 %v3606_v26, %v3977_v24  ;;  %v4069_v36 = vpop.f32.mrb[63].mxu0  ;;  %v4071_v3 = vpop.f32.mrb[63].mxu1  ;;  %v5554_v18 = vld [vmem:[#allocation5_spill] sm:$0xff] }
 0x159   :  { %v1841_v16 = vadd.f32 %v1840_v53, %v1839_v58  ;;  %v1692_v62 = vmul.f32 %v3977_v24, %v3977_v24  ;;  %5524 = vst [vmem:[#allocation120_spill] sm:$0xff] %v4069_v36  ;;  %5525 = vst [vmem:[#allocation121_spill] sm:$0xff] %v4071_v3  ;;  %v1449_v19 = vsel %vm1405_vm3, %v1396_v15, 0.0  ;;  %v1844_v40 = vsel %vm1405_vm3, %v1792_v8, 0.0 }
 0x15a   :  { %v1446_v44 = vadd.f32 %v1445_v39, %v1444_v5  ;;  %v1791_v48 = vmul.f32 %v3979_v4, %v3979_v4  ;;  %v1747_v10 = vsel %vm1405_vm3, %v1694_v11, 0.0  ;;  %v1395_v26 = vadd.f32 %v1364_v60, %v3979_v4  ;;  %v5555_v4 = vld [vmem:[#allocation2_spill] sm:$0xff] }
 0x15b   :  { %v1743_v57 = vsel %vm1405_vm3, %v1692_v62, 0.0  ;;  %v1369_v58 = vadd.f32 %v3999_v1, %v3624_v52  ;;  %v1451_v53 = vsel %vm1405_vm3, %v1397_v54, 0.0  ;;  %v1367_v8 = vadd.f32 %v3634_v55, %v4009_v27 }
 0x15c   :  { %v1744_v0 = vadd.f32 %v1743_v57, %v1742_v61  ;;  %v1842_v15 = vsel %vm1405_vm3, %v1791_v48, 0.0  ;;  %v1846_v39 = vsel %vm1405_vm3, %v1793_v29, 0.0  ;;  %v1447_v5 = vsel %vm1405_vm3, %v1395_v26, 0.0 }
 0x15d   :  { %v1843_v11 = vadd.f32 %v1842_v15, %v1841_v16  ;;  %v1400_v59 = vadd.f32 %v4001_v50, %v1369_v58  ;;  %v1448_v60 = vadd.f32 %v1447_v5, %v1446_v44  ;;  %v1697_v52 = vmul.f32 %v3999_v1, %v3999_v1 }
 0x15e   :  { %v1746_v62 = vadd.f32 %v1745_v12, %v1744_v0  ;;  %v1695_v61 = vmul.f32 %v4009_v27, %v4009_v27  ;;  %v1796_v48 = vmul.f32 %v4001_v50, %v4001_v50  ;;  %v1398_v55 = vadd.f32 %v1367_v8, %v4011_v2  ;;  %v5551_v50 = vld [vmem:[#allocation58_spill] sm:$0xff] }
 0x15f   :  { %v1845_v54 = vadd.f32 %v1844_v40, %v1843_v11  ;;  %v1794_v29 = vmul.f32 %v4011_v2, %v4011_v2  ;;  %v1450_v16 = vadd.f32 %v1449_v19, %v1448_v60  ;;  %v1370_v44 = vadd.f32 %v4017_v13, %v3654_v37 }
 0x160   :  { %v1748_v57 = vadd.f32 %v1747_v10, %v1746_v62  ;;  %v1749_v12 = vsel %vm1405_vm3, %v1695_v61, 0.0  ;;  %v1453_v26 = vsel %vm1405_vm3, %v1398_v55, 0.0  ;;  %v1698_v0 = vmul.f32 %v4017_v13, %v4017_v13 }
 0x161   :  { %v1847_v58 = vadd.f32 %v1846_v39, %v1845_v54  ;;  %v1848_v40 = vsel %vm1405_vm3, %v1794_v29, 0.0  ;;  %v1753_v15 = vsel %vm1405_vm3, %v1697_v52, 0.0  ;;  %v1452_v5 = vadd.f32 %v1451_v53, %v1450_v16 }
 0x162   :  { %v1750_v8 = vadd.f32 %v1749_v12, %v1748_v57  ;;  %v1401_v19 = vadd.f32 %v4019_v7, %v1370_v44  ;;  %v1797_v11 = vmul.f32 %v4019_v7, %v4019_v7  ;;  %v1368_v37 = vadd.f32 %v3664_v30, %v4026_v56  ;;  %v5550_v7 = vld [vmem:[#allocation56_spill] sm:$0xff] }
 0x163   :  { %v1849_v10 = vadd.f32 %v1848_v40, %v1847_v58  ;;  %v1696_v39 = vmul.f32 %v4026_v56, %v4026_v56  ;;  %v1457_v62 = vsel %vm1405_vm3, %v1400_v59, 0.0  ;;  %v1852_v60 = vsel %vm1405_vm3, %v1796_v48, 0.0 }
 0x164   :  { %v1454_v61 = vadd.f32 %v1453_v26, %v1452_v5  ;;  %v1795_v53 = vmul.f32 %v4028_v28, %v4028_v28  ;;  %v1755_v52 = vsel %vm1405_vm3, %v1698_v0, 0.0  ;;  %v1399_v55 = vadd.f32 %v1368_v37, %v4028_v28 }
 0x165   :  { %v1751_v54 = vsel %vm1405_vm3, %v1696_v39, 0.0  ;;  %v1373_v30 = vadd.f32 %v4049_v45, %v3681_v23  ;;  %v1459_v29 = vsel %vm1405_vm3, %v1401_v19, 0.0  ;;  %v1371_v48 = vadd.f32 %v3691_v35, %v4057_v25 }
 0x166   :  { %v1752_v16 = vadd.f32 %v1751_v54, %v1750_v8  ;;  %v1850_v59 = vsel %vm1405_vm3, %v1795_v53, 0.0  ;;  %v1854_v57 = vsel %vm1405_vm3, %v1797_v11, 0.0  ;;  %v1455_v12 = vsel %vm1405_vm3, %v1399_v55, 0.0 }
 0x167   :  { %v1851_v44 = vadd.f32 %v1850_v59, %v1849_v10  ;;  %v1404_v26 = vadd.f32 %v4051_v41, %v1373_v30  ;;  %v1456_v40 = vadd.f32 %v1455_v12, %v1454_v61  ;;  %v1701_v23 = vmul.f32 %v4049_v45, %v4049_v45  ;;  %v5556_v45 = vld [vmem:[#allocation4_spill] sm:$0xff] }
 0x168   :  { %v1754_v58 = vadd.f32 %v1753_v15, %v1752_v16  ;;  %v1699_v0 = vmul.f32 %v4057_v25, %v4057_v25  ;;  %v1800_v5 = vmul.f32 %v4051_v41, %v4051_v41  ;;  %v1402_v35 = vadd.f32 %v1371_v48, %v4059_v33  ;;  %v5547_v41 = vld [vmem:[#allocation52_spill] sm:$0xff]  ;;  %v5558_v25 = vld [vmem:[#allocation13_spill] sm:$0xff] }
 0x169   :  { %v1853_v8 = vadd.f32 %v1852_v60, %v1851_v44  ;;  %v1798_v19 = vmul.f32 %v4059_v33, %v4059_v33  ;;  %v1458_v10 = vadd.f32 %v1457_v62, %v1456_v40  ;;  %v1372_v37 = vadd.f32 %v3710_v21, %v4069_v36 }
 0x16a   :  { %v1756_v11 = vadd.f32 %v1755_v52, %v1754_v58  ;;  %v1757_v15 = vsel %vm1405_vm3, %v1699_v0, 0.0  ;;  %v1461_v39 = vsel %vm1405_vm3, %v1402_v35, 0.0  ;;  %v1700_v53 = vmul.f32 %v4069_v36, %v4069_v36  ;;  %v5557_v36 = vld [vmem:[#allocation9_spill] sm:$0xff] }
 0x16b   :  { %v1855_v61 = vadd.f32 %v1854_v57, %v1853_v8  ;;  %v1856_v60 = vsel %vm1405_vm3, %v1798_v19, 0.0  ;;  %v1460_v55 = vadd.f32 %v1459_v29, %v1458_v10  ;;  %v1403_v30 = vadd.f32 %v1372_v37, %v4071_v3 }
 0x16c   :  { %v1758_v54 = vadd.f32 %v1757_v15, %v1756_v11  ;;  %v1799_v62 = vmul.f32 %v4071_v3, %v4071_v3  ;;  %v1759_v16 = vsel %vm1405_vm3, %v1700_v53, 0.0  ;;  %v1761_v12 = vsel %vm1465_vm4, %v1701_v23, 0.0 }
 0x16d   :  { %v1857_v52 = vadd.f32 %v1856_v60, %v1855_v61  ;;  %v1462_v59 = vadd.f32 %v1461_v39, %v1460_v55  ;;  %v1463_v48 = vsel %vm1405_vm3, %v1403_v30, 0.0  ;;  %v1860_v58 = vsel %vm1465_vm4, %v1800_v5, 0.0 }
 0x16e   :  { %v1760_v21 = vadd.f32 %v1759_v16, %v1758_v54  ;;  %v1858_v57 = vsel %vm1405_vm3, %v1799_v62, 0.0  ;;  %v1466_v0 = vsel %vm1465_vm4, %v1404_v26, 0.0 }
 0x16f   :  { %v1859_v44 = vadd.f32 %v1858_v57, %v1857_v52  ;;  %v1464_v40 = vadd.f32 %v1463_v48, %v1462_v59 }
 0x170   :  { %v1762_v29 = vadd.f32 %v1761_v12, %v1760_v21 }
 0x171   :  { %v1861_v8 = vadd.f32 %v1860_v58, %v1859_v44  ;;  %v1467_v19 = vadd.f32 %v1466_v0, %v1464_v40  ;;  %v1873_v0 = vld [vmem:[%s5221_s2] sm:$0x1] }
 0x172   :  { %v1763_v35 = vrot.slane %v1762_v29, 4 }
 0x173   :  { %v1862_v10 = vrot.slane %v1861_v8, 4  ;;  %v1468_v15 = vrot.slane %v1467_v19, 4 }
 0x174   :  { %v1764_v11 = vadd.f32 %v1763_v35, %v1762_v29  ;;  %v1881_v29 = vlaneseq }
 0x175   :  { %v1863_v37 = vadd.f32 %v1862_v10, %v1861_v8  ;;  %v1469_v61 = vadd.f32 %v1468_v15, %v1467_v19 }
 0x176   :  { %v1765_v39 = vrot.slane %v1764_v11, 2  ;;  %v1882_v40 = vshrl.u32 %v1881_v29, 7 }
 0x177   :  { %v1864_v60 = vrot.slane %v1863_v37, 2  ;;  %v1470_v54 = vrot.slane %v1469_v61, 2 }
 0x178   :  { %v1766_v53 = vadd.f32 %v1765_v39, %v1764_v11  ;;  %v1883_v8 = vsub.s32 0, %v1882_v40  ;;  %v5537_v40 = vld [vmem:[#allocation26_spill] sm:$0xff] }
 0x179   :  { %v1865_v23 = vadd.f32 %v1864_v60, %v1863_v37  ;;  %v1471_v30 = vadd.f32 %v1470_v54, %v1469_v61 }
 0x17a   :  { %v1767_v55 = vrot.slane %v1766_v53, 1 }
 0x17b   :  { %v1866_v5 = vrot.slane %v1865_v23, 1  ;;  %v1472_v52 = vrot.slane %v1471_v30, 1 }
 0x17c   :  { %v1768_v62 = vadd.f32 %v1767_v55, %v1766_v53  ;;  %v5526_v53 = vld [vmem:[#allocation8_spill] sm:$0xff] }
 0x17d   :  { %v1473_v16 = vadd.f32 %v1472_v52, %v1471_v30  ;;  %v1867_v59 = vadd.f32 %v1866_v5, %v1865_v23  ;;  %v5527_v23 = vld [vmem:[#allocation12_spill] sm:$0xff]  ;;  %v5528_v30 = vld [vmem:[#allocation6_spill] sm:$0xff] }
 0x17e   :  { %v1769_v26 = vadd.f32 %v1768_v62, %v3810_v43  ;;  %v1877_v43 = vld [vmem:[%s5222_s3] sm:$0x1]  ;;  %v5530_v52 = vld [vmem:[#allocation16_spill] sm:$0xff] }
 0x17f   :  { %v1869_v48 = vmul.f32 0.0010330578, %v1473_v16 }
 0x180   :  { %v1868_v21 = vadd.f32 %v1867_v59, %v1769_v26  ;;  %v5531_v26 = vld [vmem:[#allocation20_spill] sm:$0xff]  ;;  %v5533_v59 = vld [vmem:[#allocation18_spill] sm:$0xff] }
 0x181   :  { %v1871_v12 = vmul.f32 %v1869_v48, %v1869_v48 }
 0x182   :  { %v1870_v57 = vmul.f32 0.0010330578, %v1868_v21 }
 0x184   :  { %v1872_v44 = vsub.f32 %v1870_v57, %v1871_v12  ;;  %v5535_v12 = vld [vmem:[#allocation28_spill] sm:$0xff] }
 0x186   :  { %v1874_v58 = vadd.f32 1e-05, %v1872_v44 }
 0x188   :  { %2994 = vrsqrt.f32 %v1874_v58  ;;  %v5536_v58 = vld [vmem:[#allocation22_spill] sm:$0xff] }
 0x192   :  { %v2995_v35 = vpop.eup %2994 }
 0x193   :  { %v1876_v19 = vmul.f32 %v2995_v35, %v1873_v0  ;;  %v5538_v35 = vld [vmem:[#allocation32_spill] sm:$0xff] }
 0x195   :  { %v1878_v10 = vmul.f32 %v1876_v19, %v1869_v48  ;;  %v4161_v11 = vrot.slane %v1876_v19, %v1883_v8  ;;  %v5534_v48 = vld [vmem:[#allocation24_spill] sm:$0xff] }
 0x197   :  { %v1879_v15 = vsub.f32 %v1877_v43, %v1878_v10  ;;  %v1886_v37 = vmul.f32 %v4161_v11, %v3292_v9  ;;  %v1887_v39 = vmul.f32 %v4161_v11, %v3312_v17  ;;  %v1888_v61 = vmul.f32 %v3284_v6, %v4161_v11  ;;  %v5529_v9 = vld [vmem:[#allocation10_spill] sm:$0xff]  ;;  %v5539_v43 = vld [vmem:[#allocation36_spill] sm:$0xff] }
 0x198   :  { %v1889_v60 = vmul.f32 %v3304_v14, %v4161_v11  ;;  %v1890_v54 = vmul.f32 %v4161_v11, %v5526_v53  ;;  %v1891_v55 = vmul.f32 %v4161_v11, %v5527_v23  ;;  %v1892_v5 = vmul.f32 %v5528_v30, %v4161_v11  ;;  %v5532_v14 = vld [vmem:[#allocation14_spill] sm:$0xff] }
 0x199   :  { %v1893_v62 = vmul.f32 %v5529_v9, %v4161_v11  ;;  %v1894_v17 = vmul.f32 %v4161_v11, %v5530_v52  ;;  %v1895_v6 = vmul.f32 %v4161_v11, %v5531_v26  ;;  %v1896_v16 = vmul.f32 %v5532_v14, %v4161_v11  ;;  %v5540_v53 = vld [vmem:[#allocation30_spill] sm:$0xff]  ;;  %v5542_v52 = vld [vmem:[#allocation40_spill] sm:$0xff] }
 0x19a   :  { %v1897_v21 = vmul.f32 %v5533_v59, %v4161_v11  ;;  %v1898_v57 = vmul.f32 %v4161_v11, %v5534_v48  ;;  %v1899_v44 = vmul.f32 %v4161_v11, %v5535_v12  ;;  %v1900_v29 = vmul.f32 %v5536_v58, %v4161_v11  ;;  %v5541_v30 = vld [vmem:[#allocation34_spill] sm:$0xff]  ;;  %v5543_v14 = vld [vmem:[#allocation44_spill] sm:$0xff] }
 0x19b   :  { %v1901_v0 = vmul.f32 %v5537_v40, %v4161_v11  ;;  %v1902_v19 = vmul.f32 %v4161_v11, %v5538_v35  ;;  %v1903_v10 = vmul.f32 %v4161_v11, %v5539_v43  ;;  %v1904_v23 = vmul.f32 %v5540_v53, %v4161_v11  ;;  %v5544_v48 = vld [vmem:[#allocation38_spill] sm:$0xff]  ;;  %v5546_v35 = vld [vmem:[#allocation48_spill] sm:$0xff] }
 0x19c   :  { %v1905_v9 = vmul.f32 %v5541_v30, %v4161_v11  ;;  %v1906_v26 = vmul.f32 %v4161_v11, %v5542_v52  ;;  %v1907_v59 = vmul.f32 %v4161_v11, %v5543_v14  ;;  %v1908_v12 = vmul.f32 %v5544_v48, %v4161_v11  ;;  %v5545_v58 = vld [vmem:[#allocation42_spill] sm:$0xff] }
 0x19d   :  { %v1909_v40 = vmul.f32 %v5545_v58, %v4161_v11  ;;  %v1910_v43 = vmul.f32 %v4161_v11, %v5546_v35  ;;  %v1911_v53 = vmul.f32 %v4161_v11, %v5547_v41  ;;  %v5548_v30 = vld [vmem:[#allocation46_spill] sm:$0xff]  ;;  %v1914_v14 = vmul.f32 %v4161_v11, %v5550_v7  ;;  %v5553_v35 = vld [vmem:[#allocation3_spill] sm:$0xff] }
 0x19e   :  { %v1912_v3 = vmul.f32 %v5548_v30, %v4161_v11  ;;  %v5549_v52 = vld [vmem:[#allocation50_spill] sm:$0xff]  ;;  %v1915_v48 = vmul.f32 %v4161_v11, %v5551_v50  ;;  %v4225_v2 = vrot.slane %v1879_v15, %v1883_v8  ;;  %v1954_v41 = vmul.f32 %v4161_v11, %v5553_v35  ;;  %v5559_v8 = vld [vmem:[#allocation7_spill] sm:$0xff] }
 0x19f   :  { %v1913_v33 = vmul.f32 %v5549_v52, %v4161_v11  ;;  %v5552_v58 = vld [vmem:[#allocation54_spill] sm:$0xff]  ;;  %v1955_v30 = vmul.f32 %v4161_v11, %v5554_v18  ;;  %v1956_v52 = vmul.f32 %v5555_v4, %v4161_v11  ;;  %v1957_v7 = vmul.f32 %v5556_v45, %v4161_v11 }
 0x1a0   :  { %v1916_v28 = vmul.f32 %v5552_v58, %v4161_v11  ;;  %v1958_v50 = vmul.f32 %v4161_v11, %v5557_v36  ;;  %v1959_v58 = vmul.f32 %v4161_v11, %v5558_v25  ;;  %v1960_v15 = vmul.f32 %v5559_v8, %v4161_v11 }
 0x1a1   :  { %v4242_v35 = vadd.f32 %v4225_v2, %v1886_v37  ;;  %v4245_v18 = vadd.f32 %v4225_v2, %v1887_v39  ;;  %v4248_v4 = vadd.f32 %v4225_v2, %v1888_v61  ;;  %v4251_v45 = vadd.f32 %v4225_v2, %v1889_v60 }
 0x1a2   :  { %v4254_v36 = vadd.f32 %v4225_v2, %v1890_v54  ;;  %v4257_v25 = vadd.f32 %v4225_v2, %v1891_v55  ;;  %v4260_v8 = vadd.f32 %v4225_v2, %v1892_v5  ;;  %v4263_v37 = vadd.f32 %v4225_v2, %v1893_v62 }
 0x1a3   :  { %5560 = vst [vmem:[#allocation8_spill] sm:$0xff] %v4242_v35  ;;  %5561 = vst [vmem:[#allocation12_spill] sm:$0xff] %v4245_v18  ;;  %v4266_v39 = vadd.f32 %v4225_v2, %v1894_v17  ;;  %v4269_v61 = vadd.f32 %v4225_v2, %v1895_v6  ;;  %v4272_v60 = vadd.f32 %v4225_v2, %v1896_v16  ;;  %v5712_v18 = vld [vmem:[#allocation107_spill] sm:$0xff] }
 0x1a4   :  { %5562 = vst [vmem:[#allocation6_spill] sm:$0xff] %v4248_v4  ;;  %5563 = vst [vmem:[#allocation10_spill] sm:$0xff] %v4251_v45  ;;  %v4275_v54 = vadd.f32 %v4225_v2, %v1897_v21  ;;  %v4278_v55 = vadd.f32 %v4225_v2, %v1898_v57  ;;  %v4281_v5 = vadd.f32 %v4225_v2, %v1899_v44  ;;  %v5708_v45 = vld [vmem:[#allocation99_spill] sm:$0xff] }
 0x1a5   :  { %5564 = vst [vmem:[#allocation16_spill] sm:$0xff] %v4254_v36  ;;  %5565 = vst [vmem:[#allocation20_spill] sm:$0xff] %v4257_v25  ;;  %v4284_v62 = vadd.f32 %v4225_v2, %v1900_v29  ;;  %v4287_v17 = vadd.f32 %v4225_v2, %v1901_v0  ;;  %v4290_v6 = vadd.f32 %v4225_v2, %v1902_v19  ;;  %v5704_v25 = vld [vmem:[#allocation91_spill] sm:$0xff] }
 0x1a6   :  { %5566 = vst [vmem:[#allocation14_spill] sm:$0xff] %v4260_v8  ;;  %5567 = vst [vmem:[#allocation18_spill] sm:$0xff] %v4263_v37  ;;  %v4293_v16 = vadd.f32 %v4225_v2, %v1903_v10  ;;  %v4296_v21 = vadd.f32 %v4225_v2, %v1904_v23  ;;  %v4299_v57 = vadd.f32 %v4225_v2, %v1905_v9  ;;  %v5700_v37 = vld [vmem:[#allocation83_spill] sm:$0xff] }
 0x1a7   :  { %5568 = vst [vmem:[#allocation24_spill] sm:$0xff] %v4266_v39  ;;  %5569 = vst [vmem:[#allocation28_spill] sm:$0xff] %v4269_v61  ;;  %v4302_v44 = vadd.f32 %v4225_v2, %v1906_v26  ;;  %v4305_v29 = vadd.f32 %v4225_v2, %v1907_v59  ;;  %v4308_v0 = vadd.f32 %v4225_v2, %v1908_v12 }
 0x1a8   :  { %5570 = vst [vmem:[#allocation22_spill] sm:$0xff] %v4272_v60  ;;  %5571 = vst [vmem:[#allocation26_spill] sm:$0xff] %v4275_v54  ;;  %v4311_v19 = vadd.f32 %v4225_v2, %v1909_v40  ;;  %v4314_v10 = vadd.f32 %v4225_v2, %v1910_v43  ;;  %v4317_v23 = vadd.f32 %v4225_v2, %v1911_v53  ;;  %v5591_v43 = vld [vmem:[#allocation11_spill] sm:$0xff]  ;;  %v5592_v53 = vld [vmem:[#allocation17_spill] sm:$0xff] }
 0x1a9   :  { %5572 = vst [vmem:[#allocation32_spill] sm:$0xff] %v4278_v55  ;;  %5573 = vst [vmem:[#allocation36_spill] sm:$0xff] %v4281_v5  ;;  %v4320_v9 = vadd.f32 %v4225_v2, %v1912_v3  ;;  %v4323_v26 = vadd.f32 %v4225_v2, %v1913_v33  ;;  %v4326_v59 = vadd.f32 %v4225_v2, %v1914_v14  ;;  %v5593_v3 = vld [vmem:[#allocation21_spill] sm:$0xff]  ;;  %v5594_v33 = vld [vmem:[#allocation15_spill] sm:$0xff] }
 0x1aa   :  { %5574 = vst [vmem:[#allocation30_spill] sm:$0xff] %v4284_v62  ;;  %5575 = vst [vmem:[#allocation34_spill] sm:$0xff] %v4287_v17  ;;  %v4329_v12 = vadd.f32 %v4225_v2, %v1915_v48  ;;  %v4332_v40 = vadd.f32 %v4225_v2, %v1916_v28  ;;  %v1961_v13 = vmul.f32 %v5591_v43, %v4161_v11  ;;  %v5595_v14 = vld [vmem:[#allocation19_spill] sm:$0xff]  ;;  %v5596_v48 = vld [vmem:[#allocation25_spill] sm:$0xff] }
 0x1ab   :  { %5576 = vst [vmem:[#allocation40_spill] sm:$0xff] %v4290_v6  ;;  %5577 = vst [vmem:[#allocation44_spill] sm:$0xff] %v4293_v16  ;;  %v1962_v1 = vmul.f32 %v4161_v11, %v5592_v53  ;;  %v1963_v56 = vmul.f32 %v4161_v11, %v5593_v3  ;;  %v1964_v27 = vmul.f32 %v5594_v33, %v4161_v11  ;;  %v5597_v28 = vld [vmem:[#allocation29_spill] sm:$0xff]  ;;  %v5598_v43 = vld [vmem:[#allocation23_spill] sm:$0xff] }
 0x1ac   :  { %5578 = vst [vmem:[#allocation38_spill] sm:$0xff] %v4296_v21  ;;  %5579 = vst [vmem:[#allocation42_spill] sm:$0xff] %v4299_v57  ;;  %v1965_v34 = vmul.f32 %v5595_v14, %v4161_v11  ;;  %v1966_v49 = vmul.f32 %v4161_v11, %v5596_v48  ;;  %v1967_v24 = vmul.f32 %v4161_v11, %v5597_v28  ;;  %v5599_v53 = vld [vmem:[#allocation27_spill] sm:$0xff]  ;;  %v5673_v16 = vld [vmem:[#allocation102_spill] sm:$0xff] }
 0x1ad   :  { %5580 = vst [vmem:[#allocation48_spill] sm:$0xff] %v4302_v44  ;;  %5581 = vst [vmem:[#allocation52_spill] sm:$0xff] %v4305_v29  ;;  %v1968_v51 = vmul.f32 %v5598_v43, %v4161_v11  ;;  %v1969_v42 = vmul.f32 %v5599_v53, %v4161_v11  ;;  %v1970_v3 = vmul.f32 %v4161_v11, %v5600_v20  ;;  %v5602_v14 = vld [vmem:[#allocation31_spill] sm:$0xff]  ;;  %v5669_v29 = vld [vmem:[#allocation94_spill] sm:$0xff] }
 0x1ae   :  { %5582 = vst [vmem:[#allocation46_spill] sm:$0xff] %v4308_v0  ;;  %5583 = vst [vmem:[#allocation50_spill] sm:$0xff] %v4311_v19  ;;  %v1971_v33 = vmul.f32 %v4161_v11, %v5601_v31  ;;  %v1972_v47 = vmul.f32 %v5602_v14, %v4161_v11  ;;  %v5603_v48 = vld [vmem:[#allocation35_spill] sm:$0xff]  ;;  %v1974_v28 = vmul.f32 %v4161_v11, %v5604_v32  ;;  %v5653_v19 = vld [vmem:[#allocation62_spill] sm:$0xff] }
 0x1af   :  { %5584 = vst [vmem:[#allocation56_spill] sm:$0xff] %v4314_v10  ;;  %5585 = vst [vmem:[#allocation58_spill] sm:$0xff] %v4317_v23  ;;  %v1973_v63 = vmul.f32 %v5603_v48, %v4161_v11  ;;  %v1975_v43 = vmul.f32 %v4161_v11, %v5605_v22  ;;  %v5606_v53 = vld [vmem:[#allocation39_spill] sm:$0xff]  ;;  %v5670_v44 = vld [vmem:[#allocation98_spill] sm:$0xff] }
 0x1b0   :  { %5586 = vst [vmem:[#allocation54_spill] sm:$0xff] %v4320_v9  ;;  %5587 = vst [vmem:[#allocation3_spill] sm:$0xff] %v4323_v26  ;;  %v1976_v38 = vmul.f32 %v5606_v53, %v4161_v11  ;;  %v5607_v20 = vld [vmem:[#allocation43_spill] sm:$0xff]  ;;  %v5612_v9 = vld [vmem:[#allocation57_spill] sm:$0xff] }
 0x1b1   :  { %5588 = vst [vmem:[#allocation5_spill] sm:$0xff] %v4326_v59  ;;  %5589 = vst [vmem:[#allocation2_spill] sm:$0xff] %v4329_v12  ;;  %v1977_v46 = vmul.f32 %v5607_v20, %v4161_v11  ;;  %v5609_v12 = vld [vmem:[#allocation53_spill] sm:$0xff]  ;;  %v5610_v48 = vld [vmem:[#allocation47_spill] sm:$0xff]  ;;  %v1982_v22 = vmul.f32 %v4161_v11, %v5612_v9  ;;  %v4395_v9 = vadd.f32 %v1958_v50, %v4225_v2 }
 0x1b2   :  { %5590 = vst [vmem:[#allocation4_spill] sm:$0xff] %v4332_v40  ;;  %v5608_v40 = vld [vmem:[#allocation49_spill] sm:$0xff]  ;;  %v1979_v14 = vmul.f32 %v4161_v11, %v5609_v12  ;;  %v1980_v59 = vmul.f32 %v5610_v48, %v4161_v11  ;;  %v5611_v32 = vld [vmem:[#allocation51_spill] sm:$0xff]  ;;  %v4386_v12 = vadd.f32 %v1955_v30, %v4225_v2  ;;  %v4389_v48 = vadd.f32 %v1956_v52, %v4225_v2  ;;  %v5677_v17 = vld [vmem:[#allocation110_spill] sm:$0xff] }
 0x1b3   :  { %v1978_v31 = vmul.f32 %v4161_v11, %v5608_v40  ;;  %v1981_v26 = vmul.f32 %v5611_v32, %v4161_v11  ;;  %v5613_v23 = vld [vmem:[#allocation59_spill] sm:$0xff]  ;;  %v4383_v40 = vadd.f32 %v1954_v41, %v4225_v2  ;;  %v4392_v32 = vadd.f32 %v1957_v7, %v4225_v2  ;;  %5619 = vst [vmem:[#allocation17_spill] sm:$0xff] %v4395_v9  ;;  %v5681_v5 = vld [vmem:[#allocation118_spill] sm:$0xff] }
 0x1b4   :  { %v1983_v53 = vmul.f32 %v4161_v11, %v5613_v23  ;;  %v5614_v20 = vld [vmem:[#allocation55_spill] sm:$0xff]  ;;  %5616 = vst [vmem:[#allocation13_spill] sm:$0xff] %v4386_v12  ;;  %5617 = vst [vmem:[#allocation7_spill] sm:$0xff] %v4389_v48  ;;  %v4398_v23 = vadd.f32 %v1959_v58, %v4225_v2  ;;  %v4404_v41 = vadd.f32 %v1961_v13, %v4225_v2 }
 0x1b5   :  { %v1984_v10 = vmul.f32 %v5614_v20, %v4161_v11  ;;  %5615 = vst [vmem:[#allocation9_spill] sm:$0xff] %v4383_v40  ;;  %5618 = vst [vmem:[#allocation11_spill] sm:$0xff] %v4392_v32  ;;  %v4401_v20 = vadd.f32 %v1960_v15, %v4225_v2  ;;  %v4407_v30 = vadd.f32 %v1962_v1, %v4225_v2  ;;  %v5707_v32 = vld [vmem:[#allocation95_spill] sm:$0xff] }
 0x1b6   :  { %5620 = vst [vmem:[#allocation21_spill] sm:$0xff] %v4398_v23  ;;  %5622 = vst [vmem:[#allocation19_spill] sm:$0xff] %v4404_v41  ;;  %v4410_v52 = vadd.f32 %v1963_v56, %v4225_v2  ;;  %v4413_v7 = vadd.f32 %v1964_v27, %v4225_v2  ;;  %v4416_v50 = vadd.f32 %v1965_v34, %v4225_v2  ;;  %v5699_v41 = vld [vmem:[#allocation79_spill] sm:$0xff] }
 0x1b7   :  { %5621 = vst [vmem:[#allocation15_spill] sm:$0xff] %v4401_v20  ;;  %5623 = vst [vmem:[#allocation25_spill] sm:$0xff] %v4407_v30  ;;  %v4419_v58 = vadd.f32 %v1966_v49, %v4225_v2  ;;  %v4422_v15 = vadd.f32 %v1967_v24, %v4225_v2  ;;  %v4425_v13 = vadd.f32 %v1968_v51, %v4225_v2  ;;  %v5703_v23 = vld [vmem:[#allocation87_spill] sm:$0xff] }
 0x1b8   :  { %5624 = vst [vmem:[#allocation29_spill] sm:$0xff] %v4410_v52  ;;  %5625 = vst [vmem:[#allocation23_spill] sm:$0xff] %v4413_v7  ;;  %v4428_v1 = vadd.f32 %v1969_v42, %v4225_v2  ;;  %v4431_v56 = vadd.f32 %v1970_v3, %v4225_v2  ;;  %v4434_v27 = vadd.f32 %v1971_v33, %v4225_v2  ;;  %v5711_v12 = vld [vmem:[#allocation103_spill] sm:$0xff] }
 0x1b9   :  { %5626 = vst [vmem:[#allocation27_spill] sm:$0xff] %v4416_v50  ;;  %5627 = vst [vmem:[#allocation33_spill] sm:$0xff] %v4419_v58  ;;  %v4437_v34 = vadd.f32 %v1972_v47, %v4225_v2  ;;  %v4440_v49 = vadd.f32 %v1973_v63, %v4225_v2  ;;  %v4443_v24 = vadd.f32 %v1974_v28, %v4225_v2  ;;  %v5682_v58 = vld [vmem:[#allocation120_spill] sm:$0xff] }
 0x1ba   :  { %5628 = vst [vmem:[#allocation37_spill] sm:$0xff] %v4422_v15  ;;  %5629 = vst [vmem:[#allocation31_spill] sm:$0xff] %v4425_v13  ;;  %v4446_v51 = vadd.f32 %v1975_v43, %v4225_v2  ;;  %v4449_v42 = vadd.f32 %v1976_v38, %v4225_v2  ;;  %v4452_v3 = vadd.f32 %v1977_v46, %v4225_v2  ;;  %v5678_v13 = vld [vmem:[#allocation114_spill] sm:$0xff] }
 0x1bb   :  { %5630 = vst [vmem:[#allocation35_spill] sm:$0xff] %v4428_v1  ;;  %5631 = vst [vmem:[#allocation41_spill] sm:$0xff] %v4431_v56  ;;  %v4455_v33 = vadd.f32 %v1978_v31, %v4225_v2  ;;  %v4458_v47 = vadd.f32 %v1979_v14, %v4225_v2  ;;  %v4461_v63 = vadd.f32 %v1980_v59, %v4225_v2  ;;  %v5662_v14 = vld [vmem:[#allocation82_spill] sm:$0xff] }
 0x1bc   :  { %5632 = vst [vmem:[#allocation45_spill] sm:$0xff] %v4434_v27  ;;  %5633 = vst [vmem:[#allocation39_spill] sm:$0xff] %v4437_v34  ;;  %v4464_v28 = vadd.f32 %v1981_v26, %v4225_v2  ;;  %v4467_v43 = vadd.f32 %v1982_v22, %v4225_v2  ;;  %v4470_v38 = vadd.f32 %v1983_v53, %v4225_v2  ;;  %v5666_v22 = vld [vmem:[#allocation90_spill] sm:$0xff] }
 0x1bd   :  { %5634 = vst [vmem:[#allocation43_spill] sm:$0xff] %v4440_v49  ;;  %5635 = vst [vmem:[#allocation49_spill] sm:$0xff] %v4443_v24  ;;  %v4473_v46 = vadd.f32 %v1984_v10, %v4225_v2  ;;  %v2047_v27 = vmul.f32 %v4161_v11, %v5653_v19  ;;  %v5655_v49 = vld [vmem:[#allocation60_spill] sm:$0xff]  ;;  %v5657_v10 = vld [vmem:[#allocation70_spill] sm:$0xff] }
 0x1be   :  { %5636 = vst [vmem:[#allocation53_spill] sm:$0xff] %v4446_v51  ;;  %5637 = vst [vmem:[#allocation47_spill] sm:$0xff] %v4449_v42  ;;  %v5656_v24 = vld [vmem:[#allocation64_spill] sm:$0xff]  ;;  %v2051_v51 = vmul.f32 %v4161_v11, %v5657_v10  ;;  %v5674_v56 = vld [vmem:[#allocation106_spill] sm:$0xff] }
 0x1bf   :  { %5638 = vst [vmem:[#allocation51_spill] sm:$0xff] %v4452_v3  ;;  %5639 = vst [vmem:[#allocation57_spill] sm:$0xff] %v4455_v33  ;;  %v5654_v33 = vld [vmem:[#allocation66_spill] sm:$0xff]  ;;  %v5659_v3 = vld [vmem:[#allocation68_spill] sm:$0xff] }
 0x1c0   :  { %5640 = vst [vmem:[#allocation59_spill] sm:$0xff] %v4458_v47  ;;  %5641 = vst [vmem:[#allocation55_spill] sm:$0xff] %v4461_v63  ;;  %v2048_v34 = vmul.f32 %v4161_v11, %v5654_v33  ;;  %v2049_v63 = vmul.f32 %v5655_v49, %v4161_v11  ;;  %v5660_v19 = vld [vmem:[#allocation72_spill] sm:$0xff]  ;;  %v2056_v49 = vmul.f32 %v4161_v11, %v5662_v14  ;;  %v5665_v47 = vld [vmem:[#allocation86_spill] sm:$0xff] }
 0x1c1   :  { %5642 = vst [vmem:[#allocation122_spill] sm:$0xff] %v4464_v28  ;;  %5643 = vst [vmem:[#allocation123_spill] sm:$0xff] %v4467_v43  ;;  %v2050_v28 = vmul.f32 %v5656_v24, %v4161_v11  ;;  %v5658_v43 = vld [vmem:[#allocation74_spill] sm:$0xff]  ;;  %v2054_v59 = vmul.f32 %v5660_v19, %v4161_v11  ;;  %v5663_v24 = vld [vmem:[#allocation76_spill] sm:$0xff]  ;;  %v2063_v14 = vmul.f32 %v4161_v11, %v5669_v29 }
 0x1c2   :  { %5644 = vst [vmem:[#allocation124_spill] sm:$0xff] %v4470_v38  ;;  %5645 = vst [vmem:[#allocation125_spill] sm:$0xff] %v4473_v46  ;;  %v2052_v42 = vmul.f32 %v4161_v11, %v5658_v43  ;;  %v2053_v46 = vmul.f32 %v5659_v3, %v4161_v11  ;;  %v5661_v38 = vld [vmem:[#allocation78_spill] sm:$0xff]  ;;  %v2057_v31 = vmul.f32 %v5663_v24, %v4161_v11  ;;  %v5664_v10 = vld [vmem:[#allocation80_spill] sm:$0xff] }
 0x1c3   :  { %v2055_v33 = vmul.f32 %v4161_v11, %v5661_v38  ;;  %v2058_v53 = vmul.f32 %v5664_v10, %v4161_v11  ;;  %v2059_v43 = vmul.f32 %v4161_v11, %v5665_v47  ;;  %v2060_v3 = vmul.f32 %v4161_v11, %v5666_v22  ;;  %v5667_v19 = vld [vmem:[#allocation84_spill] sm:$0xff] }
 0x1c4   :  { %v2061_v26 = vmul.f32 %v5667_v19, %v4161_v11  ;;  %v5668_v38 = vld [vmem:[#allocation88_spill] sm:$0xff]  ;;  %v2064_v24 = vmul.f32 %v4161_v11, %v5670_v44  ;;  %v2067_v22 = vmul.f32 %v4161_v11, %v5673_v16  ;;  %v2068_v19 = vmul.f32 %v4161_v11, %v5674_v56 }
 0x1c5   :  { %v2062_v0 = vmul.f32 %v5668_v38, %v4161_v11  ;;  %v5671_v10 = vld [vmem:[#allocation92_spill] sm:$0xff]  ;;  %v2071_v44 = vmul.f32 %v4161_v11, %v5677_v17  ;;  %v2075_v56 = vmul.f32 %v4161_v11, %v5681_v5  ;;  %v4600_v17 = vadd.f32 %v2047_v27, %v4225_v2 }
 0x1c6   :  { %v2065_v57 = vmul.f32 %v5671_v10, %v4161_v11  ;;  %v5672_v47 = vld [vmem:[#allocation96_spill] sm:$0xff]  ;;  %v2072_v10 = vmul.f32 %v4161_v11, %v5678_v13  ;;  %v4603_v13 = vadd.f32 %v2048_v34, %v4225_v2  ;;  %v4612_v5 = vadd.f32 %v2051_v51, %v4225_v2 }
 0x1c7   :  { %v2066_v21 = vmul.f32 %v5672_v47, %v4161_v11  ;;  %v5675_v38 = vld [vmem:[#allocation100_spill] sm:$0xff]  ;;  %v4621_v27 = vadd.f32 %v2054_v59, %v4225_v2  ;;  %v4624_v34 = vadd.f32 %v2055_v33, %v4225_v2  ;;  %v4633_v51 = vadd.f32 %v2058_v53, %v4225_v2 }
 0x1c8   :  { %v2069_v6 = vmul.f32 %v5675_v38, %v4161_v11  ;;  %v5676_v29 = vld [vmem:[#allocation104_spill] sm:$0xff]  ;;  %v2076_v38 = vmul.f32 %v4161_v11, %v5682_v58  ;;  %v4615_v58 = vadd.f32 %v2052_v42, %v4225_v2  ;;  %v4636_v42 = vadd.f32 %v2059_v43, %v4225_v2 }
 0x1c9   :  { %v2070_v1 = vmul.f32 %v5676_v29, %v4161_v11  ;;  %v5679_v47 = vld [vmem:[#allocation108_spill] sm:$0xff]  ;;  %v4642_v59 = vadd.f32 %v2061_v26, %v4225_v2  ;;  %v4645_v33 = vadd.f32 %v2062_v0, %v4225_v2  ;;  %v4654_v53 = vadd.f32 %v2065_v57, %v4225_v2 }
 0x1ca   :  { %v2073_v62 = vmul.f32 %v5679_v47, %v4161_v11  ;;  %v5680_v16 = vld [vmem:[#allocation112_spill] sm:$0xff]  ;;  %v4606_v47 = vadd.f32 %v2049_v63, %v4225_v2  ;;  %v4627_v63 = vadd.f32 %v2056_v49, %v4225_v2  ;;  %v4648_v49 = vadd.f32 %v2063_v14, %v4225_v2 }
 0x1cb   :  { %v2074_v15 = vmul.f32 %v5680_v16, %v4161_v11  ;;  %v5683_v29 = vld [vmem:[#allocation116_spill] sm:$0xff]  ;;  %v4609_v16 = vadd.f32 %v2050_v28, %v4225_v2  ;;  %v4630_v28 = vadd.f32 %v2057_v31, %v4225_v2  ;;  %v4651_v31 = vadd.f32 %v2064_v24, %v4225_v2 }
 0x1cc   :  { %v2077_v55 = vmul.f32 %v5683_v29, %v4161_v11  ;;  %v4618_v29 = vadd.f32 %v2053_v46, %v4225_v2  ;;  %v4639_v46 = vadd.f32 %v2060_v3, %v4225_v2  ;;  %v4657_v43 = vadd.f32 %v2066_v21, %v4225_v2 }
 0x1cd   :  { %v4660_v3 = vadd.f32 %v2067_v22, %v4225_v2  ;;  %v4663_v26 = vadd.f32 %v2068_v19, %v4225_v2  ;;  %v4666_v0 = vadd.f32 %v2069_v6, %v4225_v2  ;;  %v4669_v14 = vadd.f32 %v2070_v1, %v4225_v2 }
 0x1ce   :  { %v4672_v24 = vadd.f32 %v2071_v44, %v4225_v2  ;;  %v4675_v57 = vadd.f32 %v2072_v10, %v4225_v2  ;;  %v4678_v21 = vadd.f32 %v2073_v62, %v4225_v2  ;;  %v4681_v22 = vadd.f32 %v2074_v15, %v4225_v2  ;;  %v5691_v44 = vld [vmem:[#allocation63_spill] sm:$0xff]  ;;  %v5693_v62 = vld [vmem:[#allocation61_spill] sm:$0xff] }
 0x1cf   :  { %v4684_v19 = vadd.f32 %v2075_v56, %v4225_v2  ;;  %v4687_v6 = vadd.f32 %v2076_v38, %v4225_v2  ;;  %v4690_v1 = vadd.f32 %v2077_v55, %v4225_v2  ;;  %v2109_v50 = vmul.f32 %v4161_v11, %v5691_v44  ;;  %v5692_v10 = vld [vmem:[#allocation67_spill] sm:$0xff]  ;;  %v5694_v15 = vld [vmem:[#allocation65_spill] sm:$0xff] }
 0x1d0   :  { %5684 = vst [vmem:[#allocation62_spill] sm:$0xff] %v4672_v24  ;;  %5685 = vst [vmem:[#allocation66_spill] sm:$0xff] %v4675_v57  ;;  %v2110_v54 = vmul.f32 %v4161_v11, %v5692_v10  ;;  %v2111_v7 = vmul.f32 %v5693_v62, %v4161_v11  ;;  %v2112_v60 = vmul.f32 %v5694_v15, %v4161_v11  ;;  %v5695_v56 = vld [vmem:[#allocation71_spill] sm:$0xff]  ;;  %v5697_v55 = vld [vmem:[#allocation69_spill] sm:$0xff] }
 0x1d1   :  { %5686 = vst [vmem:[#allocation60_spill] sm:$0xff] %v4678_v21  ;;  %5687 = vst [vmem:[#allocation64_spill] sm:$0xff] %v4681_v22  ;;  %v2113_v52 = vmul.f32 %v4161_v11, %v5695_v56  ;;  %v5696_v38 = vld [vmem:[#allocation75_spill] sm:$0xff]  ;;  %v2115_v30 = vmul.f32 %v5697_v55, %v4161_v11  ;;  %v5698_v44 = vld [vmem:[#allocation73_spill] sm:$0xff]  ;;  %v2117_v10 = vmul.f32 %v4161_v11, %v5699_v41 }
 0x1d2   :  { %5688 = vst [vmem:[#allocation70_spill] sm:$0xff] %v4684_v19  ;;  %5689 = vst [vmem:[#allocation74_spill] sm:$0xff] %v4687_v6  ;;  %v2114_v61 = vmul.f32 %v4161_v11, %v5696_v38  ;;  %v2116_v39 = vmul.f32 %v5698_v44, %v4161_v11  ;;  %v2118_v62 = vmul.f32 %v4161_v11, %v5700_v37  ;;  %v5701_v15 = vld [vmem:[#allocation77_spill] sm:$0xff]  ;;  %v5716_v6 = vld [vmem:[#allocation115_spill] sm:$0xff] }
 0x1d3   :  { %5690 = vst [vmem:[#allocation68_spill] sm:$0xff] %v4690_v1  ;;  %v2119_v20 = vmul.f32 %v5701_v15, %v4161_v11  ;;  %v5702_v56 = vld [vmem:[#allocation81_spill] sm:$0xff]  ;;  %v2121_v38 = vmul.f32 %v4161_v11, %v5703_v23  ;;  %v2122_v55 = vmul.f32 %v4161_v11, %v5704_v25  ;;  %v2125_v37 = vmul.f32 %v4161_v11, %v5707_v32  ;;  %v5715_v1 = vld [vmem:[#allocation111_spill] sm:$0xff] }
 0x1d4   :  { %v2120_v8 = vmul.f32 %v5702_v56, %v4161_v11  ;;  %v5705_v44 = vld [vmem:[#allocation85_spill] sm:$0xff]  ;;  %v2126_v15 = vmul.f32 %v4161_v11, %v5708_v45  ;;  %v2129_v25 = vmul.f32 %v4161_v11, %v5711_v12  ;;  %v2133_v45 = vmul.f32 %v4161_v11, %v5715_v1  ;;  %v5719_v21 = vld [vmem:[#allocation119_spill] sm:$0xff] }
 0x1d5   :  { %v2123_v9 = vmul.f32 %v5705_v44, %v4161_v11  ;;  %v5706_v41 = vld [vmem:[#allocation89_spill] sm:$0xff]  ;;  %v2130_v44 = vmul.f32 %v4161_v11, %v5712_v18  ;;  %v2137_v18 = vmul.f32 %v4161_v11, %v5719_v21  ;;  %v4755_v1 = vadd.f32 %v2109_v50, %v4225_v2 }
 0x1d6   :  { %v2124_v36 = vmul.f32 %v5706_v41, %v4161_v11  ;;  %v5709_v56 = vld [vmem:[#allocation93_spill] sm:$0xff]  ;;  %v4767_v21 = vadd.f32 %v2113_v52, %v4225_v2  ;;  %v4776_v50 = vadd.f32 %v2116_v39, %v4225_v2  ;;  %v4788_v52 = vadd.f32 %v2120_v8, %v4225_v2 }
 0x1d7   :  { %v2127_v48 = vmul.f32 %v5709_v56, %v4161_v11  ;;  %v5710_v23 = vld [vmem:[#allocation97_spill] sm:$0xff]  ;;  %v2134_v56 = vmul.f32 %v4161_v11, %v5716_v6  ;;  %v4758_v6 = vadd.f32 %v2110_v54, %v4225_v2  ;;  %v4779_v54 = vadd.f32 %v2117_v10, %v4225_v2 }
 0x1d8   :  { %v2128_v4 = vmul.f32 %v5710_v23, %v4161_v11  ;;  %v5713_v41 = vld [vmem:[#allocation101_spill] sm:$0xff]  ;;  %v4797_v39 = vadd.f32 %v2123_v9, %v4225_v2  ;;  %v4800_v10 = vadd.f32 %v2124_v36, %v4225_v2  ;;  %v4818_v9 = vadd.f32 %v2130_v44, %v4225_v2 }
 0x1d9   :  { %v2131_v40 = vmul.f32 %v5713_v41, %v4161_v11  ;;  %v5714_v32 = vld [vmem:[#allocation105_spill] sm:$0xff]  ;;  %v4809_v8 = vadd.f32 %v2127_v48, %v4225_v2  ;;  %v4830_v48 = vadd.f32 %v2134_v56, %v4225_v2  ;;  %v4839_v44 = vadd.f32 %v2137_v18, %v4225_v2 }
 0x1da   :  { %v2132_v35 = vmul.f32 %v5714_v32, %v4161_v11  ;;  %v5717_v23 = vld [vmem:[#allocation109_spill] sm:$0xff]  ;;  %v2172_v56 = vmax.f32 %v4603_v13, %v4758_v6  ;;  %v2175_v18 = vmax.f32 %v4612_v5, %v4767_v21  ;;  %v2179_v13 = vmax.f32 %v4624_v34, %v4779_v54 }
 0x1db   :  { %v2135_v19 = vmul.f32 %v5717_v23, %v4161_v11  ;;  %v5718_v12 = vld [vmem:[#allocation113_spill] sm:$0xff]  ;;  %v4761_v23 = vadd.f32 %v2111_v7, %v4225_v2  ;;  %v4782_v7 = vadd.f32 %v2118_v62, %v4225_v2  ;;  %v4803_v62 = vadd.f32 %v2125_v37, %v4225_v2 }
 0x1dc   :  { %v2136_v22 = vmul.f32 %v5718_v12, %v4161_v11  ;;  %v5720_v57 = vld [vmem:[#allocation121_spill] sm:$0xff]  ;;  %v4764_v12 = vadd.f32 %v2112_v60, %v4225_v2  ;;  %v4785_v60 = vadd.f32 %v2119_v20, %v4225_v2  ;;  %v4806_v20 = vadd.f32 %v2126_v15, %v4225_v2 }
 0x1dd   :  { %v2138_v41 = vmul.f32 %v4161_v11, %v5720_v57  ;;  %v5721_v32 = vld [vmem:[#allocation117_spill] sm:$0xff]  ;;  %v4770_v57 = vadd.f32 %v2114_v61, %v4225_v2  ;;  %v4791_v61 = vadd.f32 %v2121_v38, %v4225_v2  ;;  %v4812_v38 = vadd.f32 %v2128_v4, %v4225_v2 }
 0x1de   :  { %v2139_v24 = vmul.f32 %v5721_v32, %v4161_v11  ;;  %v4773_v11 = vadd.f32 %v2115_v30, %v4225_v2  ;;  %v4794_v30 = vadd.f32 %v2122_v55, %v4225_v2  ;;  %v4815_v55 = vadd.f32 %v2129_v25, %v4225_v2 }
 0x1df   :  { %v4821_v36 = vadd.f32 %v2131_v40, %v4225_v2  ;;  %v4824_v37 = vadd.f32 %v2132_v35, %v4225_v2  ;;  %v4827_v15 = vadd.f32 %v2133_v45, %v4225_v2  ;;  %v4833_v4 = vadd.f32 %v2135_v19, %v4225_v2 }
 0x1e0   :  { %v4836_v25 = vadd.f32 %v2136_v22, %v4225_v2  ;;  %v4842_v40 = vadd.f32 %v2138_v41, %v4225_v2  ;;  %v4845_v35 = vadd.f32 %v2139_v24, %v4225_v2  ;;  %v2171_v45 = vmax.f32 %v4600_v17, %v4755_v1 }
 0x1e1   :  { %v2173_v19 = vmax.f32 %v4606_v47, %v4761_v23  ;;  %v2174_v22 = vmax.f32 %v4609_v16, %v4764_v12  ;;  %v2176_v41 = vmax.f32 %v4615_v58, %v4770_v57  ;;  %v2177_v2 = vmax.f32 %v4618_v29, %v4773_v11  ;;  %v5729_v57 = vld [vmem:[#allocation8_spill] sm:$0xff]  ;;  %v5730_v11 = vld [vmem:[#allocation9_spill] sm:$0xff] }
 0x1e2   :  { %v2178_v17 = vmax.f32 %v4621_v27, %v4776_v50  ;;  %v2180_v47 = vmax.f32 %v4627_v63, %v4782_v7  ;;  %v2181_v16 = vmax.f32 %v4630_v28, %v4785_v60  ;;  %v2182_v5 = vmax.f32 %v4633_v51, %v4788_v52  ;;  %v5732_v7 = vld [vmem:[#allocation12_spill] sm:$0xff]  ;;  %v5733_v60 = vld [vmem:[#allocation13_spill] sm:$0xff] }
 0x1e3   :  { %v2183_v58 = vmax.f32 %v4636_v42, %v4791_v61  ;;  %v2184_v29 = vmax.f32 %v4639_v46, %v4794_v30  ;;  %v2185_v27 = vmax.f32 %v4642_v59, %v4797_v39  ;;  %v2186_v34 = vmax.f32 %v4645_v33, %v4800_v10  ;;  %v5735_v30 = vld [vmem:[#allocation6_spill] sm:$0xff]  ;;  %v5736_v39 = vld [vmem:[#allocation7_spill] sm:$0xff] }
 0x1e4   :  { %v2187_v63 = vmax.f32 %v4648_v49, %v4803_v62  ;;  %v2188_v28 = vmax.f32 %v4651_v31, %v4806_v20  ;;  %v2189_v51 = vmax.f32 %v4654_v53, %v4809_v8  ;;  %v2190_v42 = vmax.f32 %v4657_v43, %v4812_v38  ;;  %v5722_v31 = vld [vmem:[#allocation62_spill] sm:$0xff]  ;;  %v5724_v43 = vld [vmem:[#allocation60_spill] sm:$0xff]  ;;  %v5739_v8 = vld [vmem:[#allocation11_spill] sm:$0xff] }
 0x1e5   :  { %v2191_v46 = vmax.f32 %v4660_v3, %v4815_v55  ;;  %v2192_v59 = vmax.f32 %v4663_v26, %v4818_v9  ;;  %v2193_v33 = vmax.f32 %v4666_v0, %v4821_v36  ;;  %v2194_v49 = vmax.f32 %v4669_v14, %v4824_v37  ;;  %v5723_v53 = vld [vmem:[#allocation66_spill] sm:$0xff]  ;;  %v5725_v3 = vld [vmem:[#allocation64_spill] sm:$0xff]  ;;  %v5742_v36 = vld [vmem:[#allocation17_spill] sm:$0xff] }
 0x1e6   :  { %v2195_v24 = vmax.f32 %v5722_v31, %v4827_v15  ;;  %v2196_v32 = vmax.f32 %v5723_v53, %v4830_v48  ;;  %v2197_v1 = vmax.f32 %v5724_v43, %v4833_v4  ;;  %v2198_v6 = vmax.f32 %v5725_v3, %v4836_v25  ;;  %v5726_v26 = vld [vmem:[#allocation70_spill] sm:$0xff]  ;;  %v5728_v14 = vld [vmem:[#allocation68_spill] sm:$0xff]  ;;  %v5745_v4 = vld [vmem:[#allocation21_spill] sm:$0xff] }
 0x1e7   :  { %v2199_v23 = vmax.f32 %v5726_v26, %v4839_v44  ;;  %v5727_v0 = vld [vmem:[#allocation74_spill] sm:$0xff]  ;;  %v2201_v21 = vmax.f32 %v5728_v14, %v4845_v35  ;;  %v5731_v50 = vmax.f32 %v5729_v57, %v5730_v11  ;;  %v5734_v52 = vmax.f32 %v5732_v7, %v5733_v60  ;;  %v5741_v9 = vld [vmem:[#allocation16_spill] sm:$0xff]  ;;  %v5748_v35 = vld [vmem:[#allocation15_spill] sm:$0xff] }
 0x1e8   :  { %v2200_v12 = vmax.f32 %v5727_v0, %v4842_v40  ;;  %v5737_v10 = vmax.f32 %v5735_v30, %v5736_v39  ;;  %v5738_v20 = vld [vmem:[#allocation10_spill] sm:$0xff]  ;;  %v5743_v37 = vmax.f32 %v5741_v9, %v5742_v36  ;;  %v5744_v48 = vld [vmem:[#allocation20_spill] sm:$0xff]  ;;  %v5751_v31 = vld [vmem:[#allocation19_spill] sm:$0xff] }
 0x1e9   :  { %v4912_v54 = vmax.f32 %v5731_v50, %v2171_v45  ;;  %v4917_v61 = vmax.f32 %v5734_v52, %v2172_v56  ;;  %v5740_v38 = vmax.f32 %v5738_v20, %v5739_v8  ;;  %v5746_v25 = vmax.f32 %v5744_v48, %v5745_v4  ;;  %v5747_v40 = vld [vmem:[#allocation14_spill] sm:$0xff]  ;;  %v5753_v43 = vld [vmem:[#allocation24_spill] sm:$0xff]  ;;  %v5754_v3 = vld [vmem:[#allocation25_spill] sm:$0xff] }
 0x1ea   :  { %v4922_v62 = vmax.f32 %v5737_v10, %v2173_v19  ;;  %v4932_v15 = vmax.f32 %v5743_v37, %v2175_v18  ;;  %v5749_v45 = vmax.f32 %v5747_v40, %v5748_v35  ;;  %v5750_v19 = vld [vmem:[#allocation18_spill] sm:$0xff]  ;;  %v5755_v26 = vmax.f32 %v5753_v43, %v5754_v3  ;;  %v5756_v0 = vld [vmem:[#allocation28_spill] sm:$0xff]  ;;  %v5757_v14 = vld [vmem:[#allocation29_spill] sm:$0xff] }
 0x1eb   :  { %v4927_v55 = vmax.f32 %v5740_v38, %v2174_v22  ;;  %v4937_v44 = vmax.f32 %v5746_v25, %v2176_v41  ;;  %v5752_v53 = vmax.f32 %v5750_v19, %v5751_v31  ;;  %v5758_v57 = vmax.f32 %v5756_v0, %v5757_v14  ;;  %v5759_v11 = vld [vmem:[#allocation22_spill] sm:$0xff]  ;;  %v5760_v50 = vld [vmem:[#allocation23_spill] sm:$0xff]  ;;  %v5765_v39 = vld [vmem:[#allocation32_spill] sm:$0xff] }
 0x1ec   :  { %v4942_v56 = vmax.f32 %v5749_v45, %v2177_v2  ;;  %v4952_v18 = vmax.f32 %v5755_v26, %v2179_v13  ;;  %v5761_v7 = vmax.f32 %v5759_v11, %v5760_v50  ;;  %v5762_v60 = vld [vmem:[#allocation26_spill] sm:$0xff]  ;;  %v5763_v52 = vld [vmem:[#allocation27_spill] sm:$0xff]  ;;  %v5766_v10 = vld [vmem:[#allocation33_spill] sm:$0xff] }
 0x1ed   :  { %v4947_v22 = vmax.f32 %v5752_v53, %v2178_v17  ;;  %v4957_v41 = vmax.f32 %v5758_v57, %v2180_v47  ;;  %v5764_v30 = vmax.f32 %v5762_v60, %v5763_v52  ;;  %v5767_v20 = vmax.f32 %v5765_v39, %v5766_v10  ;;  %v5768_v8 = vld [vmem:[#allocation36_spill] sm:$0xff]  ;;  %v5769_v38 = vld [vmem:[#allocation37_spill] sm:$0xff]  ;;  %v5771_v36 = vld [vmem:[#allocation30_spill] sm:$0xff] }
 0x1ee   :  { %v4962_v2 = vmax.f32 %v5761_v7, %v2181_v16  ;;  %v5770_v9 = vmax.f32 %v5768_v8, %v5769_v38  ;;  %v5772_v37 = vld [vmem:[#allocation31_spill] sm:$0xff]  ;;  %v5774_v4 = vld [vmem:[#allocation34_spill] sm:$0xff]  ;;  %v5777_v35 = vld [vmem:[#allocation40_spill] sm:$0xff] }
 0x1ef   :  { %v4967_v17 = vmax.f32 %v5764_v30, %v2182_v5  ;;  %v4972_v13 = vmax.f32 %v5767_v20, %v2183_v58  ;;  %v5773_v48 = vmax.f32 %v5771_v36, %v5772_v37  ;;  %v5775_v25 = vld [vmem:[#allocation35_spill] sm:$0xff]  ;;  %v5778_v45 = vld [vmem:[#allocation41_spill] sm:$0xff]  ;;  %v5780_v31 = vld [vmem:[#allocation44_spill] sm:$0xff] }
 0x1f0   :  { %v4977_v47 = vmax.f32 %v5770_v9, %v2184_v29  ;;  %v5776_v40 = vmax.f32 %v5774_v4, %v5775_v25  ;;  %v5779_v19 = vmax.f32 %v5777_v35, %v5778_v45  ;;  %v5781_v53 = vld [vmem:[#allocation45_spill] sm:$0xff]  ;;  %v5783_v3 = vld [vmem:[#allocation38_spill] sm:$0xff]  ;;  %v5784_v26 = vld [vmem:[#allocation39_spill] sm:$0xff] }
 0x1f1   :  { %v4982_v16 = vmax.f32 %v5773_v48, %v2185_v27  ;;  %v5782_v43 = vmax.f32 %v5780_v31, %v5781_v53  ;;  %v5785_v0 = vmax.f32 %v5783_v3, %v5784_v26  ;;  %v5786_v14 = vld [vmem:[#allocation42_spill] sm:$0xff]  ;;  %v5787_v57 = vld [vmem:[#allocation43_spill] sm:$0xff]  ;;  %v5789_v50 = vld [vmem:[#allocation48_spill] sm:$0xff] }
 0x1f2   :  { %v4987_v5 = vmax.f32 %v5776_v40, %v2186_v34  ;;  %v4992_v58 = vmax.f32 %v5779_v19, %v2187_v63  ;;  %v5788_v11 = vmax.f32 %v5786_v14, %v5787_v57  ;;  %v5790_v7 = vld [vmem:[#allocation49_spill] sm:$0xff]  ;;  %v5792_v52 = vld [vmem:[#allocation52_spill] sm:$0xff]  ;;  %v5795_v10 = vld [vmem:[#allocation46_spill] sm:$0xff] }
 0x1f3   :  { %v4997_v29 = vmax.f32 %v5782_v43, %v2188_v28  ;;  %v5002_v27 = vmax.f32 %v5785_v0, %v2189_v51  ;;  %v5791_v60 = vmax.f32 %v5789_v50, %v5790_v7  ;;  %v5793_v30 = vld [vmem:[#allocation53_spill] sm:$0xff]  ;;  %v5796_v20 = vld [vmem:[#allocation47_spill] sm:$0xff]  ;;  %v5798_v38 = vld [vmem:[#allocation50_spill] sm:$0xff] }
 0x1f4   :  { %v5007_v34 = vmax.f32 %v5788_v11, %v2190_v42  ;;  %v5794_v39 = vmax.f32 %v5792_v52, %v5793_v30  ;;  %v5797_v8 = vmax.f32 %v5795_v10, %v5796_v20  ;;  %v5799_v9 = vld [vmem:[#allocation51_spill] sm:$0xff]  ;;  %v5801_v37 = vld [vmem:[#allocation56_spill] sm:$0xff]  ;;  %v5802_v48 = vld [vmem:[#allocation57_spill] sm:$0xff]  ;;  %v2233_v30 = vmax.f32 %v4912_v54, 0.0 }
 0x1f5   :  { %v5012_v63 = vmax.f32 %v5791_v60, %v2191_v46  ;;  %v5800_v36 = vmax.f32 %v5798_v38, %v5799_v9  ;;  %v5803_v4 = vmax.f32 %v5801_v37, %v5802_v48  ;;  %v5804_v25 = vld [vmem:[#allocation58_spill] sm:$0xff]  ;;  %v5805_v40 = vld [vmem:[#allocation59_spill] sm:$0xff]  ;;  %v5813_v26 = vld [vmem:[#allocation5_spill] sm:$0xff]  ;;  %v2236_v10 = vmax.f32 %v4927_v55, 0.0 }
 0x1f6   :  { %v5017_v28 = vmax.f32 %v5794_v39, %v2192_v59  ;;  %v5022_v51 = vmax.f32 %v5797_v8, %v2193_v33  ;;  %v5806_v35 = vmax.f32 %v5804_v25, %v5805_v40  ;;  %v5807_v45 = vld [vmem:[#allocation54_spill] sm:$0xff]  ;;  %v5808_v19 = vld [vmem:[#allocation55_spill] sm:$0xff]  ;;  %v5817_v11 = vld [vmem:[#allocation124_spill] sm:$0xff]  ;;  %v2235_v39 = vmax.f32 %v4922_v62, 0.0 }
 0x1f7   :  { %v5027_v42 = vmax.f32 %v5800_v36, %v2194_v49  ;;  %v5032_v46 = vmax.f32 %v5803_v4, %v2195_v24  ;;  %v5809_v31 = vmax.f32 %v5807_v45, %v5808_v19  ;;  %v5810_v53 = vld [vmem:[#allocation3_spill] sm:$0xff]  ;;  %v5811_v43 = vld [vmem:[#allocation122_spill] sm:$0xff]  ;;  %v5819_v7 = vld [vmem:[#allocation4_spill] sm:$0xff]  ;;  %v2238_v20 = vmax.f32 %v4937_v44, 0.0 }
 0x1f8   :  { %v5037_v59 = vmax.f32 %v5806_v35, %v2196_v32  ;;  %v5812_v3 = vmax.f32 %v5810_v53, %v5811_v43  ;;  %v5814_v0 = vld [vmem:[#allocation123_spill] sm:$0xff]  ;;  %v5816_v57 = vld [vmem:[#allocation2_spill] sm:$0xff]  ;;  %v5820_v60 = vld [vmem:[#allocation125_spill] sm:$0xff]  ;;  %v2240_v8 = vmax.f32 %v4947_v22, 0.0  ;;  %v2241_v38 = vmax.f32 %v4952_v18, 0.0 }
 0x1f9   :  { %v5042_v33 = vmax.f32 %v5809_v31, %v2197_v1  ;;  %v5815_v24 = vmax.f32 %v5813_v26, %v5814_v0  ;;  %v5818_v32 = vmax.f32 %v5816_v57, %v5817_v11  ;;  %v5821_v1 = vmax.f32 %v5819_v7, %v5820_v60 }
 0x1fa   :  { %v5047_v49 = vmax.f32 %v5812_v3, %v2198_v6  ;;  %v2234_v6 = vmax.f32 %v4917_v61, 0.0  ;;  %v2243_v54 = vmax.f32 %v4962_v2, 0.0  ;;  %v2244_v61 = vmax.f32 %v4967_v17, 0.0 }
 0x1fb   :  { %v5052_v14 = vmax.f32 %v5815_v24, %v2199_v23  ;;  %v5057_v50 = vmax.f32 %v5818_v32, %v2200_v12  ;;  %v5062_v52 = vmax.f32 %v5821_v1, %v2201_v21  ;;  %v2237_v23 = vmax.f32 %v4932_v15, 0.0 }
 0x1fc   :  { %v2239_v12 = vmax.f32 %v4942_v56, 0.0  ;;  %v2242_v21 = vmax.f32 %v4957_v41, 0.0  ;;  %v2245_v62 = vmax.f32 %v4972_v13, 0.0  ;;  %v2246_v55 = vmax.f32 %v4977_v47, 0.0 }
 0x1fd   :  { %v2247_v15 = vmax.f32 %v4982_v16, 0.0  ;;  %v2248_v44 = vmax.f32 %v4987_v5, 0.0  ;;  %v2249_v56 = vmax.f32 %v4992_v58, 0.0  ;;  %v2250_v22 = vmax.f32 %v4997_v29, 0.0 }
 0x1fe   :  { %v2251_v18 = vmax.f32 %v5002_v27, 0.0  ;;  %v2252_v41 = vmax.f32 %v5007_v34, 0.0  ;;  %v2253_v2 = vmax.f32 %v5012_v63, 0.0  ;;  %v2254_v17 = vmax.f32 %v5017_v28, 0.0 }
 0x1ff   :  { %v2255_v13 = vmax.f32 %v5022_v51, 0.0  ;;  %v2256_v47 = vmax.f32 %v5027_v42, 0.0  ;;  %v2257_v16 = vmax.f32 %v5032_v46, 0.0  ;;  %v2258_v5 = vmax.f32 %v5037_v59, 0.0 }
 0x200   :  { %v2259_v58 = vmax.f32 %v5042_v33, 0.0  ;;  %v2260_v29 = vmax.f32 %v5047_v49, 0.0  ;;  %v2261_v27 = vmax.f32 %v5052_v14, 0.0  ;;  %v2262_v34 = vmax.f32 %v5057_v50, 0.0 }
 0x201   :  { %v2263_v63 = vmax.f32 %v5062_v52, 0.0  ;;  %v2680_v28 = vpack.c.bf16 %v2233_v30, %v2233_v30  ;;  %v2681_v9 = vpack.c.bf16 %v2234_v6, %v2234_v6  ;;  %v2682_v51 = vpack.c.bf16 %v2235_v39, %v2235_v39 }
 0x202   :  { %v2683_v36 = vpack.c.bf16 %v2236_v10, %v2236_v10  ;;  %v2684_v42 = vpack.c.bf16 %v2237_v23, %v2237_v23  ;;  %v2685_v37 = vpack.c.bf16 %v2238_v20, %v2238_v20  ;;  %v2686_v48 = vpack.c.bf16 %v2239_v12, %v2239_v12 }
 0x203   :  { %v2687_v4 = vpack.c.bf16 %v2240_v8, %v2240_v8  ;;  %v2688_v46 = vpack.c.bf16 %v2241_v38, %v2241_v38  ;;  %v2689_v25 = vpack.c.bf16 %v2242_v21, %v2242_v21  ;;  %2390 = vst.msk [vmem:[%s5223_s4] sm:$0xf] %vm2389_vm5, %v2680_v28  ;;  %2391 = vst.msk [vmem:[%s5223_s4 + $0x4] sm:$0xf] %vm2389_vm5, %v2681_v9 }
 0x204   :  { %v2690_v40 = vpack.c.bf16 %v2243_v54, %v2243_v54  ;;  %v2691_v35 = vpack.c.bf16 %v2244_v61, %v2244_v61  ;;  %v2692_v59 = vpack.c.bf16 %v2245_v62, %v2245_v62  ;;  %v2693_v45 = vpack.c.bf16 %v2246_v55, %v2246_v55  ;;  %2392 = vst.msk [vmem:[%s5223_s4 + $0x8] sm:$0xf] %vm2389_vm5, %v2682_v51 }
 0x205   :  { %2393 = vst.msk [vmem:[%s5223_s4 + $0xc] sm:$0xf] %vm2389_vm5, %v2683_v36  ;;  %2394 = vst.msk [vmem:[%s5223_s4 + $0x10] sm:$0xf] %vm2389_vm5, %v2684_v42  ;;  %v2694_v19 = vpack.c.bf16 %v2247_v15, %v2247_v15  ;;  %v2695_v31 = vpack.c.bf16 %v2248_v44, %v2248_v44  ;;  %v2696_v33 = vpack.c.bf16 %v2249_v56, %v2249_v56 }
 0x206   :  { %2395 = vst.msk [vmem:[%s5223_s4 + $0x14] sm:$0xf] %vm2389_vm5, %v2685_v37  ;;  %v2697_v53 = vpack.c.bf16 %v2250_v22, %v2250_v22  ;;  %2396 = vst.msk [vmem:[%s5223_s4 + $0x18] sm:$0xf] %vm2389_vm5, %v2686_v48  ;;  %v2698_v43 = vpack.c.bf16 %v2251_v18, %v2251_v18  ;;  %v2699_v3 = vpack.c.bf16 %v2252_v41, %v2252_v41 }
 0x207   :  { %2397 = vst.msk [vmem:[%s5223_s4 + $0x1c] sm:$0xf] %vm2389_vm5, %v2687_v4  ;;  %2398 = vst.msk [vmem:[%s5223_s4 + $0x20] sm:$0xf] %vm2389_vm5, %v2688_v46  ;;  %v2700_v49 = vpack.c.bf16 %v2253_v2, %v2253_v2  ;;  %v2701_v26 = vpack.c.bf16 %v2254_v17, %v2254_v17  ;;  %v2702_v0 = vpack.c.bf16 %v2255_v13, %v2255_v13 }
 0x208   :  { %2399 = vst.msk [vmem:[%s5223_s4 + $0x24] sm:$0xf] %vm2389_vm5, %v2689_v25  ;;  %2400 = vst.msk [vmem:[%s5223_s4 + $0x28] sm:$0xf] %vm2389_vm5, %v2690_v40  ;;  %v2703_v24 = vpack.c.bf16 %v2256_v47, %v2256_v47  ;;  %v2704_v14 = vpack.c.bf16 %v2257_v16, %v2257_v16  ;;  %v2705_v57 = vpack.c.bf16 %v2258_v5, %v2258_v5 }
 0x209   :  { %2401 = vst.msk [vmem:[%s5223_s4 + $0x2c] sm:$0xf] %vm2389_vm5, %v2691_v35  ;;  %2402 = vst.msk [vmem:[%s5223_s4 + $0x30] sm:$0xf] %vm2389_vm5, %v2692_v59  ;;  %v2706_v11 = vpack.c.bf16 %v2259_v58, %v2259_v58  ;;  %v2707_v32 = vpack.c.bf16 %v2260_v29, %v2260_v29  ;;  %v2708_v50 = vpack.c.bf16 %v2261_v27, %v2261_v27 }
 0x20a   :  { %2403 = vst.msk [vmem:[%s5223_s4 + $0x34] sm:$0xf] %vm2389_vm5, %v2693_v45  ;;  %2404 = vst.msk [vmem:[%s5223_s4 + $0x38] sm:$0xf] %vm2389_vm5, %v2694_v19  ;;  %v2709_v7 = vpack.c.bf16 %v2262_v34, %v2262_v34  ;;  %v2710_v60 = vpack.c.bf16 %v2263_v63, %v2263_v63 }
 0x20b   :  { %2405 = vst.msk [vmem:[%s5223_s4 + $0x3c] sm:$0xf] %vm2389_vm5, %v2695_v31  ;;  %2406 = vst.msk [vmem:[%s5223_s4 + $0x40] sm:$0xf] %vm2389_vm5, %v2696_v33 }
 0x20c   :  { %2407 = vst.msk [vmem:[%s5223_s4 + $0x44] sm:$0xf] %vm2389_vm5, %v2697_v53  ;;  %2408 = vst.msk [vmem:[%s5223_s4 + $0x48] sm:$0xf] %vm2389_vm5, %v2698_v43 }
 0x20d   :  { %2409 = vst.msk [vmem:[%s5223_s4 + $0x4c] sm:$0xf] %vm2389_vm5, %v2699_v3  ;;  %2410 = vst.msk [vmem:[%s5223_s4 + $0x50] sm:$0xf] %vm2389_vm5, %v2700_v49 }
 0x20e   :  { %2411 = vst.msk [vmem:[%s5223_s4 + $0x54] sm:$0xf] %vm2389_vm5, %v2701_v26  ;;  %2412 = vst.msk [vmem:[%s5223_s4 + $0x58] sm:$0xf] %vm2389_vm5, %v2702_v0 }
 0x20f   :  { %2413 = vst.msk [vmem:[%s5223_s4 + $0x5c] sm:$0xf] %vm2389_vm5, %v2703_v24  ;;  %2414 = vst.msk [vmem:[%s5223_s4 + $0x60] sm:$0xf] %vm2389_vm5, %v2704_v14 }
 0x210   :  { %2415 = vst.msk [vmem:[%s5223_s4 + $0x64] sm:$0xf] %vm2389_vm5, %v2705_v57  ;;  %2416 = vst.msk [vmem:[%s5223_s4 + $0x68] sm:$0xf] %vm2389_vm5, %v2706_v11 }
 0x211   :  { %2417 = vst.msk [vmem:[%s5223_s4 + $0x6c] sm:$0xf] %vm2389_vm5, %v2707_v32  ;;  %2418 = vst.msk [vmem:[%s5223_s4 + $0x70] sm:$0xf] %vm2389_vm5, %v2708_v50 }
 0x212   :  { %2419 = vst.msk [vmem:[%s5223_s4 + $0x74] sm:$0xf] %vm2389_vm5, %v2709_v7 }
 0x213   :  { %2421 = vst.msk [vmem:[%s5223_s4 + $0x78] sm:$0x1] %vm2420_vm6, %v2710_v60 }

// kernel: _lambda_.5
= control target key start
LH: loop header
LB: loop body
LE: loop exit
PB: predicated region body
PF: predicated region fallthrough
CT: control target
= control target key end

     0   :  { %vm371_vm0 = vcmask 523264   ;;  %vm2315_vm1 = vmmov 0   ;;  %vm1535_vm2 = vcmask 517120   ;;  %vm1653_vm3 = vcmask 519168   ;;  %s3059_s2 = inlined_call_operand.vmem [shape: bf16[576,64], index: 2, kind: input, shape index: {}]   ;;  %s3060_s0 = inlined_call_operand.vmem [shape: bf16[4,32,576], index: 0, kind: input, shape index: {}]   ;;  %s3061_s1 = inlined_call_operand.vmem [shape: bf16[34,576], index: 1, kind: input, shape index: {}]   ;;  %s3062_s3 = inlined_call_operand.vmem [shape: f32[1,64], index: 3, kind: input, shape index: {}]   ;;  %s3063_s4 = inlined_call_operand.vmem [shape: f32[1,64], index: 4, kind: input, shape index: {}]   ;;  %s3064_s5 = inlined_call_operand.vmem [shape: bf16[32,64], index: 5, kind: output, shape index: {}]  }
   0x1   :  { %v2349_v0 = vld [vmem:[%s3059_s2 + $0x40] sm:$0xff]   ;;  %v2372_v4 = vld [vmem:[%s3059_s2 + $0x48] sm:$0xff]   ;;  %v2396_v8 = vld [vmem:[%s3059_s2 + $0x50] sm:$0xff]  }
   0x2   :  { %v2354_v1 = vld [vmem:[%s3059_s2 + $0xc0] sm:$0xff]   ;;  %1808 = vmatprep.subr.bf16.mxu0 %v2349_v0  ;;  %v2378_v5 = vld [vmem:[%s3059_s2 + $0xc8] sm:$0xff]   ;;  %v2402_v9 = vld [vmem:[%s3059_s2 + $0xd0] sm:$0xff]  }
   0x3   :  { %v2360_v2 = vld [vmem:[%s3059_s2] sm:$0xff]   ;;  %1836 = vmatprep.subr.bf16.mxu1 %v2354_v1  ;;  %v2384_v6 = vld [vmem:[%s3059_s2 + $0x8] sm:$0xff]   ;;  %v2408_v10 = vld [vmem:[%s3059_s2 + $0x10] sm:$0xff]  }
   0x4   :  { %v2366_v3 = vld [vmem:[%s3059_s2 + $0x80] sm:$0xff]   ;;  %1809 = vmatpush3.bf16.msra.mxu0 %v2360_v2  ;;  %v2390_v7 = vld [vmem:[%s3059_s2 + $0x88] sm:$0xff]   ;;  %v2414_v11 = vld [vmem:[%s3059_s2 + $0x90] sm:$0xff]  }
   0x5   :  { %1837 = vmatpush3.bf16.msra.mxu1 %v2366_v3  ;;  %1810 = vmatprep.subr.bf16.mxu0 %v2372_v4  ;;  %v2420_v12 = vld [vmem:[%s3059_s2 + $0x58] sm:$0xff]   ;;  %v2444_v16 = vld [vmem:[%s3059_s2 + $0x60] sm:$0xff]   ;;  %v2468_v20 = vld [vmem:[%s3059_s2 + $0x68] sm:$0xff]  }
   0x6   :  { %1838 = vmatprep.subr.bf16.mxu1 %v2378_v5  ;;  %v2426_v13 = vld [vmem:[%s3059_s2 + $0xd8] sm:$0xff]   ;;  %v2450_v17 = vld [vmem:[%s3059_s2 + $0xe0] sm:$0xff]   ;;  %v2474_v21 = vld [vmem:[%s3059_s2 + $0xe8] sm:$0xff]  }
   0x7   :  { %v2432_v14 = vld [vmem:[%s3059_s2 + $0x18] sm:$0xff]   ;;  %v2456_v18 = vld [vmem:[%s3059_s2 + $0x20] sm:$0xff]   ;;  %v2480_v22 = vld [vmem:[%s3059_s2 + $0x28] sm:$0xff]  }
   0x8   :  { %1811 = vmatpush3.bf16.msra.mxu0 %v2384_v6  ;;  %v2438_v15 = vld [vmem:[%s3059_s2 + $0x98] sm:$0xff]   ;;  %v2462_v19 = vld [vmem:[%s3059_s2 + $0xa0] sm:$0xff]   ;;  %v2486_v23 = vld [vmem:[%s3059_s2 + $0xa8] sm:$0xff]  }
   0x9   :  { %1839 = vmatpush3.bf16.msra.mxu1 %v2390_v7  ;;  %1812 = vmatprep.subr.bf16.mxu0 %v2396_v8  ;;  %v2492_v24 = vld [vmem:[%s3059_s2 + $0x70] sm:$0xff]   ;;  %v2516_v28 = vld [vmem:[%s3059_s2 + $0x78] sm:$0xff]   ;;  %v2238_v35 = vld [vmem:[%s3060_s0 + $0xc] ss:$20 sps:$4 sm:$0xff]  }
   0xa   :  { %1840 = vmatprep.subr.bf16.mxu1 %v2402_v9  ;;  %v2498_v25 = vld [vmem:[%s3059_s2 + $0xf0] sm:$0xff]   ;;  %v2522_v29 = vld [vmem:[%s3059_s2 + $0xf8] sm:$0xff]   ;;  %v2554_v36 = vld [vmem:[%s3059_s2 + $0x100] sm:$0xff]   ;;  %459 = vmatprep.mubr.bf16.mxu1 %v2238_v35 }
   0xb   :  { %v2504_v26 = vld [vmem:[%s3059_s2 + $0x30] sm:$0xff]   ;;  %v2528_v30 = vld [vmem:[%s3059_s2 + $0x38] sm:$0xff]   ;;  %v2559_v37 = vld [vmem:[%s3059_s2 + $0x108] sm:$0xff]  }
   0xc   :  { %1813 = vmatpush3.bf16.msra.mxu0 %v2408_v10  ;;  %v2510_v27 = vld [vmem:[%s3059_s2 + $0xb0] sm:$0xff]   ;;  %v2534_v31 = vld [vmem:[%s3059_s2 + $0xb8] sm:$0xff]   ;;  %v2241_v38 = vld [vmem:[%s3060_s0 + $0x2c] ss:$20 sps:$4 sm:$0xff]  }
   0xd   :  { %1841 = vmatpush3.bf16.msra.mxu1 %v2414_v11  ;;  %1814 = vmatprep.subr.bf16.mxu0 %v2420_v12  ;;  %v2233_v32 = vld [vmem:[%s3060_s0] ss:$20 sps:$4 sm:$0xff]   ;;  %v2235_v33 = vld [vmem:[%s3060_s0 + $0x4] ss:$20 sps:$4 sm:$0xff]   ;;  %v2236_v34 = vld [vmem:[%s3060_s0 + $0x8] ss:$20 sps:$4 sm:$0xff]  }
   0xe   :  { %1842 = vmatprep.subr.bf16.mxu1 %v2426_v13  ;;  %410 = vmatprep.mubr.bf16.mxu0 %v2235_v33  ;;  %v2243_v39 = vld [vmem:[%s3060_s0 + $0x34] ss:$20 sps:$4 sm:$0xff]   ;;  %v2246_v42 = vld [vmem:[%s3060_s0 + $0x30] ss:$20 sps:$4 sm:$0xff]   ;;  %v2592_v44 = vld [vmem:[%s3059_s2 + $0x118] sm:$0xff]  }
   0xf   :  { %v2245_v40 = vld [vmem:[%s3060_s0 + $0x28] ss:$20 sps:$4 sm:$0xff]   ;;  %v2577_v41 = vld [vmem:[%s3059_s2 + $0x110] sm:$0xff]   ;;  %v2250_v46 = vld [vmem:[%s3060_s0 + $0x38] ss:$20 sps:$4 sm:$0xff]  }
  0x10   :  { %1815 = vmatpush3.bf16.msra.mxu0 %v2432_v14  ;;  %v2249_v43 = vld [vmem:[%s3060_s0 + $0x10] ss:$20 sps:$4 sm:$0xff]   ;;  %v2256_v47 = vld [vmem:[%s3060_s0 + $0x54] ss:$20 sps:$4 sm:$0xff]   ;;  %v2251_v48 = vld [vmem:[%s3060_s0 + $0x58] ss:$20 sps:$4 sm:$0xff]  }
  0x11   :  { %1843 = vmatpush3.bf16.msra.mxu1 %v2438_v15  ;;  %1816 = vmatprep.subr.bf16.mxu0 %v2444_v16  ;;  %v2253_v45 = vld [vmem:[%s3060_s0 + $0x5c] ss:$20 sps:$4 sm:$0xff]   ;;  %v2259_v49 = vld [vmem:[%s3060_s0 + $0x84] ss:$20 sps:$4 sm:$0xff]   ;;  %v2262_v50 = vld [vmem:[%s3060_s0 + $0x80] ss:$20 sps:$4 sm:$0xff]  }
  0x12   :  { %1844 = vmatprep.subr.bf16.mxu1 %v2450_v17  ;;  %v2267_v51 = vld [vmem:[%s3060_s0 + $0xa4] ss:$20 sps:$4 sm:$0xff]   ;;  %v2257_v53 = vld [vmem:[%s3060_s0 + $0x7c] ss:$20 sps:$4 sm:$0xff]   ;;  %v2263_v55 = vld [vmem:[%s3060_s0 + $0x60] ss:$20 sps:$4 sm:$0xff]  }
  0x13   :  { %v2254_v52 = vld [vmem:[%s3060_s0 + $0x50] ss:$20 sps:$4 sm:$0xff]   ;;  %v2261_v54 = vld [vmem:[%s3060_s0 + $0x78] ss:$20 sps:$4 sm:$0xff]   ;;  %v2264_v56 = vld [vmem:[%s3060_s0 + $0x88] ss:$20 sps:$4 sm:$0xff]  }
  0x14   :  { %1817 = vmatpush3.bf16.msra.mxu0 %v2456_v18  ;;  %v2265_v57 = vld [vmem:[%s3060_s0 + $0xa0] ss:$20 sps:$4 sm:$0xff]   ;;  %v2270_v60 = vld [vmem:[%s3060_s0 + $0xc8] ss:$20 sps:$4 sm:$0xff]   ;;  %v2271_v61 = vld [vmem:[%s3060_s0 + $0xb0] ss:$20 sps:$4 sm:$0xff]  }
  0x15   :  { %1845 = vmatpush3.bf16.msra.mxu1 %v2462_v19  ;;  %1818 = vmatprep.subr.bf16.mxu0 %v2468_v20  ;;  %v2268_v58 = vld [vmem:[%s3060_s0 + $0xcc] ss:$20 sps:$4 sm:$0xff]   ;;  %v2281_v63 = vld [vmem:[%s3060_s0 + $0xfc] ss:$20 sps:$4 sm:$0xff]   ;;  %v2276_v33 = vld [vmem:[%s3060_s0 + $0xd4] ss:$20 sps:$4 sm:$0xff]  }
  0x16   :  { %1846 = vmatprep.subr.bf16.mxu1 %v2474_v21  ;;  %v2275_v59 = vld [vmem:[%s3060_s0 + $0xac] ss:$20 sps:$4 sm:$0xff]   ;;  %v2284_v35 = vld [vmem:[%s3060_s0 + $0xf4] ss:$20 sps:$4 sm:$0xff]  }
  0x17   :  { %v2272_v62 = vld [vmem:[%s3060_s0 + $0xd8] ss:$20 sps:$4 sm:$0xff]  }
  0x18   :  { %1819 = vmatpush3.bf16.msra.mxu0 %v2480_v22 }
  0x19   :  { %1847 = vmatpush3.bf16.msra.mxu1 %v2486_v23  ;;  %1820 = vmatprep.subr.bf16.mxu0 %v2492_v24 }
  0x1a   :  { %1848 = vmatprep.subr.bf16.mxu1 %v2498_v25 }
  0x1c   :  { %1821 = vmatpush3.bf16.msra.mxu0 %v2504_v26 }
  0x1d   :  { %1849 = vmatpush3.bf16.msra.mxu1 %v2510_v27  ;;  %1822 = vmatprep.subr.bf16.mxu0 %v2516_v28 }
  0x1e   :  { %1850 = vmatprep.subr.bf16.mxu1 %v2522_v29 }
  0x20   :  { %1823 = vmatpush3.bf16.msra.mxu0 %v2528_v30 }
  0x21   :  { %1851 = vmatpush3.bf16.msra.mxu1 %v2534_v31  ;;  %1898 = vmatprep.subr.bf16.mxu0 %v2354_v1 }
  0x22   :  { %2131 = vmatprep.subr.bf16.mxu1 %v2554_v36 }
  0x23   :  { %411 = vmatmul.mubr.bf16.vlgmr.msra.gmra.mrb[0].mxu0 %v2233_v32  ;;  %v2273_v32 = vld [vmem:[%s3060_s0 + $0xa8] ss:$20 sps:$4 sm:$0xff]  }
  0x24   :  { %460 = vmatmul.mubr.bf16.vlgmr.msra.gmra.mrb[0].mxu1 %v2236_v34  ;;  %1899 = vmatpush3.bf16.msra.mxu0 %v2366_v3  ;;  %v2278_v34 = vld [vmem:[%s3060_s0 + $0xd0] ss:$20 sps:$4 sm:$0xff]  }
  0x25   :  { %2132 = vmatpush3.bf16.msra.mxu1 %v2554_v36  ;;  %418 = vmatprep.mubr.bf16.mxu0 %v2241_v38  ;;  %v2279_v38 = vld [vmem:[%s3060_s0 + $0xf8] ss:$20 sps:$4 sm:$0xff]  }
  0x26   :  { %2133 = vmatprep.subr.bf16.mxu1 %v2559_v37  ;;  %467 = vmatprep.mubr.bf16.mxu1 %v2243_v39  ;;  %v2287_v39 = vld [vmem:[%s3060_s0 + $0x124] ss:$20 sps:$4 sm:$0xff]  }
  0x27   :  { %1900 = vmatprep.subr.bf16.mxu0 %v2378_v5 }
  0x28   :  { %1901 = vmatpush3.bf16.msra.mxu0 %v2390_v7 }
  0x29   :  { %2134 = vmatpush3.bf16.msra.mxu1 %v2559_v37  ;;  %1902 = vmatprep.subr.bf16.mxu0 %v2402_v9 }
  0x2a   :  { %2135 = vmatprep.subr.bf16.mxu1 %v2577_v41 }
  0x2b   :  { %419 = vmatmul.mubr.bf16.gmra.mrb[4].mxu0 %v2245_v40  ;;  %v2295_v40 = vld [vmem:[%s3061_s1 + $0x4] ss:$20 sps:$4 sm:$0xff]  }
  0x2c   :  { %468 = vmatmul.mubr.bf16.gmra.mrb[4].mxu1 %v2246_v42  ;;  %1903 = vmatpush3.bf16.msra.mxu0 %v2414_v11 }
  0x2d   :  { %2136 = vmatpush3.bf16.msra.mxu1 %v2577_v41  ;;  %2139 = vmatprep.mubr.msk.bf16.mxu1 %vm371_vm0, %v2249_v43 }
  0x2e   :  { %2137 = vmatprep.subr.bf16.mxu1 %v2592_v44  ;;  %1904 = vmatprep.subr.bf16.mxu0 %v2426_v13 }
  0x2f   :  { %675 = vmatprep.mubr.bf16.mxu0 %v2253_v45 }
  0x30   :  { %1905 = vmatpush3.bf16.msra.mxu0 %v2438_v15 }
  0x31   :  { %2138 = vmatpush3.bf16.msra.mxu1 %v2592_v44  ;;  %1906 = vmatprep.subr.bf16.mxu0 %v2450_v17 }
  0x32   :  { %1870 = vmatprep.subr.bf16.mxu1 %v2349_v0 }
  0x34   :  { %2140 = vmatmul.mubr.msk.bf16.vlgmr.msra.gmra.mrb[8].mxu1 %vm371_vm0, %v2250_v46  ;;  %1907 = vmatpush3.bf16.msra.mxu0 %v2462_v19 }
  0x35   :  { %1871 = vmatpush3.bf16.msra.mxu1 %v2360_v2  ;;  %626 = vmatprep.mubr.bf16.mxu1 %v2256_v47 }
  0x36   :  { %1872 = vmatprep.subr.bf16.mxu1 %v2372_v4  ;;  %1908 = vmatprep.subr.bf16.mxu0 %v2474_v21 }
  0x38   :  { %1909 = vmatpush3.bf16.msra.mxu0 %v2486_v23 }
  0x39   :  { %1873 = vmatpush3.bf16.msra.mxu1 %v2384_v6  ;;  %1910 = vmatprep.subr.bf16.mxu0 %v2498_v25 }
  0x3a   :  { %1874 = vmatprep.subr.bf16.mxu1 %v2396_v8 }
  0x3c   :  { %1911 = vmatpush3.bf16.msra.mxu0 %v2510_v27 }
  0x3d   :  { %1875 = vmatpush3.bf16.msra.mxu1 %v2408_v10  ;;  %1912 = vmatprep.subr.bf16.mxu0 %v2522_v29 }
  0x3e   :  { %1876 = vmatprep.subr.bf16.mxu1 %v2420_v12 }
  0x40   :  { %1913 = vmatpush3.bf16.msra.mxu0 %v2534_v31 }
  0x41   :  { %1877 = vmatpush3.bf16.msra.mxu1 %v2432_v14  ;;  %1932 = vmatprep.subr.bf16.mxu0 %v2349_v0 }
  0x42   :  { %1878 = vmatprep.subr.bf16.mxu1 %v2444_v16 }
  0x43   :  { %676 = vmatmul.mubr.bf16.vlgmr.msra.gmra.mrb[8].mxu0 %v2251_v48 }
  0x44   :  { %1933 = vmatpush3.bf16.msra.mxu0 %v2360_v2  ;;  %683 = vmatprep.mubr.bf16.mxu0 %v2259_v49 }
  0x45   :  { %1879 = vmatpush3.bf16.msra.mxu1 %v2456_v18  ;;  %1934 = vmatprep.subr.bf16.mxu0 %v2372_v4 }
  0x46   :  { %1880 = vmatprep.subr.bf16.mxu1 %v2468_v20 }
  0x48   :  { %1935 = vmatpush3.bf16.msra.mxu0 %v2384_v6 }
  0x49   :  { %1881 = vmatpush3.bf16.msra.mxu1 %v2480_v22  ;;  %1936 = vmatprep.subr.bf16.mxu0 %v2396_v8 }
  0x4a   :  { %1882 = vmatprep.subr.bf16.mxu1 %v2492_v24 }
  0x4b   :  { %684 = vmatmul.mubr.bf16.gmra.mrb[12].mxu0 %v2262_v50 }
  0x4c   :  { %1937 = vmatpush3.bf16.msra.mxu0 %v2408_v10  ;;  %842 = vmatprep.mubr.bf16.mxu0 %v2267_v51 }
  0x4d   :  { %1883 = vmatpush3.bf16.msra.mxu1 %v2504_v26  ;;  %1938 = vmatprep.subr.bf16.mxu0 %v2420_v12 }
  0x4e   :  { %1884 = vmatprep.subr.bf16.mxu1 %v2516_v28 }
  0x50   :  { %1939 = vmatpush3.bf16.msra.mxu0 %v2432_v14 }
  0x51   :  { %1885 = vmatpush3.bf16.msra.mxu1 %v2528_v30  ;;  %1940 = vmatprep.subr.bf16.mxu0 %v2444_v16 }
  0x52   :  { %2143 = vmatprep.subr.bf16.mxu1 %v2554_v36 }
  0x54   :  { %627 = vmatmul.mubr.bf16.vlgmr.msra.gmra.mrb[12].mxu1 %v2254_v52  ;;  %1941 = vmatpush3.bf16.msra.mxu0 %v2456_v18 }
  0x55   :  { %2144 = vmatpush3.bf16.msra.mxu1 %v2554_v36  ;;  %634 = vmatprep.mubr.bf16.mxu1 %v2257_v53 }
  0x56   :  { %2145 = vmatprep.subr.bf16.mxu1 %v2559_v37  ;;  %1942 = vmatprep.subr.bf16.mxu0 %v2468_v20 }
  0x58   :  { %1943 = vmatpush3.bf16.msra.mxu0 %v2480_v22 }
  0x59   :  { %2146 = vmatpush3.bf16.msra.mxu1 %v2559_v37  ;;  %1944 = vmatprep.subr.bf16.mxu0 %v2492_v24 }
  0x5a   :  { %2147 = vmatprep.subr.bf16.mxu1 %v2577_v41 }
  0x5c   :  { %635 = vmatmul.mubr.bf16.gmra.mrb[16].mxu1 %v2261_v54  ;;  %1945 = vmatpush3.bf16.msra.mxu0 %v2504_v26 }
  0x5d   :  { %2148 = vmatpush3.bf16.msra.mxu1 %v2577_v41  ;;  %2151 = vmatprep.mubr.msk.bf16.mxu1 %vm371_vm0, %v2263_v55 }
  0x5e   :  { %2149 = vmatprep.subr.bf16.mxu1 %v2592_v44  ;;  %1946 = vmatprep.subr.bf16.mxu0 %v2516_v28 }
  0x60   :  { %1947 = vmatpush3.bf16.msra.mxu0 %v2528_v30 }
  0x61   :  { %2150 = vmatpush3.bf16.msra.mxu1 %v2592_v44  ;;  %2155 = vmatprep.subr.bf16.mxu0 %v2554_v36 }
  0x62   :  { %1960 = vmatprep.subr.bf16.mxu1 %v2354_v1 }
  0x63   :  { %843 = vmatmul.mubr.bf16.vlgmr.msra.gmra.mrb[16].mxu0 %v2265_v57 }
  0x64   :  { %2152 = vmatmul.mubr.msk.bf16.vlgmr.msra.gmra.mrb[20].mxu1 %vm371_vm0, %v2264_v56  ;;  %2156 = vmatpush3.bf16.msra.mxu0 %v2554_v36 }
  0x65   :  { %1961 = vmatpush3.bf16.msra.mxu1 %v2366_v3  ;;  %2157 = vmatprep.subr.bf16.mxu0 %v2559_v37 }
  0x66   :  { %1962 = vmatprep.subr.bf16.mxu1 %v2378_v5  ;;  %850 = vmatprep.mubr.bf16.mxu0 %v2268_v58 }
  0x67   :  { %891 = vmatprep.mubr.bf16.mxu1 %v2275_v59 }
  0x68   :  { %2158 = vmatpush3.bf16.msra.mxu0 %v2559_v37 }
  0x69   :  { %1963 = vmatpush3.bf16.msra.mxu1 %v2390_v7  ;;  %2159 = vmatprep.subr.bf16.mxu0 %v2577_v41 }
  0x6a   :  { %1964 = vmatprep.subr.bf16.mxu1 %v2402_v9 }
  0x6b   :  { %851 = vmatmul.mubr.bf16.gmra.mrb[20].mxu0 %v2270_v60 }
  0x6c   :  { %2160 = vmatpush3.bf16.msra.mxu0 %v2577_v41  ;;  %2163 = vmatprep.mubr.msk.bf16.mxu0 %vm371_vm0, %v2271_v61 }
  0x6d   :  { %1965 = vmatpush3.bf16.msra.mxu1 %v2414_v11  ;;  %2161 = vmatprep.subr.bf16.mxu0 %v2592_v44 }
  0x6e   :  { %1966 = vmatprep.subr.bf16.mxu1 %v2426_v13 }
  0x70   :  { %2162 = vmatpush3.bf16.msra.mxu0 %v2592_v44 }
  0x71   :  { %1967 = vmatpush3.bf16.msra.mxu1 %v2438_v15  ;;  %2022 = vmatprep.subr.bf16.mxu0 %v2354_v1 }
  0x72   :  { %1968 = vmatprep.subr.bf16.mxu1 %v2450_v17 }
  0x73   :  { %2164 = vmatmul.mubr.msk.bf16.vlgmr.msra.gmra.mrb[24].mxu0 %vm371_vm0, %v2272_v62 }
  0x74   :  { %2023 = vmatpush3.bf16.msra.mxu0 %v2366_v3  ;;  %1107 = vmatprep.mubr.bf16.mxu0 %v2281_v63 }
  0x75   :  { %1969 = vmatpush3.bf16.msra.mxu1 %v2462_v19  ;;  %2024 = vmatprep.subr.bf16.mxu0 %v2378_v5 }
  0x76   :  { %1970 = vmatprep.subr.bf16.mxu1 %v2474_v21 }
  0x78   :  { %2025 = vmatpush3.bf16.msra.mxu0 %v2390_v7 }
  0x79   :  { %1971 = vmatpush3.bf16.msra.mxu1 %v2486_v23  ;;  %2026 = vmatprep.subr.bf16.mxu0 %v2402_v9 }
  0x7a   :  { %1972 = vmatprep.subr.bf16.mxu1 %v2498_v25 }
  0x7c   :  { %2027 = vmatpush3.bf16.msra.mxu0 %v2414_v11 }
  0x7d   :  { %1973 = vmatpush3.bf16.msra.mxu1 %v2510_v27  ;;  %2028 = vmatprep.subr.bf16.mxu0 %v2426_v13 }
  0x7e   :  { %1974 = vmatprep.subr.bf16.mxu1 %v2522_v29 }
  0x80   :  { %2029 = vmatpush3.bf16.msra.mxu0 %v2438_v15 }
  0x81   :  { %1975 = vmatpush3.bf16.msra.mxu1 %v2534_v31  ;;  %2030 = vmatprep.subr.bf16.mxu0 %v2450_v17 }
  0x82   :  { %1994 = vmatprep.subr.bf16.mxu1 %v2349_v0 }
  0x84   :  { %892 = vmatmul.mubr.bf16.vlgmr.msra.gmra.mrb[24].mxu1 %v2273_v32  ;;  %2031 = vmatpush3.bf16.msra.mxu0 %v2462_v19 }
  0x85   :  { %1995 = vmatpush3.bf16.msra.mxu1 %v2360_v2  ;;  %899 = vmatprep.mubr.bf16.mxu1 %v2276_v33 }
  0x86   :  { %1996 = vmatprep.subr.bf16.mxu1 %v2372_v4  ;;  %2032 = vmatprep.subr.bf16.mxu0 %v2474_v21 }
  0x88   :  { %2033 = vmatpush3.bf16.msra.mxu0 %v2486_v23 }
  0x89   :  { %1997 = vmatpush3.bf16.msra.mxu1 %v2384_v6  ;;  %2034 = vmatprep.subr.bf16.mxu0 %v2498_v25 }
  0x8a   :  { %1998 = vmatprep.subr.bf16.mxu1 %v2396_v8 }
  0x8c   :  { %900 = vmatmul.mubr.bf16.gmra.mrb[28].mxu1 %v2278_v34  ;;  %2035 = vmatpush3.bf16.msra.mxu0 %v2510_v27 }
  0x8d   :  { %1999 = vmatpush3.bf16.msra.mxu1 %v2408_v10  ;;  %1058 = vmatprep.mubr.bf16.mxu1 %v2284_v35 }
  0x8e   :  { %2000 = vmatprep.subr.bf16.mxu1 %v2420_v12  ;;  %2036 = vmatprep.subr.bf16.mxu0 %v2522_v29 }
  0x90   :  { %2037 = vmatpush3.bf16.msra.mxu0 %v2534_v31 }
  0x91   :  { %2001 = vmatpush3.bf16.msra.mxu1 %v2432_v14  ;;  %2056 = vmatprep.subr.bf16.mxu0 %v2349_v0  ;;  %v2290_v0 = vld [vmem:[%s3060_s0 + $0x120] ss:$20 sps:$4 sm:$0xff]  }
  0x92   :  { %2002 = vmatprep.subr.bf16.mxu1 %v2444_v16 }
  0x93   :  { %1108 = vmatmul.mubr.bf16.vlgmr.msra.gmra.mrb[28].mxu0 %v2279_v38 }
  0x94   :  { %2057 = vmatpush3.bf16.msra.mxu0 %v2360_v2  ;;  %1115 = vmatprep.mubr.bf16.mxu0 %v2287_v39  ;;  %v2282_v2 = vld [vmem:[%s3060_s0 + $0xf0] ss:$20 sps:$4 sm:$0xff]  }
  0x95   :  { %2003 = vmatpush3.bf16.msra.mxu1 %v2456_v18  ;;  %2058 = vmatprep.subr.bf16.mxu0 %v2372_v4  ;;  %v2285_v4 = vld [vmem:[%s3060_s0 + $0x11c] ss:$20 sps:$4 sm:$0xff]  }
  0x96   :  { %2004 = vmatprep.subr.bf16.mxu1 %v2468_v20 }
  0x98   :  { %2059 = vmatpush3.bf16.msra.mxu0 %v2384_v6  ;;  %v2289_v6 = vld [vmem:[%s3060_s0 + $0x118] ss:$20 sps:$4 sm:$0xff]  }
  0x99   :  { %2005 = vmatpush3.bf16.msra.mxu1 %v2480_v22  ;;  %2060 = vmatprep.subr.bf16.mxu0 %v2396_v8  ;;  %v2291_v8 = vld [vmem:[%s3060_s0 + $0x100] ss:$20 sps:$4 sm:$0xff]  }
  0x9a   :  { %2006 = vmatprep.subr.bf16.mxu1 %v2492_v24 }
  0x9b   :  { %1116 = vmatmul.mubr.bf16.gmra.mrb[32].mxu0 %v2290_v0 }
  0x9c   :  { %2061 = vmatpush3.bf16.msra.mxu0 %v2408_v10  ;;  %1392 = vmatprep.mubr.bf16.mxu0 %v2295_v40  ;;  %v2292_v10 = vld [vmem:[%s3060_s0 + $0x128] ss:$20 sps:$4 sm:$0xff]  }
  0x9d   :  { %2007 = vmatpush3.bf16.msra.mxu1 %v2504_v26  ;;  %2062 = vmatprep.subr.bf16.mxu0 %v2420_v12  ;;  %v2293_v12 = vld [vmem:[%s3061_s1] ss:$20 sps:$4 sm:$0xff]  }
  0x9e   :  { %2008 = vmatprep.subr.bf16.mxu1 %v2516_v28 }
  0xa0   :  { %2063 = vmatpush3.bf16.msra.mxu0 %v2432_v14  ;;  %v2314_v14 = vmov 0.0  }
  0xa1   :  { %2009 = vmatpush3.bf16.msra.mxu1 %v2528_v30  ;;  %2064 = vmatprep.subr.bf16.mxu0 %v2444_v16  ;;  %v2296_v16 = vld [vmem:[%s3061_s1 + $0x2c] ss:$20 sps:$4 sm:$0xff]  }
  0xa2   :  { %2167 = vmatprep.subr.bf16.mxu1 %v2554_v36 }
  0xa4   :  { %1059 = vmatmul.mubr.bf16.vlgmr.msra.gmra.mrb[32].mxu1 %v2282_v2  ;;  %2065 = vmatpush3.bf16.msra.mxu0 %v2456_v18  ;;  %v2303_v18 = vld [vmem:[%s3061_s1 + $0xc] ss:$20 sps:$4 sm:$0xff]  }
  0xa5   :  { %2168 = vmatpush3.bf16.msra.mxu1 %v2554_v36  ;;  %1066 = vmatprep.mubr.bf16.mxu1 %v2285_v4 }
  0xa6   :  { %2169 = vmatprep.subr.bf16.mxu1 %v2559_v37  ;;  %2066 = vmatprep.subr.bf16.mxu0 %v2468_v20  ;;  %v2298_v20 = vld [vmem:[%s3061_s1 + $0x28] ss:$20 sps:$4 sm:$0xff]  }
  0xa8   :  { %2067 = vmatpush3.bf16.msra.mxu0 %v2480_v22 }
  0xa9   :  { %2170 = vmatpush3.bf16.msra.mxu1 %v2559_v37  ;;  %2068 = vmatprep.subr.bf16.mxu0 %v2492_v24 }
  0xaa   :  { %2171 = vmatprep.subr.bf16.mxu1 %v2577_v41 }
  0xac   :  { %1067 = vmatmul.mubr.bf16.gmra.mrb[36].mxu1 %v2289_v6  ;;  %2069 = vmatpush3.bf16.msra.mxu0 %v2504_v26 }
  0xad   :  { %2172 = vmatpush3.bf16.msra.mxu1 %v2577_v41  ;;  %2175 = vmatprep.mubr.msk.bf16.mxu1 %vm371_vm0, %v2291_v8 }
  0xae   :  { %2173 = vmatprep.subr.bf16.mxu1 %v2592_v44  ;;  %2070 = vmatprep.subr.bf16.mxu0 %v2516_v28 }
  0xb0   :  { %2071 = vmatpush3.bf16.msra.mxu0 %v2528_v30 }
  0xb1   :  { %2174 = vmatpush3.bf16.msra.mxu1 %v2592_v44  ;;  %2179 = vmatprep.subr.bf16.mxu0 %v2314_v14 }
  0xb2   :  { %2090 = vmatprep.subr.bf16.mxu1 %v2354_v1  ;;  %v1281_v1 = vld [vmem:[%s3061_s1 + $0x50] sm:$0x11] }
  0xb3   :  { %1393 = vmatmul.mubr.bf16.vlgmr.msra.gmra.mrb[36].mxu0 %v2293_v12 }
  0xb4   :  { %2176 = vmatmul.mubr.msk.bf16.vlgmr.msra.gmra.mrb[40].mxu1 %vm371_vm0, %v2292_v10  ;;  %2180 = vmatpush3.bf16.msra.mxu0 %v2554_v36 }
  0xb5   :  { %2091 = vmatpush3.bf16.msra.mxu1 %v2366_v3  ;;  %1400 = vmatprep.mubr.bf16.mxu0 %v2296_v16  ;;  %v1793_v3 = vcombine.high %v1281_v1, %v1281_v1 }
  0xb6   :  { %2092 = vmatprep.subr.bf16.mxu1 %v2378_v5  ;;  %2181 = vmatprep.subr.bf16.mxu0 %v2314_v14  ;;  %v1792_v5 = vcombine.low %v1281_v1, %v1281_v1 }
  0xb7   :  { %1448 = vmatprep.mubr.bf16.mxu1 %v2303_v18 }
  0xb8   :  { %2182 = vmatpush3.bf16.msra.mxu0 %v2559_v37 }
  0xb9   :  { %2093 = vmatpush3.bf16.msra.mxu1 %v2390_v7  ;;  %2183 = vmatprep.subr.bf16.mxu0 %v2314_v14  ;;  %v2304_v7 = vld [vmem:[%s3061_s1 + $0x10] ss:$20 sps:$4 sm:$0xff]  }
  0xba   :  { %2094 = vmatprep.subr.bf16.mxu1 %v2402_v9  ;;  %v2301_v9 = vld [vmem:[%s3061_s1 + $0x8] ss:$20 sps:$4 sm:$0xff]  }
  0xbb   :  { %1401 = vmatmul.mubr.bf16.gmra.mrb[40].mxu0 %v2298_v20 }
  0xbc   :  { %1408 = vmatprep.mubr.bf16.mxu0 %v1793_v3  ;;  %2184 = vmatpush3.bf16.msra.mxu0 %v2577_v41 }
  0xbd   :  { %2095 = vmatpush3.bf16.msra.mxu1 %v2414_v11  ;;  %2185 = vmatprep.subr.bf16.mxu0 %v2314_v14  ;;  %v2305_v11 = vld [vmem:[%s3061_s1 + $0x34] ss:$20 sps:$4 sm:$0xff]  }
  0xbe   :  { %2096 = vmatprep.subr.bf16.mxu1 %v2426_v13  ;;  %v2308_v13 = vld [vmem:[%s3061_s1 + $0x38] ss:$20 sps:$4 sm:$0xff]  }
  0xc0   :  { %2186 = vmatpush3.bf16.msra.mxu0 %v2592_v44 }
  0xc1   :  { %2097 = vmatpush3.bf16.msra.mxu1 %v2438_v15  ;;  %v1282_v15 = vld [vmem:[%s3061_s1 + $0x58] sm:$0x11] }
  0xc2   :  { %2098 = vmatprep.subr.bf16.mxu1 %v2450_v17  ;;  %v2307_v17 = vld [vmem:[%s3061_s1 + $0x30] ss:$20 sps:$4 sm:$0xff]   ;;  %v1794_v22 = vcombine.low %v1282_v15, %v1282_v15 }
  0xc3   :  { %1409 = vmatmul.mubr.bf16.gmra.mrb[44].mxu0 %v1792_v5 }
  0xc4   :  { %2187 = vmatprep.mubr.msk.bf16.mxu0 %vm2315_vm1, %v2314_v14 }
  0xc5   :  { %2099 = vmatpush3.bf16.msra.mxu1 %v2462_v19  ;;  %v1795_v19 = vcombine.high %v1282_v15, %v1282_v15 }
  0xc6   :  { %2100 = vmatprep.subr.bf16.mxu1 %v2474_v21  ;;  %v2311_v21 = vld [vmem:[%s3061_s1 + $0x60] ss:$0 sps:$4 sm:$0x11]  }
  0xc9   :  { %2101 = vmatpush3.bf16.msra.mxu1 %v2486_v23 }
  0xca   :  { %2102 = vmatprep.subr.bf16.mxu1 %v2498_v25 }
  0xcb   :  { %2188 = vmatmul.mubr.msk.bf16.vlgmr.msra.gmra.mrb[48].mxu0 %vm371_vm0, %v2304_v7 }
  0xcc   :  { %2191 = vmatprep.mubr.msk.bf16.mxu0 %vm2315_vm1, %v2314_v14 }
  0xcd   :  { %2103 = vmatpush3.bf16.msra.mxu1 %v2510_v27 }
  0xce   :  { %2104 = vmatprep.subr.bf16.mxu1 %v2522_v29 }
  0xd1   :  { %2105 = vmatpush3.bf16.msra.mxu1 %v2534_v31 }
  0xd3   :  { %2192 = vmatmul.mubr.msk.bf16.gmra.mrb[52].mxu0 %vm371_vm0, %v2308_v13 }
  0xd4   :  { %1449 = vmatmul.mubr.bf16.vlgmr.msra.gmra.mrb[44].mxu1 %v2301_v9  ;;  %2195 = vmatprep.mubr.msk.bf16.mxu0 %vm2315_vm1, %v2314_v14 }
  0xd5   :  { %1456 = vmatprep.mubr.bf16.mxu1 %v2305_v11 }
  0xdb   :  { %2196 = vmatmul.mubr.msk.bf16.gmra.mrb[56].mxu0 %vm371_vm0, %v2311_v21 }
  0xdc   :  { %1457 = vmatmul.mubr.bf16.gmra.mrb[48].mxu1 %v2307_v17 }
  0xdd   :  { %1464 = vmatprep.mubr.bf16.mxu1 %v1795_v19 }
  0xe4   :  { %1465 = vmatmul.mubr.bf16.gmra.mrb[52].mxu1 %v1794_v22 }
  0xf6   :  { %v1824_v23 = vpop.f32.mrb[0].mxu0 }
  0xf7   :  { %v1852_v24 = vpop.f32.mrb[0].mxu1  ;;  %v1825_v25 = vpop.f32.mrb[1].mxu0 }
  0xf8   :  { %v1826_v26 = vadd.f32 %v1825_v25, %v1824_v23  ;;  %v1853_v27 = vpop.f32.mrb[1].mxu1  ;;  %v1827_v28 = vpop.f32.mrb[2].mxu0 }
  0xf9   :  { %v1854_v29 = vadd.f32 %v1853_v27, %v1852_v24  ;;  %v1855_v30 = vpop.f32.mrb[2].mxu1  ;;  %v1828_v31 = vpop.f32.mrb[3].mxu0 }
  0xfa   :  { %v1829_v36 = vadd.f32 %v1828_v31, %v1827_v28  ;;  %v1856_v37 = vpop.f32.mrb[3].mxu1 }
  0xfb   :  { %v1857_v41 = vadd.f32 %v1856_v37, %v1855_v30  ;;  %v462_v42 = vadd.f32 %v1854_v29, %v1826_v26 }
  0xfd   :  { %v465_v43 = vadd.f32 %v1857_v41, %v1829_v36 }
  0xfe   :  { %v1830_v44 = vpop.f32.mrb[4].mxu0 }
  0xff   :  { %v1858_v45 = vpop.f32.mrb[4].mxu1  ;;  %v1831_v46 = vpop.f32.mrb[5].mxu0 }
 0x100   :  { %v1832_v47 = vadd.f32 %v1831_v46, %v1830_v44  ;;  %v1859_v48 = vpop.f32.mrb[5].mxu1  ;;  %v1833_v49 = vpop.f32.mrb[6].mxu0 }
 0x101   :  { %v1860_v50 = vadd.f32 %v1859_v48, %v1858_v45  ;;  %v1861_v51 = vpop.f32.mrb[6].mxu1  ;;  %v1834_v52 = vpop.f32.mrb[7].mxu0 }
 0x102   :  { %v1835_v53 = vadd.f32 %v1834_v52, %v1833_v49  ;;  %v1862_v54 = vpop.f32.mrb[7].mxu1 }
 0x103   :  { %v1863_v55 = vadd.f32 %v1862_v54, %v1861_v51  ;;  %v470_v56 = vadd.f32 %v1860_v50, %v1832_v47 }
 0x105   :  { %v473_v57 = vadd.f32 %v1863_v55, %v1835_v53 }
 0x107   :  { %v2141_v58 = vpop.f32.mrb[8].mxu1 }
 0x108   :  { %v2895_v59 = vadd.f32 %v2141_v58, %v470_v56  ;;  %v510_v60 = vpop.f32.mrb[9].mxu1 }
 0x109   :  { %v2897_v61 = vadd.f32 %v510_v60, %v462_v42  ;;  %v2142_v62 = vpop.f32.mrb[10].mxu1 }
 0x10a   :  { %v2899_v63 = vadd.f32 %v2142_v62, %v473_v57  ;;  %v513_v32 = vpop.f32.mrb[11].mxu1  ;;  %v1200_v35 = vmul.f32 %v2895_v59, %v2895_v59 }
 0x10b   :  { %v1198_v33 = vmul.f32 %v2897_v61, %v2897_v61  ;;  %v2903_v34 = vadd.f32 %v513_v32, %v465_v43 }
 0x10c   :  { %v1201_v0 = vmul.f32 %v2899_v63, %v2899_v63  ;;  %v1205_v4 = vsel %vm371_vm0, %v1200_v35, 0.0 }
 0x10d   :  { %v1199_v38 = vmul.f32 %v2903_v34, %v2903_v34  ;;  %v1202_v39 = vsel %vm371_vm0, %v1198_v33, 0.0 }
 0x10e   :  { %v1207_v8 = vsel %vm371_vm0, %v1201_v0, 0.0 }
 0x10f   :  { %v1203_v40 = vsel %vm371_vm0, %v1199_v38, 0.0 }
 0x110   :  { %v1204_v2 = vadd.f32 %v1203_v40, %v1202_v39 }
 0x112   :  { %v1206_v6 = vadd.f32 %v1205_v4, %v1204_v2 }
 0x114   :  { %v1208_v10 = vadd.f32 %v1207_v8, %v1206_v6 }
 0x116   :  { %v1914_v12 = vpop.f32.mrb[8].mxu0  ;;  %v1209_v57 = vrot.slane %v1208_v10, 4 }
 0x117   :  { %v1915_v14 = vpop.f32.mrb[9].mxu0 }
 0x118   :  { %v1916_v16 = vadd.f32 %v1915_v14, %v1914_v12  ;;  %v1917_v18 = vpop.f32.mrb[10].mxu0  ;;  %v1210_v0 = vadd.f32 %v1209_v57, %v1208_v10 }
 0x119   :  { %v1918_v1 = vpop.f32.mrb[11].mxu0 }
 0x11a   :  { %v1919_v20 = vadd.f32 %v1918_v1, %v1917_v18  ;;  %v1211_v1 = vrot.slane %v1210_v0, 2 }
 0x11e   :  { %v1920_v3 = vpop.f32.mrb[12].mxu0 }
 0x11f   :  { %v1921_v5 = vpop.f32.mrb[13].mxu0 }
 0x120   :  { %v1922_v7 = vadd.f32 %v1921_v5, %v1920_v3  ;;  %v1923_v9 = vpop.f32.mrb[14].mxu0 }
 0x121   :  { %v1924_v11 = vpop.f32.mrb[15].mxu0 }
 0x122   :  { %v1925_v13 = vadd.f32 %v1924_v11, %v1923_v9 }
 0x127   :  { %v1886_v15 = vpop.f32.mrb[12].mxu1 }
 0x128   :  { %v1887_v17 = vpop.f32.mrb[13].mxu1 }
 0x129   :  { %v1888_v19 = vadd.f32 %v1887_v17, %v1886_v15  ;;  %v1889_v21 = vpop.f32.mrb[14].mxu1 }
 0x12a   :  { %v1890_v22 = vpop.f32.mrb[15].mxu1 }
 0x12b   :  { %v1891_v23 = vadd.f32 %v1890_v22, %v1889_v21  ;;  %v678_v24 = vadd.f32 %v1916_v16, %v1888_v19 }
 0x12d   :  { %v681_v25 = vadd.f32 %v1919_v20, %v1891_v23 }
 0x12f   :  { %v1892_v26 = vpop.f32.mrb[16].mxu1 }
 0x130   :  { %v1893_v27 = vpop.f32.mrb[17].mxu1 }
 0x131   :  { %v1894_v28 = vadd.f32 %v1893_v27, %v1892_v26  ;;  %v1895_v29 = vpop.f32.mrb[18].mxu1 }
 0x132   :  { %v1896_v30 = vpop.f32.mrb[19].mxu1 }
 0x133   :  { %v1897_v31 = vadd.f32 %v1896_v30, %v1895_v29  ;;  %v686_v36 = vadd.f32 %v1922_v7, %v1894_v28  ;;  %v1212_v7 = vadd.f32 %v1211_v1, %v1210_v0 }
 0x135   :  { %v689_v37 = vadd.f32 %v1925_v13, %v1897_v31  ;;  %v1213_v19 = vrot.slane %v1212_v7, 1 }
 0x136   :  { %v1948_v44 = vpop.f32.mrb[16].mxu0 }
 0x137   :  { %v2153_v41 = vpop.f32.mrb[20].mxu1  ;;  %v1949_v47 = vpop.f32.mrb[17].mxu0  ;;  %v1214_v23 = vadd.f32 %v1213_v19, %v1212_v7 }
 0x138   :  { %v2915_v42 = vadd.f32 %v2153_v41, %v686_v36  ;;  %v726_v43 = vpop.f32.mrb[21].mxu1  ;;  %v1950_v51 = vadd.f32 %v1949_v47, %v1948_v44  ;;  %v1951_v52 = vpop.f32.mrb[18].mxu0 }
 0x139   :  { %v2917_v45 = vadd.f32 %v726_v43, %v678_v24  ;;  %v2154_v46 = vpop.f32.mrb[22].mxu1  ;;  %v1952_v56 = vpop.f32.mrb[19].mxu0 }
 0x13a   :  { %v2921_v48 = vadd.f32 %v2915_v42, %v2895_v59  ;;  %v2923_v49 = vadd.f32 %v2154_v46, %v689_v37  ;;  %v729_v50 = vpop.f32.mrb[23].mxu1  ;;  %v1953_v60 = vadd.f32 %v1952_v56, %v1951_v52  ;;  %v1217_v62 = vmul.f32 %v2915_v42, %v2915_v42 }
 0x13b   :  { %v1173_v53 = vadd.f32 %v2917_v45, %v2897_v61  ;;  %v1215_v54 = vmul.f32 %v2917_v45, %v2917_v45  ;;  %v2929_v55 = vadd.f32 %v729_v50, %v681_v25 }
 0x13c   :  { %v2933_v58 = vadd.f32 %v2923_v49, %v2899_v63  ;;  %v1218_v38 = vmul.f32 %v2923_v49, %v2923_v49  ;;  %v1222_v4 = vsel %vm371_vm0, %v1217_v62, 0.0 }
 0x13d   :  { %v1174_v32 = vadd.f32 %v2929_v55, %v2903_v34  ;;  %v1216_v33 = vmul.f32 %v2929_v55, %v2929_v55  ;;  %v1219_v35 = vsel %vm371_vm0, %v1215_v54, 0.0 }
 0x13e   :  { %v1954_v2 = vpop.f32.mrb[20].mxu0  ;;  %v1224_v16 = vsel %vm371_vm0, %v1218_v38, 0.0 }
 0x13f   :  { %v1220_v39 = vsel %vm371_vm0, %v1216_v33, 0.0  ;;  %v1955_v6 = vpop.f32.mrb[21].mxu0 }
 0x140   :  { %v1221_v40 = vadd.f32 %v1220_v39, %v1219_v35  ;;  %v1956_v12 = vadd.f32 %v1955_v6, %v1954_v2  ;;  %v1957_v14 = vpop.f32.mrb[22].mxu0 }
 0x141   :  { %v1958_v18 = vpop.f32.mrb[23].mxu0 }
 0x142   :  { %v1223_v8 = vadd.f32 %v1222_v4, %v1221_v40  ;;  %v1959_v3 = vadd.f32 %v1958_v18, %v1957_v14 }
 0x144   :  { %v1225_v20 = vadd.f32 %v1224_v16, %v1223_v8 }
 0x146   :  { %v1226_v5 = vrot.slane %v1225_v20, 4  ;;  %v2165_v11 = vpop.f32.mrb[24].mxu0 }
 0x147   :  { %v942_v13 = vpop.f32.mrb[25].mxu0 }
 0x148   :  { %v1227_v9 = vadd.f32 %v1226_v5, %v1225_v20  ;;  %v2166_v15 = vpop.f32.mrb[26].mxu0 }
 0x149   :  { %v945_v17 = vpop.f32.mrb[27].mxu0 }
 0x14a   :  { %v1228_v10 = vrot.slane %v1227_v9, 2 }
 0x14c   :  { %v1229_v21 = vadd.f32 %v1228_v10, %v1227_v9 }
 0x14e   :  { %v1230_v22 = vrot.slane %v1229_v21, 1 }
 0x150   :  { %v1231_v24 = vadd.f32 %v1230_v22, %v1229_v21 }
 0x152   :  { %v1232_v25 = vadd.f32 %v1231_v24, %v1214_v23 }
 0x157   :  { %v1976_v26 = vpop.f32.mrb[24].mxu1 }
 0x158   :  { %v1977_v27 = vpop.f32.mrb[25].mxu1 }
 0x159   :  { %v1978_v28 = vadd.f32 %v1977_v27, %v1976_v26  ;;  %v1979_v29 = vpop.f32.mrb[26].mxu1 }
 0x15a   :  { %v1980_v30 = vpop.f32.mrb[27].mxu1 }
 0x15b   :  { %v894_v31 = vadd.f32 %v1978_v28, %v1950_v51  ;;  %v1981_v36 = vadd.f32 %v1980_v30, %v1979_v29 }
 0x15d   :  { %v2947_v37 = vadd.f32 %v942_v13, %v894_v31  ;;  %v897_v41 = vadd.f32 %v1981_v36, %v1953_v60 }
 0x15f   :  { %v1233_v43 = vmul.f32 %v2947_v37, %v2947_v37  ;;  %v2951_v44 = vadd.f32 %v945_v17, %v897_v41  ;;  %v1982_v46 = vpop.f32.mrb[28].mxu1  ;;  %v2954_v47 = vadd.f32 %v1173_v53, %v2947_v37 }
 0x160   :  { %v1983_v50 = vpop.f32.mrb[29].mxu1 }
 0x161   :  { %v1234_v52 = vmul.f32 %v2951_v44, %v2951_v44  ;;  %v1984_v54 = vadd.f32 %v1983_v50, %v1982_v46  ;;  %v1985_v56 = vpop.f32.mrb[30].mxu1  ;;  %v2959_v51 = vadd.f32 %v1174_v32, %v2951_v44  ;;  %v1237_v60 = vsel %vm371_vm0, %v1233_v43, 0.0 }
 0x162   :  { %v1986_v57 = vpop.f32.mrb[31].mxu1 }
 0x163   :  { %v1238_v62 = vsel %vm371_vm0, %v1234_v52, 0.0  ;;  %v902_v33 = vadd.f32 %v1984_v54, %v1956_v12  ;;  %v1987_v35 = vadd.f32 %v1986_v57, %v1985_v56 }
 0x164   :  { %v1239_v38 = vadd.f32 %v1238_v62, %v1237_v60 }
 0x165   :  { %v2963_v39 = vadd.f32 %v2165_v11, %v902_v33  ;;  %v905_v53 = vadd.f32 %v1987_v35, %v1959_v3 }
 0x166   :  { %v2038_v2 = vpop.f32.mrb[28].mxu0 }
 0x167   :  { %v1235_v0 = vmul.f32 %v2963_v39, %v2963_v39  ;;  %v2967_v40 = vadd.f32 %v2166_v15, %v905_v53  ;;  %v1179_v32 = vadd.f32 %v2921_v48, %v2963_v39  ;;  %v2039_v8 = vpop.f32.mrb[29].mxu0 }
 0x168   :  { %v2040_v16 = vadd.f32 %v2039_v8, %v2038_v2  ;;  %v2041_v18 = vpop.f32.mrb[30].mxu0 }
 0x169   :  { %v1240_v4 = vsel %vm371_vm0, %v1235_v0, 0.0  ;;  %v1236_v6 = vmul.f32 %v2967_v40, %v2967_v40  ;;  %v1180_v12 = vadd.f32 %v2933_v58, %v2967_v40  ;;  %v2042_v20 = vpop.f32.mrb[31].mxu0 }
 0x16a   :  { %v1241_v14 = vadd.f32 %v1240_v4, %v1239_v38  ;;  %v2043_v5 = vadd.f32 %v2042_v20, %v2041_v18 }
 0x16b   :  { %v1242_v1 = vsel %vm371_vm0, %v1236_v6, 0.0 }
 0x16c   :  { %v1243_v3 = vadd.f32 %v1242_v1, %v1241_v14 }
 0x16e   :  { %v1244_v7 = vrot.slane %v1243_v3, 4  ;;  %v2044_v9 = vpop.f32.mrb[32].mxu0 }
 0x16f   :  { %v2045_v11 = vpop.f32.mrb[33].mxu0 }
 0x170   :  { %v1245_v48 = vadd.f32 %v1244_v7, %v1243_v3  ;;  %v2046_v10 = vadd.f32 %v2045_v11, %v2044_v9  ;;  %v2047_v15 = vpop.f32.mrb[34].mxu0 }
 0x171   :  { %v2048_v17 = vpop.f32.mrb[35].mxu0 }
 0x172   :  { %v1246_v13 = vrot.slane %v1245_v48, 2  ;;  %v2049_v21 = vadd.f32 %v2048_v17, %v2047_v15 }
 0x174   :  { %v1247_v19 = vadd.f32 %v1246_v13, %v1245_v48 }
 0x176   :  { %v1248_v22 = vrot.slane %v1247_v19, 1 }
 0x177   :  { %v2010_v58 = vpop.f32.mrb[32].mxu1 }
 0x178   :  { %v1249_v23 = vadd.f32 %v1248_v22, %v1247_v19  ;;  %v2011_v24 = vpop.f32.mrb[33].mxu1 }
 0x179   :  { %v2012_v26 = vadd.f32 %v2011_v24, %v2010_v58  ;;  %v2013_v27 = vpop.f32.mrb[34].mxu1 }
 0x17a   :  { %v2014_v28 = vpop.f32.mrb[35].mxu1  ;;  %v2977_v29 = vadd.f32 %v1249_v23, %v1232_v25 }
 0x17b   :  { %v2015_v30 = vadd.f32 %v2014_v28, %v2013_v27  ;;  %v1110_v31 = vadd.f32 %v2040_v16, %v2012_v26 }
 0x17d   :  { %v1113_v36 = vadd.f32 %v2043_v5, %v2015_v30 }
 0x17f   :  { %v2016_v41 = vpop.f32.mrb[36].mxu1 }
 0x180   :  { %v2017_v43 = vpop.f32.mrb[37].mxu1 }
 0x181   :  { %v2018_v46 = vadd.f32 %v2017_v43, %v2016_v41  ;;  %v2019_v50 = vpop.f32.mrb[38].mxu1 }
 0x182   :  { %v2020_v52 = vpop.f32.mrb[39].mxu1 }
 0x183   :  { %v2021_v54 = vadd.f32 %v2020_v52, %v2019_v50  ;;  %v1118_v56 = vadd.f32 %v2046_v10, %v2018_v46 }
 0x185   :  { %v1121_v57 = vadd.f32 %v2049_v21, %v2021_v54 }
 0x186   :  { %v2072_v35 = vpop.f32.mrb[36].mxu0 }
 0x187   :  { %v2177_v60 = vpop.f32.mrb[40].mxu1  ;;  %v2073_v53 = vpop.f32.mrb[37].mxu0 }
 0x188   :  { %v2979_v62 = vadd.f32 %v2177_v60, %v1118_v56  ;;  %v1158_v33 = vpop.f32.mrb[41].mxu1  ;;  %v2074_v6 = vadd.f32 %v2073_v53, %v2072_v35  ;;  %v2075_v8 = vpop.f32.mrb[38].mxu0 }
 0x189   :  { %v2981_v38 = vadd.f32 %v1158_v33, %v1110_v31  ;;  %v2178_v25 = vpop.f32.mrb[42].mxu1  ;;  %v2076_v1 = vpop.f32.mrb[39].mxu0 }
 0x18a   :  { %v1183_v0 = vadd.f32 %v1179_v32, %v2979_v62  ;;  %v2984_v2 = vadd.f32 %v2178_v25, %v1121_v57  ;;  %v1161_v4 = vpop.f32.mrb[43].mxu1  ;;  %v1253_v3 = vmul.f32 %v2979_v62, %v2979_v62  ;;  %v2077_v7 = vadd.f32 %v2076_v1, %v2075_v8 }
 0x18b   :  { %v1181_v14 = vadd.f32 %v2954_v47, %v2981_v38  ;;  %v1251_v16 = vmul.f32 %v2981_v38, %v2981_v38  ;;  %v2990_v18 = vadd.f32 %v1161_v4, %v1113_v36 }
 0x18c   :  { %v1184_v20 = vadd.f32 %v1180_v12, %v2984_v2  ;;  %v1254_v47 = vmul.f32 %v2984_v2, %v2984_v2  ;;  %v1258_v17 = vsel %vm371_vm0, %v1253_v3, 0.0 }
 0x18d   :  { %v1182_v32 = vadd.f32 %v2959_v51, %v2990_v18  ;;  %v1252_v5 = vmul.f32 %v2990_v18, %v2990_v18  ;;  %v1185_v48 = vsel %vm371_vm0, %v1181_v14, 0.0  ;;  %v1255_v9 = vsel %vm371_vm0, %v1251_v16, 0.0 }
 0x18e   :  { %v2078_v15 = vpop.f32.mrb[40].mxu0  ;;  %v1188_v51 = vsel %vm371_vm0, %v1183_v0, 0.0  ;;  %v1190_v24 = vsel %vm371_vm0, %v1184_v20, 0.0  ;;  %v1260_v26 = vsel %vm371_vm0, %v1254_v47, 0.0 }
 0x18f   :  { %v1186_v11 = vsel %vm371_vm0, %v1182_v32, 0.0  ;;  %v1256_v12 = vsel %vm371_vm0, %v1252_v5, 0.0  ;;  %v2079_v19 = vpop.f32.mrb[41].mxu0 }
 0x190   :  { %v1187_v13 = vadd.f32 %v1186_v11, %v1185_v48  ;;  %v1257_v10 = vadd.f32 %v1256_v12, %v1255_v9  ;;  %v2080_v58 = vadd.f32 %v2079_v19, %v2078_v15  ;;  %v2081_v23 = vpop.f32.mrb[42].mxu0 }
 0x191   :  { %v2082_v27 = vpop.f32.mrb[43].mxu0 }
 0x192   :  { %v1189_v21 = vadd.f32 %v1188_v51, %v1187_v13  ;;  %v1259_v22 = vadd.f32 %v1258_v17, %v1257_v10  ;;  %v2083_v31 = vadd.f32 %v2082_v27, %v2081_v23 }
 0x194   :  { %v3009_v28 = vadd.f32 %v1190_v24, %v1189_v21  ;;  %v1261_v30 = vadd.f32 %v1260_v26, %v1259_v22 }
 0x196   :  { %v1262_v36 = vrot.slane %v1261_v30, 4  ;;  %v2084_v43 = vpop.f32.mrb[44].mxu0 }
 0x197   :  { %v2085_v46 = vpop.f32.mrb[45].mxu0 }
 0x198   :  { %v1263_v41 = vadd.f32 %v1262_v36, %v1261_v30  ;;  %v2086_v52 = vadd.f32 %v2085_v46, %v2084_v43  ;;  %v2087_v54 = vpop.f32.mrb[46].mxu0 }
 0x199   :  { %v2088_v56 = vpop.f32.mrb[47].mxu0 }
 0x19a   :  { %v1264_v50 = vrot.slane %v1263_v41, 2 }
 0x19c   :  { %v1265_v57 = vadd.f32 %v1264_v50, %v1263_v41 }
 0x19e   :  { %v1266_v60 = vrot.slane %v1265_v57, 1  ;;  %v1506_v33 = vpop.f32.mrb[48].mxu0 }
 0x19f   :  { %v2189_v25 = vpop.f32.mrb[49].mxu0 }
 0x1a0   :  { %v1267_v35 = vadd.f32 %v1266_v60, %v1265_v57  ;;  %v1509_v53 = vpop.f32.mrb[50].mxu0 }
 0x1a1   :  { %v2190_v4 = vpop.f32.mrb[51].mxu0 }
 0x1a2   :  { %v3012_v0 = vadd.f32 %v1267_v35, %v2977_v29  ;;  %v1192_v35 = vrot.slane %v3009_v28, 4 }
 0x1a6   :  { %v1514_v16 = vpop.f32.mrb[52].mxu0 }
 0x1a7   :  { %v2106_v8 = vpop.f32.mrb[44].mxu1  ;;  %v2193_v3 = vpop.f32.mrb[53].mxu0 }
 0x1a8   :  { %v2107_v14 = vpop.f32.mrb[45].mxu1  ;;  %v1517_v5 = vpop.f32.mrb[54].mxu0 }
 0x1a9   :  { %v2108_v1 = vadd.f32 %v2107_v14, %v2106_v8  ;;  %v2109_v20 = vpop.f32.mrb[46].mxu1  ;;  %v2194_v9 = vpop.f32.mrb[55].mxu0 }
 0x1aa   :  { %v2110_v32 = vpop.f32.mrb[47].mxu1 }
 0x1ab   :  { %v1451_v47 = vadd.f32 %v2108_v1, %v2074_v6  ;;  %v2111_v48 = vadd.f32 %v2110_v32, %v2109_v20 }
 0x1ad   :  { %v1507_v11 = vadd.f32 %v1506_v33, %v1451_v47  ;;  %v1454_v12 = vadd.f32 %v2111_v48, %v2077_v7 }
 0x1ae   :  { %v1522_v29 = vpop.f32.mrb[56].mxu0 }
 0x1af   :  { %v1545_v13 = vmul.f32 %v1507_v11, %v1507_v11  ;;  %v1510_v10 = vadd.f32 %v1509_v53, %v1454_v12  ;;  %v2112_v15 = vpop.f32.mrb[48].mxu1  ;;  %v1528_v17 = vsel %vm371_vm0, %v1507_v11, 0.0  ;;  %v2197_v24 = vpop.f32.mrb[57].mxu0 }
 0x1b0   :  { %v2113_v51 = vpop.f32.mrb[49].mxu1  ;;  %v1525_v6 = vpop.f32.mrb[58].mxu0 }
 0x1b1   :  { %v1529_v19 = vsel %vm371_vm0, %v1510_v10, 0.0  ;;  %v1546_v21 = vmul.f32 %v1510_v10, %v1510_v10  ;;  %v2114_v22 = vadd.f32 %v2113_v51, %v2112_v15  ;;  %v2115_v23 = vpop.f32.mrb[50].mxu1  ;;  %v1550_v30 = vsel %vm371_vm0, %v1545_v13, 0.0  ;;  %v2198_v43 = vpop.f32.mrb[59].mxu0 }
 0x1b2   :  { %v1530_v26 = vadd.f32 %v1529_v19, %v1528_v17  ;;  %v2116_v27 = vpop.f32.mrb[51].mxu1 }
 0x1b3   :  { %v1551_v7 = vsel %vm371_vm0, %v1546_v21, 0.0  ;;  %v1459_v36 = vadd.f32 %v2114_v22, %v2080_v58  ;;  %v2117_v41 = vadd.f32 %v2116_v27, %v2115_v23 }
 0x1b4   :  { %v1552_v46 = vadd.f32 %v1551_v7, %v1550_v30 }
 0x1b5   :  { %v1515_v50 = vadd.f32 %v1514_v16, %v1459_v36  ;;  %v1462_v54 = vadd.f32 %v2117_v41, %v2083_v31 }
 0x1b7   :  { %v1531_v56 = vsel %vm371_vm0, %v1515_v50, 0.0  ;;  %v1547_v57 = vmul.f32 %v1515_v50, %v1515_v50  ;;  %v1518_v60 = vadd.f32 %v1517_v5, %v1462_v54  ;;  %v2118_v33 = vpop.f32.mrb[52].mxu1  ;;  %v1193_v5 = vadd.f32 %v1192_v35, %v3009_v28 }
 0x1b8   :  { %v1532_v25 = vadd.f32 %v1531_v56, %v1530_v26  ;;  %v2119_v53 = vpop.f32.mrb[53].mxu1 }
 0x1b9   :  { %v1553_v4 = vsel %vm371_vm0, %v1547_v57, 0.0  ;;  %v1533_v8 = vsel %vm371_vm0, %v1518_v60, 0.0  ;;  %v1548_v14 = vmul.f32 %v1518_v60, %v1518_v60  ;;  %v2120_v58 = vadd.f32 %v2119_v53, %v2118_v33  ;;  %v2121_v1 = vpop.f32.mrb[54].mxu1  ;;  %v1570_v33 = vld [vmem:[%s3062_s3] sm:$0x1] }
 0x1ba   :  { %v1554_v20 = vadd.f32 %v1553_v4, %v1552_v46  ;;  %v1534_v3 = vadd.f32 %v1533_v8, %v1532_v25  ;;  %v2122_v16 = vpop.f32.mrb[55].mxu1  ;;  %v1194_v12 = vrot.slane %v1193_v5, 2  ;;  %v1578_v57 = vlaneseq  ;;  %v1574_v4 = vld [vmem:[%s3063_s4] sm:$0x1] }
 0x1bb   :  { %v1555_v31 = vsel %vm371_vm0, %v1548_v14, 0.0  ;;  %v1467_v32 = vadd.f32 %v2120_v58, %v2086_v52 }
 0x1bc   :  { %v1556_v47 = vadd.f32 %v1555_v31, %v1554_v20  ;;  %v1195_v17 = vadd.f32 %v1194_v12, %v1193_v5  ;;  %v1579_v60 = vshrl.u32 %v1578_v57, 7 }
 0x1bd   :  { %v1523_v48 = vadd.f32 %v1522_v29, %v1467_v32 }
 0x1be   :  { %v1196_v24 = vrot.slane %v1195_v17, 1  ;;  %v1580_v35 = vsub.s32 0, %v1579_v60 }
 0x1bf   :  { %v1536_v9 = vsel %vm1535_vm2, %v1523_v48, 0.0  ;;  %v1549_v11 = vmul.f32 %v1523_v48, %v1523_v48 }
 0x1c0   :  { %v1537_v13 = vadd.f32 %v1536_v9, %v1534_v3  ;;  %v1197_v6 = vadd.f32 %v1196_v24, %v1195_v17 }
 0x1c1   :  { %v1557_v10 = vsel %vm1535_vm2, %v1549_v11, 0.0 }
 0x1c2   :  { %v1538_v15 = vrot.slane %v1537_v13, 4  ;;  %v1558_v51 = vadd.f32 %v1557_v10, %v1556_v47 }
 0x1c4   :  { %v1539_v19 = vadd.f32 %v1538_v15, %v1537_v13  ;;  %v1559_v21 = vrot.slane %v1558_v51, 4 }
 0x1c6   :  { %v1540_v22 = vrot.slane %v1539_v19, 2  ;;  %v1560_v23 = vadd.f32 %v1559_v21, %v1558_v51 }
 0x1c8   :  { %v1541_v26 = vadd.f32 %v1540_v22, %v1539_v19  ;;  %v1561_v52 = vrot.slane %v1560_v23, 2 }
 0x1ca   :  { %v1542_v27 = vrot.slane %v1541_v26, 1  ;;  %v1562_v28 = vadd.f32 %v1561_v52, %v1560_v23 }
 0x1cc   :  { %v1543_v30 = vadd.f32 %v1542_v27, %v1541_v26  ;;  %v1563_v29 = vrot.slane %v1562_v28, 1 }
 0x1ce   :  { %v1544_v7 = vadd.f32 %v1543_v30, %v1197_v6  ;;  %v1564_v36 = vadd.f32 %v1563_v29, %v1562_v28 }
 0x1d0   :  { %v1565_v41 = vadd.f32 %v1564_v36, %v3012_v0  ;;  %v1566_v43 = vmul.f32 0.0061728396, %v1544_v7 }
 0x1d2   :  { %v1567_v46 = vmul.f32 0.0061728396, %v1565_v41  ;;  %v1568_v50 = vmul.f32 %v1566_v43, %v1566_v43 }
 0x1d4   :  { %v1569_v54 = vsub.f32 %v1567_v46, %v1568_v50 }
 0x1d6   :  { %v1571_v56 = vadd.f32 1e-05, %v1569_v54 }
 0x1d8   :  { %2312 = vrsqrt.f32 %v1571_v56 }
 0x1e2   :  { %v2313_v25 = vpop.eup %2312 }
 0x1e3   :  { %v1573_v53 = vmul.f32 %v2313_v25, %v1570_v33 }
 0x1e5   :  { %v1575_v0 = vmul.f32 %v1573_v53, %v1566_v43  ;;  %v1581_v8 = vrot.slane %v1573_v53, %v1580_v35 }
 0x1e7   :  { %v1576_v14 = vsub.f32 %v1574_v4, %v1575_v0  ;;  %v1583_v58 = vmul.f32 %v1581_v8, %v2897_v61  ;;  %v1584_v1 = vmul.f32 %v1581_v8, %v2903_v34  ;;  %v1585_v20 = vmul.f32 %v1581_v8, %v2895_v59 }
 0x1e8   :  { %v1586_v3 = vmul.f32 %v1581_v8, %v2899_v63  ;;  %v1597_v16 = vmul.f32 %v1581_v8, %v2917_v45  ;;  %v1598_v31 = vmul.f32 %v1581_v8, %v2929_v55  ;;  %v1599_v32 = vmul.f32 %v1581_v8, %v2915_v42 }
 0x1e9   :  { %v1591_v5 = vrot.slane %v1576_v14, %v1580_v35  ;;  %v1600_v47 = vmul.f32 %v1581_v8, %v2923_v49  ;;  %v1609_v48 = vmul.f32 %v1581_v8, %v2947_v37  ;;  %v1610_v9 = vmul.f32 %v1581_v8, %v2951_v44 }
 0x1ea   :  { %v1611_v61 = vmul.f32 %v1581_v8, %v2963_v39  ;;  %v1612_v34 = vmul.f32 %v1581_v8, %v2967_v40  ;;  %v1617_v59 = vmul.f32 %v1581_v8, %v2981_v38  ;;  %v1618_v63 = vmul.f32 %v1581_v8, %v2990_v18 }
 0x1eb   :  { %v1593_v45 = vadd.f32 %v1591_v5, %v1583_v58  ;;  %v1594_v11 = vadd.f32 %v1591_v5, %v1584_v1  ;;  %v1595_v55 = vadd.f32 %v1591_v5, %v1585_v20  ;;  %v1596_v12 = vadd.f32 %v1591_v5, %v1586_v3 }
 0x1ec   :  { %v1601_v42 = vadd.f32 %v1597_v16, %v1591_v5  ;;  %v1602_v13 = vadd.f32 %v1598_v31, %v1591_v5  ;;  %v1603_v10 = vadd.f32 %v1599_v32, %v1591_v5  ;;  %v1604_v49 = vadd.f32 %v1600_v47, %v1591_v5 }
 0x1ed   :  { %v1613_v15 = vadd.f32 %v1609_v48, %v1591_v5  ;;  %v1614_v37 = vadd.f32 %v1610_v9, %v1591_v5  ;;  %v1615_v51 = vadd.f32 %v1611_v61, %v1591_v5  ;;  %v1616_v44 = vadd.f32 %v1612_v34, %v1591_v5 }
 0x1ee   :  { %v1605_v17 = vmax.f32 %v1593_v45, %v1601_v42  ;;  %v1606_v39 = vmax.f32 %v1594_v11, %v1602_v13  ;;  %v1607_v19 = vmax.f32 %v1595_v55, %v1603_v10  ;;  %v1608_v40 = vmax.f32 %v1596_v12, %v1604_v49 }
 0x1ef   :  { %v1619_v38 = vmul.f32 %v1581_v8, %v2979_v62  ;;  %v1620_v18 = vmul.f32 %v1581_v8, %v2984_v2  ;;  %v1621_v21 = vadd.f32 %v1617_v59, %v1591_v5  ;;  %v1622_v22 = vadd.f32 %v1618_v63, %v1591_v5 }
 0x1f1   :  { %v1623_v23 = vadd.f32 %v1619_v38, %v1591_v5  ;;  %v1624_v24 = vadd.f32 %v1620_v18, %v1591_v5  ;;  %v1625_v26 = vmax.f32 %v1613_v15, %v1621_v21  ;;  %v1626_v52 = vmax.f32 %v1614_v37, %v1622_v22 }
 0x1f3   :  { %v1627_v27 = vmax.f32 %v1615_v51, %v1623_v23  ;;  %v1628_v28 = vmax.f32 %v1616_v44, %v1624_v24  ;;  %v1629_v6 = vmax.f32 %v1605_v17, %v1625_v26  ;;  %v1630_v30 = vmax.f32 %v1606_v39, %v1626_v52 }
 0x1f5   :  { %v1631_v29 = vmax.f32 %v1607_v19, %v1627_v27  ;;  %v1632_v7 = vmax.f32 %v1608_v40, %v1628_v28  ;;  %v1633_v36 = vmax.f32 %v1629_v6, 0.0  ;;  %v1634_v41 = vmax.f32 %v1630_v30, 0.0 }
 0x1f7   :  { %v1635_v43 = vmax.f32 %v1631_v29, 0.0  ;;  %v1636_v46 = vmax.f32 %v1632_v7, 0.0  ;;  %v1804_v62 = vpack.c.bf16 %v1633_v36, %v1633_v36  ;;  %v1805_v50 = vpack.c.bf16 %v1634_v41, %v1634_v41 }
 0x1f9   :  { %v1806_v2 = vpack.c.bf16 %v1635_v43, %v1635_v43  ;;  %v1807_v54 = vpack.c.bf16 %v1636_v46, %v1636_v46  ;;  %1654 = vst.msk [vmem:[%s3064_s5] sm:$0xf] %vm1653_vm3, %v1804_v62  ;;  %1655 = vst.msk [vmem:[%s3064_s5 + $0x4] sm:$0xf] %vm1653_vm3, %v1805_v50 }
 0x1fb   :  { %1656 = vst.msk [vmem:[%s3064_s5 + $0x8] sm:$0xf] %vm1653_vm3, %v1806_v2  ;;  %1657 = vst.msk [vmem:[%s3064_s5 + $0xc] sm:$0xf] %vm1653_vm3, %v1807_v54 }

// kernel: _lambda_.7
= control target key start
LH: loop header
LB: loop body
LE: loop exit
PB: predicated region body
PF: predicated region fallthrough
CT: control target
= control target key end

     0   :  { %vm369_vm0 = vcmask 523264   ;;  %s1007_s0 = inlined_call_operand.vmem [shape: bf16[32,576], index: 0, kind: input, shape index: {}]   ;;  %s1008_s1 = inlined_call_operand.vmem [shape: bf16[576,64], index: 1, kind: input, shape index: {}]   ;;  %s1009_s2 = inlined_call_operand.vmem [shape: f32[1,64], index: 2, kind: input, shape index: {}]   ;;  %s1010_s3 = inlined_call_operand.vmem [shape: f32[1,64], index: 3, kind: input, shape index: {}]   ;;  %s1011_s4 = inlined_call_operand.hbm [shape: f32[32,64], index: 4, kind: output, shape index: {}]  }
   0x1   :  { %v733_v0 = vld [vmem:[%s1008_s1 + $0x40] sm:$0xff]   ;;  %v737_v4 = vld [vmem:[%s1008_s1 + $0x48] sm:$0xff]   ;;  %v741_v8 = vld [vmem:[%s1008_s1 + $0x50] sm:$0xff]  }
   0x2   :  { %v734_v1 = vld [vmem:[%s1008_s1 + $0xc0] sm:$0xff]   ;;  %656 = vmatprep.subr.bf16.mxu0 %v733_v0  ;;  %v738_v5 = vld [vmem:[%s1008_s1 + $0xc8] sm:$0xff]   ;;  %v742_v9 = vld [vmem:[%s1008_s1 + $0xd0] sm:$0xff]  }
   0x3   :  { %v735_v2 = vld [vmem:[%s1008_s1] sm:$0xff]   ;;  %684 = vmatprep.subr.bf16.mxu1 %v734_v1  ;;  %v739_v6 = vld [vmem:[%s1008_s1 + $0x8] sm:$0xff]   ;;  %v743_v10 = vld [vmem:[%s1008_s1 + $0x10] sm:$0xff]  }
   0x4   :  { %v736_v3 = vld [vmem:[%s1008_s1 + $0x80] sm:$0xff]   ;;  %657 = vmatpush3.bf16.msra.mxu0 %v735_v2  ;;  %v740_v7 = vld [vmem:[%s1008_s1 + $0x88] sm:$0xff]   ;;  %v744_v11 = vld [vmem:[%s1008_s1 + $0x90] sm:$0xff]  }
   0x5   :  { %685 = vmatpush3.bf16.msra.mxu1 %v736_v3  ;;  %658 = vmatprep.subr.bf16.mxu0 %v737_v4  ;;  %v745_v12 = vld [vmem:[%s1008_s1 + $0x58] sm:$0xff]   ;;  %v749_v16 = vld [vmem:[%s1008_s1 + $0x60] sm:$0xff]   ;;  %v753_v20 = vld [vmem:[%s1008_s1 + $0x68] sm:$0xff]  }
   0x6   :  { %686 = vmatprep.subr.bf16.mxu1 %v738_v5  ;;  %v746_v13 = vld [vmem:[%s1008_s1 + $0xd8] sm:$0xff]   ;;  %v750_v17 = vld [vmem:[%s1008_s1 + $0xe0] sm:$0xff]   ;;  %v754_v21 = vld [vmem:[%s1008_s1 + $0xe8] sm:$0xff]  }
   0x7   :  { %v747_v14 = vld [vmem:[%s1008_s1 + $0x18] sm:$0xff]   ;;  %v751_v18 = vld [vmem:[%s1008_s1 + $0x20] sm:$0xff]   ;;  %v755_v22 = vld [vmem:[%s1008_s1 + $0x28] sm:$0xff]  }
   0x8   :  { %659 = vmatpush3.bf16.msra.mxu0 %v739_v6  ;;  %v748_v15 = vld [vmem:[%s1008_s1 + $0x98] sm:$0xff]   ;;  %v752_v19 = vld [vmem:[%s1008_s1 + $0xa0] sm:$0xff]   ;;  %v756_v23 = vld [vmem:[%s1008_s1 + $0xa8] sm:$0xff]  }
   0x9   :  { %687 = vmatpush3.bf16.msra.mxu1 %v740_v7  ;;  %660 = vmatprep.subr.bf16.mxu0 %v741_v8  ;;  %v757_v24 = vld [vmem:[%s1008_s1 + $0x70] sm:$0xff]   ;;  %v761_v28 = vld [vmem:[%s1008_s1 + $0x78] sm:$0xff]   ;;  %v770_v35 = vld [vmem:[%s1007_s0 + $0xc] ss:$20 sps:$4 sm:$0xff]  }
   0xa   :  { %688 = vmatprep.subr.bf16.mxu1 %v742_v9  ;;  %v758_v25 = vld [vmem:[%s1008_s1 + $0xf0] sm:$0xff]   ;;  %v762_v29 = vld [vmem:[%s1008_s1 + $0xf8] sm:$0xff]   ;;  %v771_v36 = vld [vmem:[%s1008_s1 + $0x100] sm:$0xff]   ;;  %457 = vmatprep.mubr.bf16.mxu1 %v770_v35 }
   0xb   :  { %v759_v26 = vld [vmem:[%s1008_s1 + $0x30] sm:$0xff]   ;;  %v763_v30 = vld [vmem:[%s1008_s1 + $0x38] sm:$0xff]   ;;  %v772_v37 = vld [vmem:[%s1008_s1 + $0x108] sm:$0xff]  }
   0xc   :  { %661 = vmatpush3.bf16.msra.mxu0 %v743_v10  ;;  %v760_v27 = vld [vmem:[%s1008_s1 + $0xb0] sm:$0xff]   ;;  %v764_v31 = vld [vmem:[%s1008_s1 + $0xb8] sm:$0xff]   ;;  %v773_v38 = vld [vmem:[%s1007_s0 + $0x2c] ss:$20 sps:$4 sm:$0xff]  }
   0xd   :  { %689 = vmatpush3.bf16.msra.mxu1 %v744_v11  ;;  %662 = vmatprep.subr.bf16.mxu0 %v745_v12  ;;  %v765_v32 = vld [vmem:[%s1007_s0] ss:$20 sps:$4 sm:$0xff]   ;;  %v767_v33 = vld [vmem:[%s1007_s0 + $0x4] ss:$20 sps:$4 sm:$0xff]   ;;  %v768_v34 = vld [vmem:[%s1007_s0 + $0x8] ss:$20 sps:$4 sm:$0xff]  }
   0xe   :  { %690 = vmatprep.subr.bf16.mxu1 %v746_v13  ;;  %408 = vmatprep.mubr.bf16.mxu0 %v767_v33  ;;  %v775_v39 = vld [vmem:[%s1007_s0 + $0x34] ss:$20 sps:$4 sm:$0xff]   ;;  %v778_v42 = vld [vmem:[%s1007_s0 + $0x30] ss:$20 sps:$4 sm:$0xff]   ;;  %v780_v44 = vld [vmem:[%s1008_s1 + $0x118] sm:$0xff]  }
   0xf   :  { %v777_v40 = vld [vmem:[%s1007_s0 + $0x28] ss:$20 sps:$4 sm:$0xff]   ;;  %v779_v41 = vld [vmem:[%s1008_s1 + $0x110] sm:$0xff]  }
  0x10   :  { %663 = vmatpush3.bf16.msra.mxu0 %v747_v14  ;;  %v781_v43 = vld [vmem:[%s1007_s0 + $0x10] ss:$20 sps:$4 sm:$0xff]  }
  0x11   :  { %691 = vmatpush3.bf16.msra.mxu1 %v748_v15  ;;  %664 = vmatprep.subr.bf16.mxu0 %v749_v16 }
  0x12   :  { %692 = vmatprep.subr.bf16.mxu1 %v750_v17 }
  0x14   :  { %665 = vmatpush3.bf16.msra.mxu0 %v751_v18 }
  0x15   :  { %693 = vmatpush3.bf16.msra.mxu1 %v752_v19  ;;  %666 = vmatprep.subr.bf16.mxu0 %v753_v20 }
  0x16   :  { %694 = vmatprep.subr.bf16.mxu1 %v754_v21 }
  0x18   :  { %667 = vmatpush3.bf16.msra.mxu0 %v755_v22 }
  0x19   :  { %695 = vmatpush3.bf16.msra.mxu1 %v756_v23  ;;  %668 = vmatprep.subr.bf16.mxu0 %v757_v24 }
  0x1a   :  { %696 = vmatprep.subr.bf16.mxu1 %v758_v25 }
  0x1c   :  { %669 = vmatpush3.bf16.msra.mxu0 %v759_v26 }
  0x1d   :  { %697 = vmatpush3.bf16.msra.mxu1 %v760_v27  ;;  %670 = vmatprep.subr.bf16.mxu0 %v761_v28 }
  0x1e   :  { %698 = vmatprep.subr.bf16.mxu1 %v762_v29 }
  0x20   :  { %671 = vmatpush3.bf16.msra.mxu0 %v763_v30 }
  0x21   :  { %699 = vmatpush3.bf16.msra.mxu1 %v764_v31  ;;  %718 = vmatprep.subr.bf16.mxu0 %v771_v36 }
  0x23   :  { %409 = vmatmul.mubr.bf16.vlgmr.msra.gmra.mrb[0].mxu0 %v765_v32 }
  0x24   :  { %458 = vmatmul.mubr.bf16.vlgmr.msra.gmra.mrb[0].mxu1 %v768_v34  ;;  %719 = vmatpush3.bf16.msra.mxu0 %v771_v36 }
  0x25   :  { %720 = vmatprep.subr.bf16.mxu0 %v772_v37  ;;  %416 = vmatprep.mubr.bf16.mxu0 %v773_v38 }
  0x26   :  { %465 = vmatprep.mubr.bf16.mxu1 %v775_v39 }
  0x28   :  { %721 = vmatpush3.bf16.msra.mxu0 %v772_v37 }
  0x29   :  { %722 = vmatprep.subr.bf16.mxu0 %v779_v41 }
  0x2a   :  { %9 = vsyncpa [#allocation3], 0  ;;  %v782_v45 = vld [vmem:[%s1007_s0 + $0x38] ss:$20 sps:$4 sm:$0xff]   ;;  %s809_s5 = smov [#allocation2]  }
  0x2b   :  { %417 = vmatmul.mubr.bf16.gmra.mrb[4].mxu0 %v777_v40  ;;  %s597_s6 = sshll.u32 %s809_s5, 4  ;;  %s598_s6 = int_to_ptr.vmem [resolvable:$true] %s597_s6 }
  0x2c   :  { %466 = vmatmul.mubr.bf16.gmra.mrb[4].mxu1 %v778_v42  ;;  %726 = vmatprep.mubr.msk.bf16.mxu0 %vm369_vm0, %v781_v43  ;;  %p790_p1 = scmp.lt.s32.totalorder %s598_s6, %s598_s6 }
  0x2d   :  { %723 = vmatpush3.bf16.msra.mxu0 %v779_v41 }
  0x2e   :  { %724 = vmatprep.subr.bf16.mxu0 %v780_v44 }
  0x31   :  { %725 = vmatpush3.bf16.msra.mxu0 %v780_v44 }
  0x34   :  { %727 = vmatmul.mubr.msk.bf16.vlgmr.msra.gmra.mrb[8].mxu0 %vm369_vm0, %v782_v45 }
  0xf6   :  { %v672_v46 = vpop.f32.mrb[0].mxu0 }
  0xf7   :  { %v700_v47 = vpop.f32.mrb[0].mxu1  ;;  %v673_v48 = vpop.f32.mrb[1].mxu0 }
  0xf8   :  { %v674_v49 = vadd.f32 %v673_v48, %v672_v46  ;;  %v701_v50 = vpop.f32.mrb[1].mxu1  ;;  %v675_v51 = vpop.f32.mrb[2].mxu0 }
  0xf9   :  { %v702_v52 = vadd.f32 %v701_v50, %v700_v47  ;;  %v703_v53 = vpop.f32.mrb[2].mxu1  ;;  %v676_v54 = vpop.f32.mrb[3].mxu0 }
  0xfa   :  { %v677_v55 = vadd.f32 %v676_v54, %v675_v51  ;;  %v704_v56 = vpop.f32.mrb[3].mxu1 }
  0xfb   :  { %v705_v57 = vadd.f32 %v704_v56, %v703_v53  ;;  %v460_v58 = vadd.f32 %v702_v52, %v674_v49  ;;  %v565_v53 = vlaneseq }
  0xfd   :  { %v463_v59 = vadd.f32 %v705_v57, %v677_v55  ;;  %v566_v54 = vshrl.u32 %v565_v53, 7  ;;  %v557_v55 = vld [vmem:[%s1009_s2] sm:$0x1]  ;;  %s785_s2 = scalar_lea.vmem %s598_s6, 512 }
  0xfe   :  { %v678_v60 = vpop.f32.mrb[4].mxu0  ;;  %p786_p0 = scmp.ne.s32.totalorder %s598_s6, %s785_s2  ;;  %p791_p2 = scmp.lt.s32.totalorder %s785_s2, %s785_s2 }
  0xff   :  { %v706_v61 = vpop.f32.mrb[4].mxu1  ;;  %v679_v62 = vpop.f32.mrb[5].mxu0  ;;  %v567_v56 = vsub.s32 0, %v566_v54 }
 0x100   :  { %v680_v63 = vadd.f32 %v679_v62, %v678_v60  ;;  %v707_v0 = vpop.f32.mrb[5].mxu1  ;;  %v681_v1 = vpop.f32.mrb[6].mxu0  ;;  %p792_p3 = por %p791_p2, %p790_p1 }
 0x101   :  { %v708_v2 = vadd.f32 %v707_v0, %v706_v61  ;;  %v709_v3 = vpop.f32.mrb[6].mxu1  ;;  %v682_v4 = vpop.f32.mrb[7].mxu0 }
 0x102   :  { %v683_v5 = vadd.f32 %v682_v4, %v681_v1  ;;  %v710_v6 = vpop.f32.mrb[7].mxu1  ;;  %p793_p4 = pnand %p792_p3, %p786_p0 }
 0x103   :  { %v711_v7 = vadd.f32 %v710_v6, %v709_v3  ;;  %v468_v8 = vadd.f32 %v708_v2, %v680_v63 }
 0x105   :  { %v471_v9 = vadd.f32 %v711_v7, %v683_v5 }
 0x107   :  { %v728_v10 = vpop.f32.mrb[8].mxu0 }
 0x108   :  { %v517_v11 = vadd.f32 %v728_v10, %v468_v8  ;;  %v508_v12 = vpop.f32.mrb[9].mxu0 }
 0x109   :  { %v509_v13 = vadd.f32 %v508_v12, %v460_v58  ;;  %v729_v14 = vpop.f32.mrb[10].mxu0 }
 0x10a   :  { %v520_v15 = vadd.f32 %v729_v14, %v471_v9  ;;  %v511_v16 = vpop.f32.mrb[11].mxu0  ;;  %v538_v19 = vmul.f32 %v517_v11, %v517_v11  ;;  %v526_v24 = vsel %vm369_vm0, %v517_v11, 0.0 }
 0x10b   :  { %v536_v17 = vmul.f32 %v509_v13, %v509_v13  ;;  %v512_v18 = vadd.f32 %v511_v16, %v463_v59  ;;  %v523_v20 = vsel %vm369_vm0, %v509_v13, 0.0  ;;  %v561_v59 = vld [vmem:[%s1010_s3] sm:$0x1] }
 0x10c   :  { %v539_v26 = vmul.f32 %v520_v15, %v520_v15  ;;  %v543_v30 = vsel %vm369_vm0, %v538_v19, 0.0  ;;  %v528_v31 = vsel %vm369_vm0, %v520_v15, 0.0 }
 0x10d   :  { %v524_v21 = vsel %vm369_vm0, %v512_v18, 0.0  ;;  %v537_v22 = vmul.f32 %v512_v18, %v512_v18  ;;  %v540_v25 = vsel %vm369_vm0, %v536_v17, 0.0 }
 0x10e   :  { %v525_v23 = vadd.f32 %v524_v21, %v523_v20  ;;  %v545_v34 = vsel %vm369_vm0, %v539_v26, 0.0 }
 0x10f   :  { %v541_v27 = vsel %vm369_vm0, %v537_v22, 0.0 }
 0x110   :  { %v527_v28 = vadd.f32 %v526_v24, %v525_v23  ;;  %v542_v29 = vadd.f32 %v541_v27, %v540_v25 }
 0x112   :  { %v529_v32 = vadd.f32 %v528_v31, %v527_v28  ;;  %v544_v33 = vadd.f32 %v543_v30, %v542_v29 }
 0x114   :  { %v530_v35 = vrot.slane %v529_v32, 4  ;;  %v546_v36 = vadd.f32 %v545_v34, %v544_v33 }
 0x116   :  { %v531_v37 = vadd.f32 %v530_v35, %v529_v32  ;;  %v547_v38 = vrot.slane %v546_v36, 4 }
 0x118   :  { %v532_v39 = vrot.slane %v531_v37, 2  ;;  %v548_v40 = vadd.f32 %v547_v38, %v546_v36 }
 0x11a   :  { %v533_v41 = vadd.f32 %v532_v39, %v531_v37  ;;  %v549_v42 = vrot.slane %v548_v40, 2 }
 0x11c   :  { %v534_v43 = vrot.slane %v533_v41, 1  ;;  %v550_v44 = vadd.f32 %v549_v42, %v548_v40 }
 0x11e   :  { %v535_v45 = vadd.f32 %v534_v43, %v533_v41  ;;  %v551_v46 = vrot.slane %v550_v44, 1 }
 0x120   :  { %v552_v47 = vadd.f32 %v551_v46, %v550_v44  ;;  %v553_v48 = vmul.f32 0.03125, %v535_v45 }
 0x122   :  { %v554_v49 = vmul.f32 0.03125, %v552_v47  ;;  %v555_v50 = vmul.f32 %v553_v48, %v553_v48 }
 0x124   :  { %v556_v51 = vsub.f32 %v554_v49, %v555_v50 }
 0x126   :  { %v558_v52 = vadd.f32 1e-05, %v556_v51 }
 0x128   :  { %783 = vrsqrt.f32 %v558_v52 }
 0x132   :  { %v784_v57 = vpop.eup %783 }
 0x133   :  { %v560_v58 = vmul.f32 %v784_v57, %v557_v55 }
 0x135   :  { %v562_v60 = vmul.f32 %v560_v58, %v553_v48  ;;  %v568_v61 = vrot.slane %v560_v58, %v567_v56 }
 0x137   :  { %v563_v62 = vsub.f32 %v561_v59, %v562_v60  ;;  %v571_v63 = vmul.f32 %v568_v61, %v512_v18  ;;  %v570_v0 = vmul.f32 %v568_v61, %v509_v13  ;;  %v572_v1 = vmul.f32 %v568_v61, %v517_v11 }
 0x138   :  { %v573_v2 = vmul.f32 %v568_v61, %v520_v15 }
 0x139   :  { %v578_v3 = vrot.slane %v563_v62, %v567_v56 }
 0x13b   :  { %v581_v4 = vadd.f32 %v578_v3, %v571_v63  ;;  %v580_v5 = vadd.f32 %v578_v3, %v570_v0  ;;  %v582_v6 = vadd.f32 %v578_v3, %v572_v1  ;;  %v583_v7 = vadd.f32 %v578_v3, %v573_v2 }
 0x13d   :  { %v585_v8 = vmax.f32 %v581_v4, 0.0  ;;  %v584_v9 = vmax.f32 %v580_v5, 0.0  ;;  %v586_v10 = vmax.f32 %v582_v6, 0.0  ;;  %v587_v12 = vmax.f32 %v583_v7, 0.0 }
 0x13f   :  { %589 = vst.msk [vmem:[#allocation2 + $0x8] sm:$0xff] %vm369_vm0, %v585_v8  ;;  %588 = vst.msk [vmem:[#allocation2] sm:$0xff] %vm369_vm0, %v584_v9 }
 0x140   :  { %590 = vst.msk [vmem:[#allocation2 + $0x10] sm:$0xff] %vm369_vm0, %v586_v10  ;;  %591 = vst.msk [vmem:[#allocation2 + $0x18] sm:$0xff] %vm369_vm0, %v587_v12 }
 0x141   :  { %796 = shalt.err (!%p793_p4)
}
 0x142   :  { %s797_s8 = scalar_lea.hbm %s1011_s4, 512 }
 0x143   :  { %p798_p5 = scmp.ne.s32.totalorder %s1011_s4, %s797_s8  ;;  %p801_p6 = scmp.lt.u32.totalorder %s797_s8, %s1011_s4 }
 0x145   :  { %p803_p7 = pnand %p801_p6, %p798_p5 }
 0x147   :  { %806 = shalt.err (!%p803_p7)
}
 0x148   :  { %s810_s13 = smov 128   ;;  %s811_s14 = smov 8  }
 0x149   :  { %603 = dma.vmem_to_hbm [thread:$0]  %s598_s6, 512, %s1011_s4, [#allocation3], %s810_s13, %s810_s13, %s811_s14  }
 0x14a   :  { %807 = dma.done.wait [#allocation3], 512  }
 0x14b   :  { %808 = vsyncadd [#allocation3], 4294966784 }
 0x14c   :  { %607 = vsyncpa [#allocation3], 1 }

// kernel: _lambda_.6
= control target key start
LH: loop header
LB: loop body
LE: loop exit
PB: predicated region body
PF: predicated region fallthrough
CT: control target
= control target key end

     0   :  { %vm368_vm0 = vcmask 523264   ;;  %vm603_vm1 = vcmask 519168   ;;  %s985_s1 = inlined_call_operand.vmem [shape: bf16[576,64], index: 1, kind: input, shape index: {}]   ;;  %s986_s0 = inlined_call_operand.vmem [shape: bf16[32,576], index: 0, kind: input, shape index: {}]   ;;  %s987_s2 = inlined_call_operand.vmem [shape: f32[1,64], index: 2, kind: input, shape index: {}]   ;;  %s988_s3 = inlined_call_operand.vmem [shape: f32[1,64], index: 3, kind: input, shape index: {}]   ;;  %s989_s4 = inlined_call_operand.vmem [shape: bf16[32,64], index: 4, kind: output, shape index: {}]  }
   0x1   :  { %v742_v0 = vld [vmem:[%s985_s1 + $0x40] sm:$0xff]   ;;  %v746_v4 = vld [vmem:[%s985_s1 + $0x48] sm:$0xff]   ;;  %v750_v8 = vld [vmem:[%s985_s1 + $0x50] sm:$0xff]  }
   0x2   :  { %v743_v1 = vld [vmem:[%s985_s1 + $0xc0] sm:$0xff]   ;;  %668 = vmatprep.subr.bf16.mxu0 %v742_v0  ;;  %v747_v5 = vld [vmem:[%s985_s1 + $0xc8] sm:$0xff]   ;;  %v751_v9 = vld [vmem:[%s985_s1 + $0xd0] sm:$0xff]  }
   0x3   :  { %v744_v2 = vld [vmem:[%s985_s1] sm:$0xff]   ;;  %696 = vmatprep.subr.bf16.mxu1 %v743_v1  ;;  %v748_v6 = vld [vmem:[%s985_s1 + $0x8] sm:$0xff]   ;;  %v752_v10 = vld [vmem:[%s985_s1 + $0x10] sm:$0xff]  }
   0x4   :  { %v745_v3 = vld [vmem:[%s985_s1 + $0x80] sm:$0xff]   ;;  %669 = vmatpush3.bf16.msra.mxu0 %v744_v2  ;;  %v749_v7 = vld [vmem:[%s985_s1 + $0x88] sm:$0xff]   ;;  %v753_v11 = vld [vmem:[%s985_s1 + $0x90] sm:$0xff]  }
   0x5   :  { %697 = vmatpush3.bf16.msra.mxu1 %v745_v3  ;;  %670 = vmatprep.subr.bf16.mxu0 %v746_v4  ;;  %v754_v12 = vld [vmem:[%s985_s1 + $0x58] sm:$0xff]   ;;  %v758_v16 = vld [vmem:[%s985_s1 + $0x60] sm:$0xff]   ;;  %v762_v20 = vld [vmem:[%s985_s1 + $0x68] sm:$0xff]  }
   0x6   :  { %698 = vmatprep.subr.bf16.mxu1 %v747_v5  ;;  %v755_v13 = vld [vmem:[%s985_s1 + $0xd8] sm:$0xff]   ;;  %v759_v17 = vld [vmem:[%s985_s1 + $0xe0] sm:$0xff]   ;;  %v763_v21 = vld [vmem:[%s985_s1 + $0xe8] sm:$0xff]  }
   0x7   :  { %v756_v14 = vld [vmem:[%s985_s1 + $0x18] sm:$0xff]   ;;  %v760_v18 = vld [vmem:[%s985_s1 + $0x20] sm:$0xff]   ;;  %v764_v22 = vld [vmem:[%s985_s1 + $0x28] sm:$0xff]  }
   0x8   :  { %671 = vmatpush3.bf16.msra.mxu0 %v748_v6  ;;  %v757_v15 = vld [vmem:[%s985_s1 + $0x98] sm:$0xff]   ;;  %v761_v19 = vld [vmem:[%s985_s1 + $0xa0] sm:$0xff]   ;;  %v765_v23 = vld [vmem:[%s985_s1 + $0xa8] sm:$0xff]  }
   0x9   :  { %699 = vmatpush3.bf16.msra.mxu1 %v749_v7  ;;  %672 = vmatprep.subr.bf16.mxu0 %v750_v8  ;;  %v766_v24 = vld [vmem:[%s985_s1 + $0x70] sm:$0xff]   ;;  %v770_v28 = vld [vmem:[%s985_s1 + $0x78] sm:$0xff]   ;;  %v779_v35 = vld [vmem:[%s986_s0 + $0xc] ss:$20 sps:$4 sm:$0xff]  }
   0xa   :  { %700 = vmatprep.subr.bf16.mxu1 %v751_v9  ;;  %v767_v25 = vld [vmem:[%s985_s1 + $0xf0] sm:$0xff]   ;;  %v771_v29 = vld [vmem:[%s985_s1 + $0xf8] sm:$0xff]   ;;  %v780_v36 = vld [vmem:[%s985_s1 + $0x100] sm:$0xff]   ;;  %456 = vmatprep.mubr.bf16.mxu1 %v779_v35 }
   0xb   :  { %v768_v26 = vld [vmem:[%s985_s1 + $0x30] sm:$0xff]   ;;  %v772_v30 = vld [vmem:[%s985_s1 + $0x38] sm:$0xff]   ;;  %v781_v37 = vld [vmem:[%s985_s1 + $0x108] sm:$0xff]  }
   0xc   :  { %673 = vmatpush3.bf16.msra.mxu0 %v752_v10  ;;  %v769_v27 = vld [vmem:[%s985_s1 + $0xb0] sm:$0xff]   ;;  %v773_v31 = vld [vmem:[%s985_s1 + $0xb8] sm:$0xff]   ;;  %v782_v38 = vld [vmem:[%s986_s0 + $0x2c] ss:$20 sps:$4 sm:$0xff]  }
   0xd   :  { %701 = vmatpush3.bf16.msra.mxu1 %v753_v11  ;;  %674 = vmatprep.subr.bf16.mxu0 %v754_v12  ;;  %v774_v32 = vld [vmem:[%s986_s0] ss:$20 sps:$4 sm:$0xff]   ;;  %v776_v33 = vld [vmem:[%s986_s0 + $0x4] ss:$20 sps:$4 sm:$0xff]   ;;  %v777_v34 = vld [vmem:[%s986_s0 + $0x8] ss:$20 sps:$4 sm:$0xff]  }
   0xe   :  { %702 = vmatprep.subr.bf16.mxu1 %v755_v13  ;;  %407 = vmatprep.mubr.bf16.mxu0 %v776_v33  ;;  %v784_v39 = vld [vmem:[%s986_s0 + $0x34] ss:$20 sps:$4 sm:$0xff]   ;;  %v787_v42 = vld [vmem:[%s986_s0 + $0x30] ss:$20 sps:$4 sm:$0xff]   ;;  %v789_v44 = vld [vmem:[%s985_s1 + $0x118] sm:$0xff]  }
   0xf   :  { %v786_v40 = vld [vmem:[%s986_s0 + $0x28] ss:$20 sps:$4 sm:$0xff]   ;;  %v788_v41 = vld [vmem:[%s985_s1 + $0x110] sm:$0xff]   ;;  %v791_v45 = vld [vmem:[%s986_s0 + $0x38] ss:$20 sps:$4 sm:$0xff]  }
  0x10   :  { %675 = vmatpush3.bf16.msra.mxu0 %v756_v14  ;;  %v790_v43 = vld [vmem:[%s986_s0 + $0x10] ss:$20 sps:$4 sm:$0xff]  }
  0x11   :  { %703 = vmatpush3.bf16.msra.mxu1 %v757_v15  ;;  %676 = vmatprep.subr.bf16.mxu0 %v758_v16 }
  0x12   :  { %704 = vmatprep.subr.bf16.mxu1 %v759_v17 }
  0x14   :  { %677 = vmatpush3.bf16.msra.mxu0 %v760_v18 }
  0x15   :  { %705 = vmatpush3.bf16.msra.mxu1 %v761_v19  ;;  %678 = vmatprep.subr.bf16.mxu0 %v762_v20 }
  0x16   :  { %706 = vmatprep.subr.bf16.mxu1 %v763_v21 }
  0x18   :  { %679 = vmatpush3.bf16.msra.mxu0 %v764_v22 }
  0x19   :  { %707 = vmatpush3.bf16.msra.mxu1 %v765_v23  ;;  %680 = vmatprep.subr.bf16.mxu0 %v766_v24 }
  0x1a   :  { %708 = vmatprep.subr.bf16.mxu1 %v767_v25 }
  0x1c   :  { %681 = vmatpush3.bf16.msra.mxu0 %v768_v26 }
  0x1d   :  { %709 = vmatpush3.bf16.msra.mxu1 %v769_v27  ;;  %682 = vmatprep.subr.bf16.mxu0 %v770_v28 }
  0x1e   :  { %710 = vmatprep.subr.bf16.mxu1 %v771_v29 }
  0x20   :  { %683 = vmatpush3.bf16.msra.mxu0 %v772_v30 }
  0x21   :  { %711 = vmatpush3.bf16.msra.mxu1 %v773_v31  ;;  %730 = vmatprep.subr.bf16.mxu0 %v780_v36 }
  0x23   :  { %408 = vmatmul.mubr.bf16.vlgmr.msra.gmra.mrb[0].mxu0 %v774_v32 }
  0x24   :  { %457 = vmatmul.mubr.bf16.vlgmr.msra.gmra.mrb[0].mxu1 %v777_v34  ;;  %731 = vmatpush3.bf16.msra.mxu0 %v780_v36 }
  0x25   :  { %732 = vmatprep.subr.bf16.mxu0 %v781_v37  ;;  %415 = vmatprep.mubr.bf16.mxu0 %v782_v38 }
  0x26   :  { %464 = vmatprep.mubr.bf16.mxu1 %v784_v39 }
  0x28   :  { %733 = vmatpush3.bf16.msra.mxu0 %v781_v37 }
  0x29   :  { %734 = vmatprep.subr.bf16.mxu0 %v788_v41 }
  0x2b   :  { %416 = vmatmul.mubr.bf16.gmra.mrb[4].mxu0 %v786_v40 }
  0x2c   :  { %465 = vmatmul.mubr.bf16.gmra.mrb[4].mxu1 %v787_v42  ;;  %738 = vmatprep.mubr.msk.bf16.mxu0 %vm368_vm0, %v790_v43 }
  0x2d   :  { %735 = vmatpush3.bf16.msra.mxu0 %v788_v41 }
  0x2e   :  { %736 = vmatprep.subr.bf16.mxu0 %v789_v44 }
  0x31   :  { %737 = vmatpush3.bf16.msra.mxu0 %v789_v44 }
  0x34   :  { %739 = vmatmul.mubr.msk.bf16.vlgmr.msra.gmra.mrb[8].mxu0 %vm368_vm0, %v791_v45 }
  0xf6   :  { %v684_v46 = vpop.f32.mrb[0].mxu0 }
  0xf7   :  { %v712_v47 = vpop.f32.mrb[0].mxu1  ;;  %v685_v48 = vpop.f32.mrb[1].mxu0 }
  0xf8   :  { %v686_v49 = vadd.f32 %v685_v48, %v684_v46  ;;  %v713_v50 = vpop.f32.mrb[1].mxu1  ;;  %v687_v51 = vpop.f32.mrb[2].mxu0 }
  0xf9   :  { %v714_v52 = vadd.f32 %v713_v50, %v712_v47  ;;  %v715_v53 = vpop.f32.mrb[2].mxu1  ;;  %v688_v54 = vpop.f32.mrb[3].mxu0 }
  0xfa   :  { %v689_v55 = vadd.f32 %v688_v54, %v687_v51  ;;  %v716_v56 = vpop.f32.mrb[3].mxu1 }
  0xfb   :  { %v717_v57 = vadd.f32 %v716_v56, %v715_v53  ;;  %v459_v58 = vadd.f32 %v714_v52, %v686_v49  ;;  %v564_v53 = vlaneseq }
  0xfd   :  { %v462_v59 = vadd.f32 %v717_v57, %v689_v55  ;;  %v565_v54 = vshrl.u32 %v564_v53, 7  ;;  %v556_v55 = vld [vmem:[%s987_s2] sm:$0x1] }
  0xfe   :  { %v690_v60 = vpop.f32.mrb[4].mxu0 }
  0xff   :  { %v718_v61 = vpop.f32.mrb[4].mxu1  ;;  %v691_v62 = vpop.f32.mrb[5].mxu0  ;;  %v566_v56 = vsub.s32 0, %v565_v54 }
 0x100   :  { %v692_v63 = vadd.f32 %v691_v62, %v690_v60  ;;  %v719_v0 = vpop.f32.mrb[5].mxu1  ;;  %v693_v1 = vpop.f32.mrb[6].mxu0 }
 0x101   :  { %v720_v2 = vadd.f32 %v719_v0, %v718_v61  ;;  %v721_v3 = vpop.f32.mrb[6].mxu1  ;;  %v694_v4 = vpop.f32.mrb[7].mxu0 }
 0x102   :  { %v695_v5 = vadd.f32 %v694_v4, %v693_v1  ;;  %v722_v6 = vpop.f32.mrb[7].mxu1 }
 0x103   :  { %v723_v7 = vadd.f32 %v722_v6, %v721_v3  ;;  %v467_v8 = vadd.f32 %v720_v2, %v692_v63 }
 0x105   :  { %v470_v9 = vadd.f32 %v723_v7, %v695_v5 }
 0x107   :  { %v740_v10 = vpop.f32.mrb[8].mxu0 }
 0x108   :  { %v516_v11 = vadd.f32 %v740_v10, %v467_v8  ;;  %v507_v12 = vpop.f32.mrb[9].mxu0 }
 0x109   :  { %v508_v13 = vadd.f32 %v507_v12, %v459_v58  ;;  %v741_v14 = vpop.f32.mrb[10].mxu0 }
 0x10a   :  { %v519_v15 = vadd.f32 %v741_v14, %v470_v9  ;;  %v510_v16 = vpop.f32.mrb[11].mxu0  ;;  %v537_v19 = vmul.f32 %v516_v11, %v516_v11  ;;  %v525_v24 = vsel %vm368_vm0, %v516_v11, 0.0 }
 0x10b   :  { %v535_v17 = vmul.f32 %v508_v13, %v508_v13  ;;  %v511_v18 = vadd.f32 %v510_v16, %v462_v59  ;;  %v522_v20 = vsel %vm368_vm0, %v508_v13, 0.0  ;;  %v560_v59 = vld [vmem:[%s988_s3] sm:$0x1] }
 0x10c   :  { %v538_v26 = vmul.f32 %v519_v15, %v519_v15  ;;  %v542_v30 = vsel %vm368_vm0, %v537_v19, 0.0  ;;  %v527_v31 = vsel %vm368_vm0, %v519_v15, 0.0 }
 0x10d   :  { %v523_v21 = vsel %vm368_vm0, %v511_v18, 0.0  ;;  %v536_v22 = vmul.f32 %v511_v18, %v511_v18  ;;  %v539_v25 = vsel %vm368_vm0, %v535_v17, 0.0 }
 0x10e   :  { %v524_v23 = vadd.f32 %v523_v21, %v522_v20  ;;  %v544_v34 = vsel %vm368_vm0, %v538_v26, 0.0 }
 0x10f   :  { %v540_v27 = vsel %vm368_vm0, %v536_v22, 0.0 }
 0x110   :  { %v526_v28 = vadd.f32 %v525_v24, %v524_v23  ;;  %v541_v29 = vadd.f32 %v540_v27, %v539_v25 }
 0x112   :  { %v528_v32 = vadd.f32 %v527_v31, %v526_v28  ;;  %v543_v33 = vadd.f32 %v542_v30, %v541_v29 }
 0x114   :  { %v529_v35 = vrot.slane %v528_v32, 4  ;;  %v545_v36 = vadd.f32 %v544_v34, %v543_v33 }
 0x116   :  { %v530_v37 = vadd.f32 %v529_v35, %v528_v32  ;;  %v546_v38 = vrot.slane %v545_v36, 4 }
 0x118   :  { %v531_v39 = vrot.slane %v530_v37, 2  ;;  %v547_v40 = vadd.f32 %v546_v38, %v545_v36 }
 0x11a   :  { %v532_v41 = vadd.f32 %v531_v39, %v530_v37  ;;  %v548_v42 = vrot.slane %v547_v40, 2 }
 0x11c   :  { %v533_v43 = vrot.slane %v532_v41, 1  ;;  %v549_v44 = vadd.f32 %v548_v42, %v547_v40 }
 0x11e   :  { %v534_v45 = vadd.f32 %v533_v43, %v532_v41  ;;  %v550_v46 = vrot.slane %v549_v44, 1 }
 0x120   :  { %v551_v47 = vadd.f32 %v550_v46, %v549_v44  ;;  %v552_v48 = vmul.f32 0.03125, %v534_v45 }
 0x122   :  { %v553_v49 = vmul.f32 0.03125, %v551_v47  ;;  %v554_v50 = vmul.f32 %v552_v48, %v552_v48 }
 0x124   :  { %v555_v51 = vsub.f32 %v553_v49, %v554_v50 }
 0x126   :  { %v557_v52 = vadd.f32 1e-05, %v555_v51 }
 0x128   :  { %792 = vrsqrt.f32 %v557_v52 }
 0x132   :  { %v793_v57 = vpop.eup %792 }
 0x133   :  { %v559_v58 = vmul.f32 %v793_v57, %v556_v55 }
 0x135   :  { %v561_v60 = vmul.f32 %v559_v58, %v552_v48  ;;  %v567_v61 = vrot.slane %v559_v58, %v566_v56 }
 0x137   :  { %v562_v62 = vsub.f32 %v560_v59, %v561_v60  ;;  %v569_v63 = vmul.f32 %v567_v61, %v508_v13  ;;  %v570_v0 = vmul.f32 %v567_v61, %v511_v18  ;;  %v571_v1 = vmul.f32 %v567_v61, %v516_v11 }
 0x138   :  { %v572_v2 = vmul.f32 %v567_v61, %v519_v15 }
 0x139   :  { %v577_v3 = vrot.slane %v562_v62, %v566_v56 }
 0x13b   :  { %v579_v4 = vadd.f32 %v577_v3, %v569_v63  ;;  %v580_v5 = vadd.f32 %v577_v3, %v570_v0  ;;  %v581_v6 = vadd.f32 %v577_v3, %v571_v1  ;;  %v582_v7 = vadd.f32 %v577_v3, %v572_v2 }
 0x13d   :  { %v583_v8 = vmax.f32 %v579_v4, 0.0  ;;  %v584_v9 = vmax.f32 %v580_v5, 0.0  ;;  %v585_v10 = vmax.f32 %v581_v6, 0.0  ;;  %v586_v12 = vmax.f32 %v582_v7, 0.0 }
 0x13f   :  { %v664_v14 = vpack.c.bf16 %v583_v8, %v583_v8  ;;  %v665_v16 = vpack.c.bf16 %v584_v9, %v584_v9  ;;  %v666_v17 = vpack.c.bf16 %v585_v10, %v585_v10  ;;  %v667_v19 = vpack.c.bf16 %v586_v12, %v586_v12 }
 0x141   :  { %604 = vst.msk [vmem:[%s989_s4] sm:$0xf] %vm603_vm1, %v664_v14  ;;  %605 = vst.msk [vmem:[%s989_s4 + $0x4] sm:$0xf] %vm603_vm1, %v665_v16 }
 0x142   :  { %606 = vst.msk [vmem:[%s989_s4 + $0x8] sm:$0xf] %vm603_vm1, %v666_v17  ;;  %607 = vst.msk [vmem:[%s989_s4 + $0xc] sm:$0xf] %vm603_vm1, %v667_v19 }

</bundles_post_ra>
